<compile_context>
chip_gen: v6e
topology: v6e:2x2x1
jax: 0.10.0
libtpu: 0.0.40
codegen_flags: <defaults>
</compile_context>

<pallas_src>
import jax
import jax.numpy as jnp
from jax import lax
from jax.experimental import pallas as pl
from jax.experimental.pallas import tpu as pltpu


_PATCH_BUDGET_BYTES = 2 * 1024 * 1024     # per-grid-step working set target
_VMEM_LIMIT_BYTES = 32 * 1024 * 1024      # safe on v5e / v6e / v7x


# --------------------------- Pallas kernels -------------------------------- #
def _pick_row_tile(H, W, cin, cout):
    """Largest divisor TH of H whose per-step working set fits the budget."""
    for th in range(H, 0, -1):
        if H % th:
            continue
        work = 4 * (th * W * 9 * cin            # patch matrix (f32)
                    + (th + 2) * (W + 2) * cin  # haloed input rows
                    + th * W * cout)            # output tile
        if work <= _PATCH_BUDGET_BYTES:
            return th
    return 1


def _make_conv3x3_kernel(TH, H, W, cin, cout, relu, single_k):
    n_rows = H // TH

    def kernel(xp_ref, w_ref, s_ref, b_ref, out_ref):
        # Haloed row window of the padded image (sliced in VMEM, not HBM).
        if n_rows == 1:
            xt = xp_ref[0]                                   # (H+2, W+2, cin)
        else:
            row0 = pl.multiple_of(pl.program_id(1) * TH, TH)
            xt = xp_ref[0, pl.ds(row0, TH + 2), :, :]        # (TH+2, W+2, cin)

        taps = [xt[ky:ky + TH, kx:kx + W, :].reshape(TH * W, cin)
                for ky in range(3) for kx in range(3)]

        if single_k:
            # One K = 9*cin MXU matmul over the channel-concatenated patches.
            patches = jnp.concatenate(taps, axis=1)          # (TH*W, 9*cin)
            acc = jnp.dot(patches, w_ref[...],
                          preferred_element_type=jnp.float32)
        else:
            # Fallback for the Cin=3 stem (tap loop, tiny layer).
            acc = jnp.dot(taps[0], w_ref[0],
                          preferred_element_type=jnp.float32)
            for t in range(1, 9):
                acc = acc + jnp.dot(taps[t], w_ref[t],
                                    preferred_element_type=jnp.float32)

        y = acc * s_ref[...] + b_ref[...]                    # folded bias+BN
        if relu:
            y = jnp.maximum(y, 0.0)
        out_ref[...] = y.reshape(1, TH, W, cout).astype(out_ref.dtype)

    return kernel


def conv3x3_bn_act(x, p, relu=True):
    """x: (N,H,W,Cin) f32.  p: dict(w=(3,3,Cin,Cout), s=(Cout,), b=(Cout,))."""
    N, H, W, cin = x.shape
    cout = p["w"].shape[-1]
    single_k = (cin % 8 == 0)
    TH = _pick_row_tile(H, W, cin, cout)
    n_rows = H // TH

    xp = jnp.pad(x, ((0, 0), (1, 1), (1, 1), (0, 0)))        # "same" zero pad
    if single_k:
        w_in = p["w"].reshape(9 * cin, cout)
        w_spec = pl.BlockSpec((9 * cin, cout), lambda nb, rb: (0, 0))
    else:
        w_in = p["w"].reshape(9, cin, cout)
        w_spec = pl.BlockSpec((9, cin, cout), lambda nb, rb: (0, 0, 0))
    s = p["s"].reshape(1, cout)
    b = p["b"].reshape(1, cout)

    kernel = _make_conv3x3_kernel(TH, H, W, cin, cout, relu, single_k)
    return pl.pallas_call(
        kernel,
        out_shape=jax.ShapeDtypeStruct((N, H, W, cout), jnp.float32),
        grid_spec=pltpu.PrefetchScalarGridSpec(
            num_scalar_prefetch=0,
            grid=(N, n_rows),
            in_specs=[
                # Whole padded image per batch element; haloed row windows are
                # sliced inside the kernel (no 9x tap copies through HBM).
                pl.BlockSpec((1, H + 2, W + 2, cin),
                             lambda nb, rb: (nb, 0, 0, 0)),
                w_spec,
                pl.BlockSpec((1, cout), lambda nb, rb: (0, 0)),
                pl.BlockSpec((1, cout), lambda nb, rb: (0, 0)),
            ],
            out_specs=pl.BlockSpec((1, TH, W, cout),
                                   lambda nb, rb: (nb, rb, 0, 0)),
        ),
        compiler_params=pltpu.CompilerParams(
            dimension_semantics=("parallel", "parallel"),
            vmem_limit_bytes=_VMEM_LIMIT_BYTES),
    )(xp, w_in, s, b)


def _make_matmul_kernel(act):
    def kernel(x_ref, w_ref, s_ref, b_ref, out_ref):
        y = jnp.dot(x_ref[...], w_ref[...],
                    preferred_element_type=jnp.float32)
        y = y * s_ref[...] + b_ref[...]
        if act == "relu":
            y = jnp.maximum(y, 0.0)
        elif act == "sigmoid":
            y = 1.0 / (1.0 + jnp.exp(-y))
        out_ref[...] = y.astype(out_ref.dtype)
    return kernel


def _pick_m_tile(M, target=1024):
    for tm in range(min(M, target), 0, -1):
        if M % tm == 0 and (tm % 8 == 0 or tm == M):
            return tm
    return M


def conv1x1_bn_act(x, p, act=None):
    """x: (N,H,W,Cin).  p: dict(w=(Cin,Cout), s=(Cout,), b=(Cout,))."""
    N, H, W, cin = x.shape
    cout = p["w"].shape[-1]
    M = N * H * W
    TM = _pick_m_tile(M)
    x2 = x.reshape(M, cin)
    s = p["s"].reshape(1, cout)
    b = p["b"].reshape(1, cout)

    y = pl.pallas_call(
        _make_matmul_kernel(act),
        out_shape=jax.ShapeDtypeStruct((M, cout), jnp.float32),
        grid_spec=pltpu.PrefetchScalarGridSpec(
            num_scalar_prefetch=0,
            grid=(M // TM,),
            in_specs=[
                pl.BlockSpec((TM, cin), lambda i: (i, 0)),
                pl.BlockSpec((cin, cout), lambda i: (0, 0)),
                pl.BlockSpec((1, cout), lambda i: (0, 0)),
                pl.BlockSpec((1, cout), lambda i: (0, 0)),
            ],
            out_specs=pl.BlockSpec((TM, cout), lambda i: (i, 0)),
        ),
        compiler_params=pltpu.CompilerParams(
            dimension_semantics=("parallel",),
            vmem_limit_bytes=_VMEM_LIMIT_BYTES),
    )(x2, p["w"], s, b)
    return y.reshape(N, H, W, cout)


# ------------------------------ XLA glue ----------------------------------- #
def maxpool2(x):
    N, H, W, C = x.shape
    return x.reshape(N, H // 2, 2, W // 2, 2, C).max(axis=(2, 4))


def upsample2_nearest(x):
    N, H, W, C = x.shape
    x = jnp.broadcast_to(x[:, :, None, :, None, :], (N, H, 2, W, 2, C))
    return x.reshape(N, 2 * H, 2 * W, C)


def bilinear_resize(x, H, W):
    # Matches F.interpolate(mode='bilinear', align_corners=False) for integer
    # upscale factors; the PyTorch model hard-codes size=(448, 448), here we
    # resize to the network input size so small shapes stay consistent.
    N, _, _, C = x.shape
    return jax.image.resize(x, (N, H, W, C), method="bilinear")


# ------------------------------ parameters --------------------------------- #
def _init_conv3x3(key, cin, cout):
    kw, ks, kb = jax.random.split(key, 3)
    w = jax.random.normal(kw, (3, 3, cin, cout), jnp.float32) * (
        2.0 / (9.0 * cin)) ** 0.5
    s = 1.0 + 0.1 * jax.random.normal(ks, (cout,), jnp.float32)
    b = 0.1 * jax.random.normal(kb, (cout,), jnp.float32)
    return dict(w=w, s=s, b=b)


def _init_conv1x1(key, cin, cout, bn=True, bias=False):
    kw, ks, kb = jax.random.split(key, 3)
    w = jax.random.normal(kw, (cin, cout), jnp.float32) * (2.0 / cin) ** 0.5
    if bn:
        s = 1.0 + 0.1 * jax.random.normal(ks, (cout,), jnp.float32)
        b = 0.1 * jax.random.normal(kb, (cout,), jnp.float32)
    else:
        s = jnp.ones((cout,), jnp.float32)
        b = (0.1 * jax.random.normal(kb, (cout,), jnp.float32)
             if bias else jnp.zeros((cout,), jnp.float32))
    return dict(w=w, s=s, b=b)


def init_params(key):
    n1 = 32
    f = [n1, n1 * 2, n1 * 4, n1 * 8, n1 * 16]          # 32, 64, 128, 256, 512
    keys = iter(jax.random.split(key, 64))

    def nk():
        return next(keys)

    def conv_block_p(cin, cout):
        return [_init_conv3x3(nk(), cin, cout), _init_conv3x3(nk(), cout, cout)]

    return {
        "Conv1": conv_block_p(3, f[0]),
        "Conv2": conv_block_p(f[0], f[1]),
        "Conv3": conv_block_p(f[1], f[2]),
        "Conv4": conv_block_p(f[2], f[3]),
        "Conv5": conv_block_p(f[3], f[4]),
        "Up5": _init_conv3x3(nk(), f[4], f[3]),
        "Up_conv5": conv_block_p(f[4], f[3]),
        "Up4": _init_conv3x3(nk(), f[3], f[2]),
        "Up_conv4": conv_block_p(f[3], f[2]),
        "Up3": _init_conv3x3(nk(), f[2], f[1]),
        "Up_conv3": conv_block_p(f[2], f[1]),
        "Up2": _init_conv3x3(nk(), f[1], f[0]),
        "Up_conv2": conv_block_p(f[1], f[0]),
        "Conv": _init_conv1x1(nk(), f[0], 1, bn=False, bias=True),
        "msfm": {
            "conv1": _init_conv3x3(nk(), 64, 16),
            "conv2": _init_conv3x3(nk(), 128, 32),
            "conv3": _init_conv3x3(nk(), 256, 64),
            "hconv1": _init_conv1x1(nk(), 96, 32, bn=True, bias=False),
            "outconv": _init_conv1x1(nk(), 48, 1, bn=False, bias=False),
        },
    }


# ------------------------------ forward ------------------------------------ #
def _forward(x_nchw, P, conv3, conv1):
    x = jnp.transpose(x_nchw, (0, 2, 3, 1)).astype(jnp.float32)   # NCHW->NHWC
    N, H, W, _ = x.shape

    def conv_block(h, prm):
        h = conv3(h, prm[0], relu=True)
        return conv3(h, prm[1], relu=True)

    def up_conv(h, prm):
        return conv3(upsample2_nearest(h), prm, relu=True)

    def msfm(f224, f112, f56, M):
        f224 = conv3(f224, M["conv1"], relu=True)
        f112 = conv3(f112, M["conv2"], relu=True)
        f56 = upsample2_nearest(conv3(f56, M["conv3"], relu=True))
        h112 = jnp.concatenate([f112, f56], axis=-1)
        h112 = upsample2_nearest(conv1(h112, M["hconv1"], act="relu"))
        h224 = jnp.concatenate([h112, f224], axis=-1)
        return conv1(h224, M["outconv"], act="sigmoid")

    e1 = conv_block(x, P["Conv1"])
    e2 = conv_block(maxpool2(e1), P["Conv2"])
    e3 = conv_block(maxpool2(e2), P["Conv3"])
    e4 = conv_block(maxpool2(e3), P["Conv4"])
    e5 = maxpool2(e4)

    edge_224 = msfm(e2, e3, e4, P["msfm"])
    edge_112 = maxpool2(edge_224)
    edge_56 = maxpool2(edge_112)
    edge_448 = bilinear_resize(edge_112, H, W)

    e5 = conv_block(e5, P["Conv5"])

    d5 = up_conv(e5, P["Up5"])
    d5 = jnp.concatenate([e4, d5], axis=-1)
    d5 = d5 + d5 * edge_56
    d5 = conv_block(d5, P["Up_conv5"])

    d4 = up_conv(d5, P["Up4"])
    d4 = jnp.concatenate([e3, d4], axis=-1)
    d4 = d4 + d4 * edge_112
    d4 = conv_block(d4, P["Up_conv4"])

    d3 = up_conv(d4, P["Up3"])
    d3 = jnp.concatenate([e2, d3], axis=-1)
    d3 = d3 + d3 * edge_224
    d3 = conv_block(d3, P["Up_conv3"])

    d2 = up_conv(d3, P["Up2"])
    d2 = jnp.concatenate([e1, d2], axis=-1)
    d2 = d2 + d2 * edge_448
    d2 = conv_block(d2, P["Up_conv2"])

    out = conv1(d2, P["Conv"], act=None)

    # NHWC -> NCHW only at the public boundary.
    return (jnp.transpose(out, (0, 3, 1, 2)),
            jnp.transpose(edge_448, (0, 3, 1, 2)))


# --------------------------- pure-XLA reference ----------------------------- #
def ref_conv3x3(x, p, relu=True):
    y = lax.conv_general_dilated(
        x, p["w"], window_strides=(1, 1), padding=((1, 1), (1, 1)),
        dimension_numbers=("NHWC", "HWIO", "NHWC"),
        precision=lax.Precision.HIGHEST)
    y = y * p["s"].reshape(1, 1, 1, -1) + p["b"].reshape(1, 1, 1, -1)
    return jnp.maximum(y, 0.0) if relu else y


def ref_conv1x1(x, p, act=None):
    y = jnp.einsum("nhwc,cd->nhwd", x, p["w"],
                   precision=lax.Precision.HIGHEST)
    y = y * p["s"].reshape(1, 1, 1, -1) + p["b"].reshape(1, 1, 1, -1)
    if act == "relu":
        y = jnp.maximum(y, 0.0)
    elif act == "sigmoid":
        y = 1.0 / (1.0 + jnp.exp(-y))
    return y


# --------------------------------- main ------------------------------------ #
if __name__ == "__main__":
    key = jax.random.PRNGKey(0)
    k_x, k_p, k_u1, k_u2 = jax.random.split(key, 4)

    N, H, W = 2, 32, 32            # small; the real model uses 448x448 inputs
    x = jax.random.normal(k_x, (N, 3, H, W), jnp.float32)
    params = init_params(k_p)

    # Unit checks of the two Pallas kernels against XLA (exercises the
    # multi-row-tile path of the 3x3 kernel: H=W=32, Cin=64 -> 2 row tiles).
    xu = jax.random.normal(k_u1, (2, 32, 32, 64), jnp.float32)
    pu3 = _init_conv3x3(k_u2, 64, 32)
    got = conv3x3_bn_act(xu, pu3, relu=True)
    want = ref_conv3x3(xu, pu3, relu=True)
    assert jnp.allclose(got, want, atol=2e-2, rtol=2e-2), float(
        jnp.max(jnp.abs(got - want)))

    pu1 = _init_conv1x1(k_u2, 64, 32, bn=True)
    got1 = conv1x1_bn_act(xu, pu1, act="relu")
    want1 = ref_conv1x1(xu, pu1, act="relu")
    assert jnp.allclose(got1, want1, atol=2e-2, rtol=2e-2), float(
        jnp.max(jnp.abs(got1 - want1)))

    # Full forward: Pallas kernels vs pure-XLA reference.
    out_k, edge_k = _forward(x, params, conv3x3_bn_act, conv1x1_bn_act)
    out_k = jax.block_until_ready(out_k)
    edge_k = jax.block_until_ready(edge_k)

    out_r, edge_r = _forward(x, params, ref_conv3x3, ref_conv1x1)
    out_r = jax.block_until_ready(out_r)

    assert out_k.shape == (N, 1, H, W), out_k.shape
    assert edge_k.shape == (N, 1, H, W), edge_k.shape
    assert bool(jnp.all(jnp.isfinite(out_k)))
    assert bool(jnp.all(jnp.isfinite(edge_k)))
    # Loose end-to-end tolerance: ~25 stacked matmuls accumulate MXU rounding
    # differently in the kernel path vs the XLA reference.
    assert jnp.allclose(edge_k, edge_r, atol=0.1, rtol=0.1), float(
        jnp.max(jnp.abs(edge_k - edge_r)))
    assert jnp.allclose(out_k, out_r, atol=0.1, rtol=0.1), float(
        jnp.max(jnp.abs(out_k - out_r)))

    print("KERNEL_OK")
</pallas_src>

<mosaic_0001>
module attributes {stable_mosaic.version = 11 : i64} {
  func.func @kernel(%arg0: i32, %arg1: i32, %arg2: memref<1x34x34x64xf32, #tpu.memory_space<vmem>>, %arg3: memref<576x32xf32, #tpu.memory_space<vmem>>, %arg4: memref<1x32xf32, #tpu.memory_space<vmem>>, %arg5: memref<1x32xf32, #tpu.memory_space<vmem>>, %arg6: memref<1x16x32x32xf32, #tpu.memory_space<vmem>>) attributes {dimension_semantics = [#tpu.dimension_semantics<parallel>, #tpu.dimension_semantics<parallel>], iteration_bounds = array<i64: 2, 2>, scalar_prefetch = 0 : i64, scratch_operands = 0 : i64, tpu.core_type = #tpu.core_type<tc>, window_params = [{transform_indices = @transform_0, window_bounds = array<i64: 1, 34, 34, 64>}, {pipeline_mode = #tpu.pipeline_mode<synchronous>, transform_indices = @transform_1, window_bounds = array<i64: 576, 32>}, {pipeline_mode = #tpu.pipeline_mode<synchronous>, transform_indices = @transform_2, window_bounds = array<i64: 1, 32>}, {pipeline_mode = #tpu.pipeline_mode<synchronous>, transform_indices = @transform_3, window_bounds = array<i64: 1, 32>}, {transform_indices = @transform_4, window_bounds = array<i64: 1, 16, 32, 32>}]} {
    %c16_i32 = arith.constant 16 : i32
    %0 = arith.muli %arg1, %c16_i32 : i32
    %1 = tpu.assume_multiple %0, 16 : i32
    %c0 = arith.constant 0 : index
    %2 = arith.index_cast %1 : i32 to index
    %c0_0 = arith.constant 0 : index
    %c0_1 = arith.constant 0 : index
    %3 = vector.load %arg2[%c0, %2, %c0_0, %c0_1] : memref<1x34x34x64xf32, #tpu.memory_space<vmem>>, vector<1x18x34x64xf32>
    %4 = vector.shape_cast %3 : vector<1x18x34x64xf32> to vector<18x34x64xf32>
    %5 = vector.extract_strided_slice %4 {offsets = [0, 0, 0], sizes = [16, 32, 64], strides = [1, 1, 1]} : vector<18x34x64xf32> to vector<16x32x64xf32>
    %6 = vector.shape_cast %5 : vector<16x32x64xf32> to vector<512x64xf32>
    %7 = vector.extract_strided_slice %4 {offsets = [0, 1, 0], sizes = [16, 32, 64], strides = [1, 1, 1]} : vector<18x34x64xf32> to vector<16x32x64xf32>
    %8 = vector.shape_cast %7 : vector<16x32x64xf32> to vector<512x64xf32>
    %9 = vector.extract_strided_slice %4 {offsets = [0, 2, 0], sizes = [16, 32, 64], strides = [1, 1, 1]} : vector<18x34x64xf32> to vector<16x32x64xf32>
    %10 = vector.shape_cast %9 : vector<16x32x64xf32> to vector<512x64xf32>
    %11 = vector.extract_strided_slice %4 {offsets = [1, 0, 0], sizes = [16, 32, 64], strides = [1, 1, 1]} : vector<18x34x64xf32> to vector<16x32x64xf32>
    %12 = vector.shape_cast %11 : vector<16x32x64xf32> to vector<512x64xf32>
    %13 = vector.extract_strided_slice %4 {offsets = [1, 1, 0], sizes = [16, 32, 64], strides = [1, 1, 1]} : vector<18x34x64xf32> to vector<16x32x64xf32>
    %14 = vector.shape_cast %13 : vector<16x32x64xf32> to vector<512x64xf32>
    %15 = vector.extract_strided_slice %4 {offsets = [1, 2, 0], sizes = [16, 32, 64], strides = [1, 1, 1]} : vector<18x34x64xf32> to vector<16x32x64xf32>
    %16 = vector.shape_cast %15 : vector<16x32x64xf32> to vector<512x64xf32>
    %17 = vector.extract_strided_slice %4 {offsets = [2, 0, 0], sizes = [16, 32, 64], strides = [1, 1, 1]} : vector<18x34x64xf32> to vector<16x32x64xf32>
    %18 = vector.shape_cast %17 : vector<16x32x64xf32> to vector<512x64xf32>
    %19 = vector.extract_strided_slice %4 {offsets = [2, 1, 0], sizes = [16, 32, 64], strides = [1, 1, 1]} : vector<18x34x64xf32> to vector<16x32x64xf32>
    %20 = vector.shape_cast %19 : vector<16x32x64xf32> to vector<512x64xf32>
    %21 = vector.extract_strided_slice %4 {offsets = [2, 2, 0], sizes = [16, 32, 64], strides = [1, 1, 1]} : vector<18x34x64xf32> to vector<16x32x64xf32>
    %22 = vector.shape_cast %21 : vector<16x32x64xf32> to vector<512x64xf32>
    %23 = tpu.concatenate %6, %8, %10, %12, %14, %16, %18, %20, %22 in 1 : vector<512x64xf32>, vector<512x64xf32>, vector<512x64xf32>, vector<512x64xf32>, vector<512x64xf32>, vector<512x64xf32>, vector<512x64xf32>, vector<512x64xf32>, vector<512x64xf32> -> vector<512x576xf32>
    %c0_2 = arith.constant 0 : index
    %c0_3 = arith.constant 0 : index
    %24 = vector.load %arg3[%c0_2, %c0_3] : memref<576x32xf32, #tpu.memory_space<vmem>>, vector<576x32xf32>
    %cst = arith.constant dense<0.000000e+00> : vector<512x32xf32>
    %25 = tpu.matmul %23, %24, %cst {dimension_numbers = #tpu.dot_dimension_numbers<[1], [0], [0], [1], [0, 0, 1, 1], [], []>} : vector<512x576xf32>, vector<576x32xf32>, vector<512x32xf32> -> vector<512x32xf32>
    %c0_4 = arith.constant 0 : index
    %c0_5 = arith.constant 0 : index
    %26 = vector.load %arg4[%c0_4, %c0_5] : memref<1x32xf32, #tpu.memory_space<vmem>>, vector<1x32xf32>
    %27 = vector.broadcast %26 : vector<1x32xf32> to vector<512x32xf32>
    %28 = arith.mulf %25, %27 : vector<512x32xf32>
    %c0_6 = arith.constant 0 : index
    %c0_7 = arith.constant 0 : index
    %29 = vector.load %arg5[%c0_6, %c0_7] : memref<1x32xf32, #tpu.memory_space<vmem>>, vector<1x32xf32>
    %30 = vector.broadcast %29 : vector<1x32xf32> to vector<512x32xf32>
    %31 = arith.addf %28, %30 : vector<512x32xf32>
    %cst_8 = arith.constant 0.000000e+00 : f32
    %32 = vector.broadcast %cst_8 : f32 to vector<512x32xf32>
    %33 = arith.maximumf %31, %32 : vector<512x32xf32>
    %34 = vector.shape_cast %33 : vector<512x32xf32> to vector<1x16x32x32xf32>
    %c0_9 = arith.constant 0 : index
    %c0_10 = arith.constant 0 : index
    %c0_11 = arith.constant 0 : index
    %c0_12 = arith.constant 0 : index
    %35 = vector.load %arg6[%c0_9, %c0_10, %c0_11, %c0_12] : memref<1x16x32x32xf32, #tpu.memory_space<vmem>>, vector<1x16x32x32xf32>
    tpu.vector_store %arg6[%c0_9, %c0_10, %c0_11, %c0_12], %34 {strides = array<i32>} : memref<1x16x32x32xf32, #tpu.memory_space<vmem>>, vector<1x16x32x32xf32>,
    return
  }
  func.func @transform_0(%arg0: i32, %arg1: i32) -> (i32, i32, i32, i32) {
    %c0_i32 = arith.constant 0 : i32
    %c0_i32_0 = arith.constant 0 : i32
    %c0_i32_1 = arith.constant 0 : i32
    %c0_i32_2 = arith.constant 0 : i32
    return %arg0, %c0_i32, %c0_i32_0, %c0_i32_1 : i32, i32, i32, i32
  }
  func.func @transform_1(%arg0: i32, %arg1: i32) -> (i32, i32) {
    %c0_i32 = arith.constant 0 : i32
    %c0_i32_0 = arith.constant 0 : i32
    %c0_i32_1 = arith.constant 0 : i32
    return %c0_i32, %c0_i32_0 : i32, i32
  }
  func.func @transform_2(%arg0: i32, %arg1: i32) -> (i32, i32) {
    %c0_i32 = arith.constant 0 : i32
    %c0_i32_0 = arith.constant 0 : i32
    %c0_i32_1 = arith.constant 0 : i32
    return %c0_i32, %c0_i32_0 : i32, i32
  }
  func.func @transform_3(%arg0: i32, %arg1: i32) -> (i32, i32) {
    %c0_i32 = arith.constant 0 : i32
    %c0_i32_0 = arith.constant 0 : i32
    %c0_i32_1 = arith.constant 0 : i32
    return %c0_i32, %c0_i32_0 : i32, i32
  }
  func.func @transform_4(%arg0: i32, %arg1: i32) -> (i32, i32, i32, i32) {
    %c0_i32 = arith.constant 0 : i32
    %c0_i32_0 = arith.constant 0 : i32
    %c0_i32_1 = arith.constant 0 : i32
    return %arg0, %arg1, %c0_i32, %c0_i32_0 : i32, i32, i32, i32
  }
}

</mosaic_0001>

<bundles_post_ra>
// kernel: tpu_custom_call.1
= control target key start
LH: loop header
LB: loop body
LE: loop exit
PB: predicated region body
PF: predicated region fallthrough
CT: control target
= control target key end

     0   :  { %9 = vsyncpa [#allocation3], 0  ;;  %s7555_s0 = inlined_call_operand.vmem [shape: f32[2,34,34,64], index: 0, kind: input, shape index: {}]   ;;  %s7556_s1 = inlined_call_operand.vmem [shape: f32[576,32], index: 1, kind: input, shape index: {}]   ;;  %s7557_s2 = inlined_call_operand.vmem [shape: f32[1,32], index: 2, kind: input, shape index: {}]   ;;  %s7558_s3 = inlined_call_operand.vmem [shape: f32[1,32], index: 3, kind: input, shape index: {}]   ;;  %s7559_s4 = inlined_call_operand.hbm [shape: f32[2,32,32,32], index: 4, kind: output, shape index: {}]  }
   0x1   :  { %11 = vsyncpa [#allocation3 + $0x1], 0  ;;  %s4421_s15 = smov 0   ;;  %s4423_s16 = smov 0  }
   0x2   :  { %s4425_s17 = smov 0   ;;  %s4427_s18 = smov 0  }
   0x3   :  { %s4429_s19 = smov 0   ;;  %s4431_s20 = smov 0  }
   0x4   :  { %s4433_s21 = smov 0   ;;  %s4435_s22 = smov 0  }
   0x5 LB: > { %s3370_s23 = sadd.s32 4294967295, %s4389_s22   ;;  %s3371_s24 = sadd.s32 4294967294, %s4389_s22   ;;  %s4389_s22 = sphi %s4435_s22, %s17_s22   ;;  %s4385_s21 = sphi %s4433_s21, %s8037_s21   ;;  %s4381_s20 = sphi %s4431_s20, %s8036_s20   ;;  %s4377_s19 = sphi %s4429_s19, %s8035_s19   ;;  %s4373_s18 = sphi %s4427_s18, %s8034_s18   ;;  %s4369_s17 = sphi %s4425_s17, %s8033_s17   ;;  %s4365_s16 = sphi %s4423_s16, %s8032_s16   ;;  %s4361_s15 = sphi %s4421_s15, %s8031_s15  }
   0x6   : > { %s26_s25 = sadd.s32 1, %s4381_s20  ;;  %s29_s26 = sadd.s32 1, %s4385_s21 }
   0x7   : > { %p27_p0 = scmp.ge.s32.totalorder %s26_s25, 2  ;;  %p137_p1 = scmp.ne.s32.totalorder %s4369_s17, %s4365_s16 }
   0x8   : > { %p138_p2 = scmp.eq.s32.totalorder %s3370_s23, 3  ;;  %p143_p5 = scmp.ne.s32.totalorder %s4365_s16, %s4361_s15 }
   0x9   : > { %s8039_s25 = smov (%p27_p0, %s26_s25), 0  ;;  %s8041_s26 = smov (!%p27_p0, %s29_s26), %s4385_s21 }
   0xa   : > { %s123_s27 = ssub.s32 %s4381_s20, %s8039_s25  ;;  %p4472_p3 = por %p138_p2, %p137_p1 }
   0xb   : > { %p31_p4 = scmp.ge.s32.totalorder %s8041_s26, 2  ;;  %p144_p6 = scmp.eq.s32.totalorder %s3371_s24, 3 }
   0xc   : > { %p3374_p7 = scmp.ge.s32.totalorder %s4389_s22, 1  ;;  %p179_p9 = scmp.lt.s32.totalorder %s4389_s22, 5 }
   0xd   : > { %s8043_s26 = smov (%p31_p4, %s8041_s26), 0  ;;  %p4481_p8 = por %p144_p6, %p143_p5 }
   0xe   : > { %s122_s30 = ssub.s32 %s4385_s21, %s8043_s26  ;;  %s127_s5 = sadd.s32 1, %s4369_s17 }
   0xf   : > { %s124_s6 = sor.u32 %s123_s27, %s122_s30  ;;  %p180_p10 = pnand %p3374_p7, %p179_p9 }
  0x10   : > { %p125_p11 = scmp.eq.s32.totalorder %s124_s6, 0 }
  0x11   : > { %183 = sbr.rel (%p180_p10) target bundleno = 700 (0x2bc), region = 36 }
  0x12   : > { %s4490_s7 = scalar_select %p125_p11, %s4369_s17, %s127_s5  }
  0x16   : > { %p205_p12 = scmp.lt.s32.totalorder %s4377_s19, 1  ;;  %v1664_v0 = vld [vmem:[%s7556_s1 + $0x78] sm:$0xff]  ;;  %v7562_v1 = vmov 0.0   ;;  %v1663_v2 = vld [vmem:[%s7556_s1 + $0x70] sm:$0xff]  ;;  %s3378_s13 = smul.u32 640, %s4373_s18  ;;  %v1662_v3 = vld [vmem:[%s7556_s1 + $0x68] sm:$0xff] }
  0x17   : > { %1849 = vmatprep.subr.mxu0 %v7562_v1  ;;  %3637 = vmatprep.subr.mxu1 %v7562_v1  ;;  %v1661_v4 = vld [vmem:[%s7556_s1 + $0x60] sm:$0xff]  ;;  %v1660_v5 = vld [vmem:[%s7556_s1 + $0x58] sm:$0xff]  ;;  %v1659_v9 = vld [vmem:[%s7556_s1 + $0x50] sm:$0xff]  ;;  %vm384_vm0 = vcmask 1046528   ;;  %s4392_s14 = smov 64   ;;  %vm529_vm1 = vcmask 1045504  }
  0x18   : > { %s206_s12 = scalar_select %p205_p12, %s4377_s19, 1  ;;  %1850 = vmatpush1.msra.mxu0 %v1664_v0  ;;  %3669 = vmatpush1.msra.mxu1 %v1664_v0  ;;  %v1658_v28 = vld [vmem:[%s7556_s1 + $0x48] sm:$0xff]  ;;  %v1657_v44 = vld [vmem:[%s7556_s1 + $0x40] sm:$0xff]  ;;  %v1656_v55 = vld [vmem:[%s7556_s1 + $0x38] sm:$0xff]  ;;  %vm1448_vm2 = vcmask 523264   ;;  %vm3210_vm3 = vcmask 261120  }
  0x19   : > { %1851 = vmatprep.subr.mxu0 %v7562_v1  ;;  %3638 = vmatprep.subr.mxu1 %v7562_v1  ;;  %v1655_v57 = vld [vmem:[%s7556_s1 + $0x30] sm:$0xff]  ;;  %s3452_s6 = sshll.u32 %s4373_s18, 6 }
  0x1a   : > { %s3701_s24 = smul.u32 1360, %s206_s12  ;;  %1852 = vmatpush1.msra.mxu0 %v1663_v2  ;;  %3670 = vmatpush1.msra.mxu1 %v1663_v2  ;;  %v1654_v2 = vld [vmem:[%s7556_s1 + $0x28] sm:$0xff] }
  0x1b   : > { %1853 = vmatprep.subr.mxu0 %v7562_v1  ;;  %3639 = vmatprep.subr.mxu1 %v7562_v1 }
  0x1c   : > { %s209_s8 = scalar_lea.vmem %s7555_s0, %s3701_s24  ;;  %1854 = vmatpush1.msra.mxu0 %v1662_v3  ;;  %3671 = vmatpush1.msra.mxu1 %v1662_v3  ;;  %s4393_s24 = smov [#allocation2]  }
  0x1d   : > { %s4516_s9 = scalar_lea.vmem %s209_s8, %s3378_s13  ;;  %1855 = vmatprep.subr.mxu0 %v7562_v1  ;;  %3640 = vmatprep.subr.mxu1 %v7562_v1  ;;  %s3448_s8 = sshll.u32 %s4377_s19, 7 }
  0x1e   : > { %v4524_v6 = vld [vmem:[%s4516_s9 + $0x28] sm:$0xff]  ;;  %v4530_v8 = vld [vmem:[%s4516_s9 + $0x30] sm:$0xff]  ;;  %1856 = vmatpush1.msra.mxu0 %v1661_v4  ;;  %3672 = vmatpush1.msra.mxu1 %v1661_v4  ;;  %v4541_v12 = vld [vmem:[%s4516_s9] sm:$0xff]  ;;  %s3289_s18 = sadd.s32 %s3452_s6, %s3448_s8  ;;  %s4301_s27 = sshll.u32 %s4393_s24, 4  ;;  %s4302_s27 = int_to_ptr.vmem [resolvable:$false] %s4301_s27 }
  0x1f   : > { %v4527_v7 = vld [vmem:[%s4516_s9 + $0x208] sm:$0xff]  ;;  %v4538_v11 = vld [vmem:[%s4516_s9 + $0x210] sm:$0xff]  ;;  %1857 = vmatprep.subr.mxu0 %v7562_v1  ;;  %3641 = vmatprep.subr.mxu1 %v7562_v1  ;;  %v4551_v15 = vld [vmem:[%s4516_s9 + $0x1e0] sm:$0xff]  ;;  %v385_v17 = vrot.slane %v4541_v12, 1  ;;  %v394_v49 = vrot.slane %v4524_v6, 1  ;;  %v395_v50 = vrot.slane %v4530_v8, 1 }
  0x20   : > { %v3777_v10 = vpack.i.bf16 %v4527_v7, %v4524_v6  ;;  %v4544_v13 = vld [vmem:[%s4516_s9 + $0x8] sm:$0xff]  ;;  %v3787_v14 = vpack.i.bf16 %v4538_v11, %v4530_v8  ;;  %v4559_v19 = vld [vmem:[%s4516_s9 + $0x10] sm:$0xff]  ;;  %1858 = vmatpush1.msra.mxu0 %v1660_v5  ;;  %3673 = vmatpush1.msra.mxu1 %v1660_v5  ;;  %v493_v20 = vrot.slane %v4551_v15, 1  ;;  %v4573_v26 = vld [vmem:[%s4516_s9 + $0x18] sm:$0xff]  ;;  %v502_v53 = vrot.slane %v4527_v7, 1  ;;  %s3449_s19 = sshll.u32 %s3289_s18, 7 }
  0x21   : > { %v4554_v16 = vld [vmem:[%s4516_s9 + $0x1e8] sm:$0xff]  ;;  %v386_v18 = vrot.slane %v4544_v13, 1  ;;  %v4565_v22 = vld [vmem:[%s4516_s9 + $0x1f0] sm:$0xff]  ;;  %v388_v23 = vrot.slane %v4559_v19, 1  ;;  %1859 = vmatprep.subr.mxu0 %v7562_v1  ;;  %v4576_v27 = vld [vmem:[%s4516_s9 + $0x1f8] sm:$0xff]  ;;  %3642 = vmatprep.subr.mxu1 %v7562_v1  ;;  %v390_v33 = vrot.slane %v4573_v26, 1  ;;  %v4657_v61 = vsel %vm384_vm0, %v394_v49, %v395_v50  ;;  %s7494_s13 = scalar_lea.hbm %s7559_s4, %s3449_s19 }
  0x22   : > { %3778 = vrot.lane.b32.xlu0 %v3777_v10, %s4392_s14  ;;  %v494_v21 = vrot.slane %v4554_v16, 1  ;;  %3788 = vrot.lane.b32.xlu1 %v3787_v14, %s4392_s14  ;;  %v496_v25 = vrot.slane %v4565_v22, 1  ;;  %v4587_v31 = vld [vmem:[%s4516_s9 + $0x38] sm:$0xff]  ;;  %v498_v34 = vrot.slane %v4576_v27, 1  ;;  %v4595_v35 = vld [vmem:[%s4516_s9 + $0x20] sm:$0x3] }
  0x23   : > { %v387_v24 = vsel %vm384_vm0, %v385_v17, %v386_v18  ;;  %v389_v30 = vsel %vm384_vm0, %v386_v18, %v388_v23  ;;  %v4590_v32 = vld [vmem:[%s4516_s9 + $0x218] sm:$0xff]  ;;  %1860 = vmatpush1.msra.mxu0 %v1659_v9  ;;  %3674 = vmatpush1.msra.mxu1 %v1659_v9  ;;  %v4602_v38 = vld [vmem:[%s4516_s9 + $0x200] sm:$0x3]  ;;  %v392_v39 = vrot.slane %v4595_v35, 1  ;;  %v391_v41 = vsel %vm384_vm0, %v388_v23, %v390_v33  ;;  %v4651_v59 = vld [vmem:[%s4516_s9 + $0x50] sm:$0xff] }
  0x24   : > { %v4583_v29 = vsel %vm384_vm0, %v493_v20, %v494_v21  ;;  %v4599_v37 = vsel %vm384_vm0, %v494_v21, %v496_v25  ;;  %1861 = vmatprep.subr.mxu0 %v7562_v1  ;;  %3643 = vmatprep.subr.mxu1 %v7562_v1  ;;  %v4610_v42 = vsel %vm384_vm0, %v496_v25, %v498_v34  ;;  %v500_v43 = vrot.slane %v4602_v38, 1  ;;  %v4622_v47 = vld [vmem:[%s4516_s9 + $0x40] sm:$0xff]  ;;  %v4654_v60 = vld [vmem:[%s4516_s9 + $0x230] sm:$0xff]  ;;  %v4676_v5 = vld [vmem:[%s4516_s9 + $0x58] sm:$0xff] }
  0x25   : > { %7699 = vst [vmem:[#allocation5_spill] sm:$0xff] %v4583_v29  ;;  %v3782_v36 = vpack.i.bf16 %v4583_v29, %v387_v24  ;;  %7700 = vst [vmem:[#allocation6_spill] sm:$0xff] %v4599_v37  ;;  %v3807_v40 = vpack.i.bf16 %v4599_v37, %v389_v30  ;;  %1862 = vmatpush1.msra.mxu0 %v1658_v28  ;;  %3675 = vmatpush1.msra.mxu1 %v1658_v28  ;;  %v4625_v48 = vld [vmem:[%s4516_s9 + $0x220] sm:$0xff]  ;;  %v503_v54 = vrot.slane %v4538_v11, 1  ;;  %v4679_v7 = vld [vmem:[%s4516_s9 + $0x238] sm:$0xff] }
  0x26   : > { %7701 = vst [vmem:[#allocation7_spill] sm:$0xff] %v4610_v42  ;;  %v3792_v45 = vpack.i.bf16 %v4590_v32, %v4587_v31  ;;  %v3812_v46 = vpack.i.bf16 %v4610_v42, %v391_v41  ;;  %1863 = vmatprep.subr.mxu0 %v7562_v1  ;;  %v393_v51 = vsel %vm384_vm0, %v390_v33, %v392_v39  ;;  %v397_v63 = vrot.slane %v4587_v31, 1  ;;  %v4691_v17 = vld [vmem:[%s4516_s9 + $0x48] sm:$0x3]  ;;  %v1653_v18 = vld [vmem:[%s7556_s1 + $0x20] sm:$0xff]  ;;  %v1652_v23 = vld [vmem:[%s7556_s1 + $0x18] sm:$0xff] }
  0x27   : > { %3783 = vrot.lane.b32.xlu0 %v3782_v36, %s4392_s14  ;;  %3808 = vrot.lane.b32.xlu1 %v3807_v40, %s4392_s14  ;;  %v4632_v52 = vsel %vm384_vm0, %v498_v34, %v500_v43  ;;  %v3797_v56 = vpack.i.bf16 %v4625_v48, %v4622_v47  ;;  %v4660_v62 = vsel %vm384_vm0, %v502_v53, %v503_v54  ;;  %v505_v0 = vrot.slane %v4590_v32, 1  ;;  %v283_v20 = vld [vmem:[%s4516_s9 + $0x228] sm:$0x3]  ;;  %v4710_v25 = vld [vmem:[%s4516_s9 + $0x60] sm:$0xff] }
  0x28   : > { %7702 = vst [vmem:[#allocation8_spill] sm:$0xff] %v4632_v52  ;;  %3644 = vmatprep.subr.mxu1 %v7562_v1  ;;  %1864 = vmatpush1.msra.mxu0 %v1657_v44  ;;  %v3817_v58 = vpack.i.bf16 %v4632_v52, %v393_v51  ;;  %7703 = vst [vmem:[#allocation9_spill] sm:$0xff] %v4660_v62  ;;  %v3802_v3 = vpack.i.bf16 %v4654_v60, %v4651_v59  ;;  %v399_v11 = vrot.slane %v4622_v47, 1  ;;  %v4713_v28 = vld [vmem:[%s4516_s9 + $0x240] sm:$0xff]  ;;  %v1651_v36 = vld [vmem:[%s7556_s1 + $0x10] sm:$0xff] }
  0x29   : > { %3676 = vmatpush1.msra.mxu1 %v1657_v44  ;;  %1865 = vmatprep.subr.mxu0 %v7562_v1  ;;  %v3822_v4 = vpack.i.bf16 %v4660_v62, %v4657_v61  ;;  %v4683_v9 = vsel %vm384_vm0, %v395_v50, %v397_v63  ;;  %v4686_v10 = vsel %vm384_vm0, %v503_v54, %v505_v0  ;;  %v507_v14 = vrot.slane %v4625_v48, 1  ;;  %v4734_v41 = vld [vmem:[%s4516_s9 + $0x68] sm:$0xff]  ;;  %v1649_v54 = vld [vmem:[%s7556_s1] sm:$0xff] }
  0x2a   : > { %3645 = vmatprep.subr.mxu1 %v7562_v1  ;;  %1866 = vmatpush1.msra.mxu0 %v1656_v55  ;;  %7704 = vst [vmem:[#allocation10_spill] sm:$0xff] %v4683_v9  ;;  %7705 = vst [vmem:[#allocation11_spill] sm:$0xff] %v4686_v10  ;;  %v3827_v21 = vpack.i.bf16 %v4679_v7, %v4676_v5  ;;  %v3832_v24 = vpack.i.bf16 %v4686_v10, %v4683_v9  ;;  %v401_v30 = vrot.slane %v4691_v17, 1  ;;  %v4737_v43 = vld [vmem:[%s4516_s9 + $0x248] sm:$0xff] }
  0x2b   : > { %3793 = vrot.lane.b32.xlu0 %v3792_v45, %s4392_s14  ;;  %3813 = vrot.lane.b32.xlu1 %v3812_v46, %s4392_s14  ;;  %v4717_v32 = vsel %vm384_vm0, %v397_v63, %v399_v11  ;;  %v4720_v33 = vsel %vm384_vm0, %v505_v0, %v507_v14  ;;  %v509_v34 = vrot.slane %v283_v20, 1  ;;  %v3837_v39 = vpack.i.bf16 %v4713_v28, %v4710_v25  ;;  %v1650_v51 = vld [vmem:[%s7556_s1 + $0x8] sm:$0xff] }
  0x2c   : > { %3677 = vmatpush1.msra.mxu1 %v1656_v55  ;;  %1867 = vmatprep.subr.mxu0 %v7562_v1  ;;  %7706 = vst [vmem:[#allocation12_spill] sm:$0xff] %v4717_v32  ;;  %7707 = vst [vmem:[#allocation13_spill] sm:$0xff] %v4720_v33  ;;  %v3842_v40 = vpack.i.bf16 %v4720_v33, %v4717_v32  ;;  %v4740_v44 = vsel %vm384_vm0, %v399_v11, %v401_v30  ;;  %v403_v45 = vrot.slane %v4651_v59, 1  ;;  %v4794_v11 = vld [vmem:[%s4516_s9 + $0x260] sm:$0xff]  ;;  %v5093_v29 = vld [vmem:[%s4516_s9 + $0xe8] sm:$0x3] }
  0x2d   : > { %3646 = vmatprep.subr.mxu1 %v7562_v1  ;;  %1868 = vmatpush1.msra.mxu0 %v1655_v57  ;;  %7708 = vst [vmem:[#allocation14_spill] sm:$0xff] %v4740_v44  ;;  %v4745_v46 = vsel %vm384_vm0, %v507_v14, %v509_v34  ;;  %v404_v48 = vrot.slane %v4676_v5, 1  ;;  %v511_v49 = vrot.slane %v4654_v60, 1  ;;  %v512_v50 = vrot.slane %v4679_v7, 1  ;;  %v4791_v7 = vld [vmem:[%s4516_s9 + $0x80] sm:$0xff]  ;;  %v1678_v34 = vld [vmem:[%s7556_s1 + $0xe8] sm:$0xff] }
  0x2e   : > { %3678 = vmatpush1.msra.mxu1 %v1655_v57  ;;  %1869 = vmatprep.subr.mxu0 %v7562_v1  ;;  %7709 = vst [vmem:[#allocation15_spill] sm:$0xff] %v4745_v46  ;;  %v3847_v53 = vpack.i.bf16 %v4737_v43, %v4734_v41  ;;  %v3852_v55 = vpack.i.bf16 %v4745_v46, %v4740_v44  ;;  %v4769_v57 = vld [vmem:[%s4516_s9 + $0x258] sm:$0xff]  ;;  %v406_v63 = vrot.slane %v4710_v25, 1  ;;  %v514_v0 = vrot.slane %v4713_v28, 1  ;;  %v288_v28 = vld [vmem:[%s4516_s9 + $0x250] sm:$0x3] }
  0x2f   : > { %3798 = vrot.lane.b32.xlu0 %v3797_v56, %s4392_s14  ;;  %3818 = vrot.lane.b32.xlu1 %v3817_v58, %s4392_s14  ;;  %v4766_v56 = vld [vmem:[%s4516_s9 + $0x78] sm:$0xff]  ;;  %v4772_v58 = vsel %vm384_vm0, %v403_v45, %v404_v48  ;;  %v4775_v60 = vsel %vm384_vm0, %v511_v49, %v512_v50  ;;  %v408_v20 = vrot.slane %v4734_v41, 1  ;;  %v3867_v30 = vpack.i.bf16 %v4794_v11, %v4791_v7  ;;  %v5281_v44 = vld [vmem:[%s4516_s9 + $0x168] sm:$0xff] }
  0x30   : > { %3647 = vmatprep.subr.mxu1 %v7562_v1  ;;  %1870 = vmatpush1.msra.mxu0 %v1654_v2  ;;  %7710 = vst [vmem:[#allocation16_spill] sm:$0xff] %v4772_v58  ;;  %7711 = vst [vmem:[#allocation17_spill] sm:$0xff] %v4775_v60  ;;  %v4798_v14 = vsel %vm384_vm0, %v404_v48, %v406_v63  ;;  %v518_v49 = vrot.slane %v288_v28, 1  ;;  %v4881_v28 = vld [vmem:[%s4516_s9 + $0xa0] sm:$0xff]  ;;  %v544_v33 = vrot.slane %v4622_v47, 2  ;;  %v546_v10 = vrot.slane %v4691_v17, 2 }
  0x31   : > { %3679 = vmatpush1.msra.mxu1 %v1654_v2  ;;  %1871 = vmatprep.subr.mxu0 %v7562_v1  ;;  %v1680_v2 = vld [vmem:[%s7556_s1 + $0xf8] sm:$0xff]  ;;  %7712 = vst [vmem:[#allocation18_spill] sm:$0xff] %v4798_v14  ;;  %v4832_v45 = vsel %vm384_vm0, %v406_v63, %v408_v20  ;;  %v1666_v17 = vld [vmem:[%s7556_s1 + $0x88] sm:$0xff]  ;;  %v549_v37 = vrot.slane %v4676_v5, 2  ;;  %v641_v9 = vrot.slane %v4565_v22, 2 }
  0x32   : > { %3648 = vmatprep.subr.mxu1 %v7562_v1  ;;  %1872 = vmatpush1.msra.mxu0 %v1653_v18  ;;  %7714 = vst [vmem:[#allocation20_spill] sm:$0xff] %v4832_v45  ;;  %v5055_v42 = vsel %vm529_vm1, %v544_v33, %v546_v10 }
  0x33   : > { %3803 = vrot.lane.b32.xlu0 %v3802_v3, %s4392_s14  ;;  %3823 = vrot.lane.b32.xlu1 %v3822_v4, %s4392_s14  ;;  %v3857_v3 = vpack.i.bf16 %v4769_v57, %v4766_v56  ;;  %v3862_v4 = vpack.i.bf16 %v4775_v60, %v4772_v58 }
  0x34   : > { %3680 = vmatpush1.msra.mxu1 %v1653_v18  ;;  %1873 = vmatprep.subr.mxu0 %v7562_v1  ;;  %v4801_v18 = vsel %vm384_vm0, %v512_v50, %v514_v0  ;;  %v1677_v50 = vld [vmem:[%s7556_s1 + $0xe0] sm:$0xff] }
  0x35   : > { %3649 = vmatprep.subr.mxu1 %v7562_v1  ;;  %1874 = vmatpush1.msra.mxu0 %v1652_v23  ;;  %7713 = vst [vmem:[#allocation19_spill] sm:$0xff] %v4801_v18 }
  0x36   : > { %3681 = vmatpush1.msra.mxu1 %v1652_v23  ;;  %1875 = vmatprep.subr.mxu0 %v7562_v1  ;;  %v4806_v23 = vld [vmem:[%s4516_s9 + $0x70] sm:$0x3] }
  0x37   : > { %3828 = vrot.lane.b32.xlu0 %v3827_v21, %s4392_s14  ;;  %3833 = vrot.lane.b32.xlu1 %v3832_v24, %s4392_s14  ;;  %v516_v21 = vrot.slane %v4737_v43, 1  ;;  %v1679_v24 = vld [vmem:[%s7556_s1 + $0xf0] sm:$0xff]  ;;  %v410_v43 = vrot.slane %v4806_v23, 1 }
  0x38   : > { %3650 = vmatprep.subr.mxu1 %v7562_v1  ;;  %1876 = vmatpush1.msra.mxu0 %v1651_v36 }
  0x39   : > { %3682 = vmatpush1.msra.mxu1 %v1651_v36  ;;  %1877 = vmatprep.subr.mxu0 %v7562_v1  ;;  %v3872_v36 = vpack.i.bf16 %v4801_v18, %v4798_v14  ;;  %v4835_v48 = vsel %vm384_vm0, %v514_v0, %v516_v21  ;;  %v4855_v63 = vsel %vm384_vm0, %v408_v20, %v410_v43  ;;  %v412_v0 = vrot.slane %v4766_v56, 1  ;;  %v1676_v20 = vld [vmem:[%s7556_s1 + $0xd8] sm:$0xff] }
  0x3a   : > { %3651 = vmatprep.subr.mxu1 %v7562_v1  ;;  %1878 = vmatpush1.msra.mxu0 %v1650_v51  ;;  %7715 = vst [vmem:[#allocation21_spill] sm:$0xff] %v4835_v48  ;;  %7716 = vst [vmem:[#allocation22_spill] sm:$0xff] %v4855_v63  ;;  %v421_v18 = vrot.slane %v4881_v28, 1 }
  0x3b   : > { %3838 = vrot.lane.b32.xlu0 %v3837_v39, %s4392_s14  ;;  %3843 = vrot.lane.b32.xlu1 %v3842_v40, %s4392_s14  ;;  %v4825_v39 = vld [vmem:[%s4516_s9 + $0x88] sm:$0xff] }
  0x3c   : > { %3683 = vmatpush1.msra.mxu1 %v1650_v51  ;;  %1879 = vmatprep.subr.mxu0 %v7562_v1  ;;  %v4828_v40 = vld [vmem:[%s4516_s9 + $0x268] sm:$0xff]  ;;  %v415_v43 = vrot.slane %v4825_v39, 1 }
  0x3d   : > { %3652 = vmatprep.subr.mxu1 %v7562_v1  ;;  %1880 = vmatpush1.msra.mxu0 %v1649_v54  ;;  %v3877_v51 = vpack.i.bf16 %v4828_v40, %v4825_v39 }
  0x3e   : > { %3684 = vmatpush1.msra.mxu1 %v1649_v54  ;;  %1881 = vmatprep.subr.mxu0 %v7562_v1  ;;  %v4849_v54 = vld [vmem:[%s4516_s9 + $0x90] sm:$0xff] }
  0x3f   : > { %3848 = vrot.lane.b32.xlu0 %v3847_v53, %s4392_s14  ;;  %3853 = vrot.lane.b32.xlu1 %v3852_v55, %s4392_s14  ;;  %v3882_v53 = vpack.i.bf16 %v4835_v48, %v4832_v45  ;;  %v4852_v55 = vld [vmem:[%s4516_s9 + $0x270] sm:$0xff] }
  0x40   : > { %3653 = vmatprep.subr.mxu1 %v7562_v1  ;;  %1882 = vmatpush2.msra.mxu0 %v1680_v2  ;;  %v5245_v45 = vld [vmem:[%s4516_s9 + $0x150] sm:$0xff] }
  0x41   : > { %3685 = vmatpush2.msra.mxu1 %v1680_v2  ;;  %1883 = vmatprep.subr.mxu0 %v7562_v1  ;;  %v4860_v2 = vsel %vm384_vm0, %v516_v21, %v518_v49  ;;  %v3887_v21 = vpack.i.bf16 %v4852_v55, %v4849_v54  ;;  %v523_v49 = vrot.slane %v4828_v40, 1 }
  0x42   : > { %3654 = vmatprep.subr.mxu1 %v7562_v1  ;;  %1884 = vmatpush2.msra.mxu0 %v1679_v24  ;;  %7717 = vst [vmem:[#allocation23_spill] sm:$0xff] %v4860_v2 }
  0x43   : > { %3858 = vrot.lane.b32.xlu0 %v3857_v3, %s4392_s14  ;;  %3863 = vrot.lane.b32.xlu1 %v3862_v4, %s4392_s14  ;;  %v413_v3 = vrot.slane %v4791_v7, 1  ;;  %v520_v4 = vrot.slane %v4769_v57, 1  ;;  %v1675_v57 = vld [vmem:[%s7556_s1 + $0xd0] sm:$0xff] }
  0x44   : > { %3686 = vmatpush2.msra.mxu1 %v1679_v24  ;;  %1885 = vmatprep.subr.mxu0 %v7562_v1  ;;  %v521_v24 = vrot.slane %v4794_v11, 1  ;;  %v3892_v11 = vpack.i.bf16 %v4860_v2, %v4855_v63  ;;  %v4934_v2 = vld [vmem:[%s4516_s9 + $0xb0] sm:$0xff] }
  0x45   : > { %3655 = vmatprep.subr.mxu1 %v7562_v1  ;;  %1886 = vmatpush2.msra.mxu0 %v1678_v34 }
  0x46   : > { %3687 = vmatpush2.msra.mxu1 %v1678_v34  ;;  %1887 = vmatprep.subr.mxu0 %v7562_v1  ;;  %v4885_v34 = vsel %vm384_vm0, %v412_v0, %v413_v3  ;;  %v295_v0 = vld [vmem:[%s4516_s9 + $0x288] sm:$0xff] }
  0x47   : > { %3868 = vrot.lane.b32.xlu0 %v3867_v30, %s4392_s14  ;;  %3873 = vrot.lane.b32.xlu1 %v3872_v36, %s4392_s14  ;;  %v294_v30 = vld [vmem:[%s4516_s9 + $0x280] sm:$0xff]  ;;  %7718 = vst [vmem:[#allocation24_spill] sm:$0xff] %v4885_v34  ;;  %v4888_v36 = vsel %vm384_vm0, %v520_v4, %v521_v24  ;;  %v4908_v4 = vsel %vm384_vm0, %v413_v3, %v415_v43  ;;  %v293_v3 = vld [vmem:[%s4516_s9 + $0x278] sm:$0x3] }
  0x48   : > { %3656 = vmatprep.subr.mxu1 %v7562_v1  ;;  %1888 = vmatpush2.msra.mxu0 %v1677_v50  ;;  %7719 = vst [vmem:[#allocation25_spill] sm:$0xff] %v4888_v36  ;;  %v3902_v40 = vpack.i.bf16 %v4888_v36, %v4885_v34  ;;  %7720 = vst [vmem:[#allocation26_spill] sm:$0xff] %v4908_v4  ;;  %v527_v48 = vrot.slane %v293_v3, 1  ;;  %v297_v3 = vld [vmem:[%s4516_s9 + $0x298] sm:$0xff] }
  0x49   : > { %3688 = vmatpush2.msra.mxu1 %v1677_v50  ;;  %1889 = vmatprep.subr.mxu0 %v7562_v1  ;;  %v1674_v50 = vld [vmem:[%s7556_s1 + $0xc8] sm:$0xff] }
  0x4a   : > { %3657 = vmatprep.subr.mxu1 %v7562_v1  ;;  %1890 = vmatpush2.msra.mxu0 %v1676_v20 }
  0x4b   : > { %3878 = vrot.lane.b32.xlu0 %v3877_v51, %s4392_s14  ;;  %3883 = vrot.lane.b32.xlu1 %v3882_v53, %s4392_s14  ;;  %v3897_v51 = vpack.i.bf16 %v294_v30, %v4881_v28  ;;  %v4903_v53 = vld [vmem:[%s4516_s9 + $0xa8] sm:$0xff]  ;;  %v4920_v30 = vld [vmem:[%s4516_s9 + $0x98] sm:$0x3] }
  0x4c   : > { %3689 = vmatpush2.msra.mxu1 %v1676_v20  ;;  %1891 = vmatprep.subr.mxu0 %v7562_v1  ;;  %v4911_v20 = vsel %vm384_vm0, %v521_v24, %v523_v49  ;;  %v3907_v24 = vpack.i.bf16 %v295_v0, %v4903_v53  ;;  %v422_v60 = vrot.slane %v4903_v53, 1 }
  0x4d   : > { %3658 = vmatprep.subr.mxu1 %v7562_v1  ;;  %1892 = vmatpush2.msra.mxu0 %v1675_v57  ;;  %7721 = vst [vmem:[#allocation27_spill] sm:$0xff] %v4911_v20  ;;  %v3912_v36 = vpack.i.bf16 %v4911_v20, %v4908_v4  ;;  %v1671_v20 = vld [vmem:[%s7556_s1 + $0xb0] sm:$0xff] }
  0x4e   : > { %3690 = vmatpush2.msra.mxu1 %v1675_v57  ;;  %1893 = vmatprep.subr.mxu0 %v7562_v1  ;;  %v525_v57 = vrot.slane %v4852_v55, 1  ;;  %v1672_v55 = vld [vmem:[%s7556_s1 + $0xb8] sm:$0xff] }
  0x4f   : > { %3888 = vrot.lane.b32.xlu0 %v3887_v21, %s4392_s14  ;;  %3893 = vrot.lane.b32.xlu1 %v3892_v11, %s4392_s14  ;;  %v417_v21 = vrot.slane %v4849_v54, 1  ;;  %v1673_v11 = vld [vmem:[%s7556_s1 + $0xc0] sm:$0xff] }
  0x50   : > { %3659 = vmatprep.subr.mxu1 %v7562_v1  ;;  %1894 = vmatpush2.msra.mxu0 %v1674_v50  ;;  %v4941_v0 = vsel %vm384_vm0, %v523_v49, %v525_v57 }
  0x51   : > { %3691 = vmatpush2.msra.mxu1 %v1674_v50  ;;  %1895 = vmatprep.subr.mxu0 %v7562_v1  ;;  %v296_v50 = vld [vmem:[%s4516_s9 + $0x290] sm:$0xff]  ;;  %7723 = vst [vmem:[#allocation29_spill] sm:$0xff] %v4941_v0 }
  0x52   : > { %3660 = vmatprep.subr.mxu1 %v7562_v1  ;;  %1896 = vmatpush2.msra.mxu0 %v1673_v11  ;;  %v419_v1 = vrot.slane %v4920_v30, 1 }
  0x53   : > { %3898 = vrot.lane.b32.xlu0 %v3897_v51, %s4392_s14  ;;  %3903 = vrot.lane.b32.xlu1 %v3902_v40, %s4392_s14  ;;  %v4938_v51 = vsel %vm384_vm0, %v415_v43, %v417_v21  ;;  %v7724_v40 = vmov 0.0   ;;  %v3917_v43 = vpack.i.bf16 %v296_v50, %v4934_v2  ;;  %v1670_v50 = vld [vmem:[%s7556_s1 + $0xa8] sm:$0xff] }
  0x54   : > { %7722 = vst [vmem:[#allocation28_spill] sm:$0xff] %v4938_v51  ;;  %3692 = vmatpush2.msra.mxu1 %v1673_v11  ;;  %1897 = vmatprep.subr.mxu0 %v7724_v40  ;;  %v3922_v49 = vpack.i.bf16 %v4941_v0, %v4938_v51  ;;  %v4955_v11 = vld [vmem:[%s4516_s9 + $0xb8] sm:$0xff]  ;;  %v4962_v46 = vsel %vm384_vm0, %v417_v21, %v419_v1  ;;  %v424_v21 = vrot.slane %v4934_v2, 1  ;;  %v5178_v51 = vld [vmem:[%s4516_s9 + $0x128] sm:$0xff] }
  0x55   : > { %3661 = vmatprep.subr.mxu1 %v7724_v40  ;;  %1898 = vmatpush2.msra.mxu0 %v1672_v55  ;;  %7725 = vst [vmem:[#allocation30_spill] sm:$0xff] %v4962_v46  ;;  %v3927_v1 = vpack.i.bf16 %v297_v3, %v4955_v11  ;;  %v571_v63 = vrot.slane %v4955_v11, 2 }
  0x56   : > { %3693 = vmatpush2.msra.mxu1 %v1672_v55  ;;  %1899 = vmatprep.subr.mxu0 %v7724_v40  ;;  %v540_v55 = vrot.slane %v4530_v8, 2 }
  0x57   : > { %3908 = vrot.lane.b32.xlu0 %v3907_v24, %s4392_s14  ;;  %3913 = vrot.lane.b32.xlu1 %v3912_v36, %s4392_s14  ;;  %v4965_v24 = vsel %vm384_vm0, %v525_v57, %v527_v48  ;;  %v539_v36 = vrot.slane %v4524_v6, 2  ;;  %v1669_v6 = vld [vmem:[%s7556_s1 + $0xa0] sm:$0xff]  ;;  %v4984_v48 = vld [vmem:[%s4516_s9 + $0xc8] sm:$0xff]  ;;  %v542_v57 = vrot.slane %v4587_v31, 2 }
  0x58   : > { %7726 = vst [vmem:[#allocation31_spill] sm:$0xff] %v4965_v24  ;;  %3662 = vmatprep.subr.mxu1 %v7724_v40  ;;  %1900 = vmatpush2.msra.mxu0 %v1671_v20  ;;  %v3932_v8 = vpack.i.bf16 %v4965_v24, %v4962_v46  ;;  %v5000_v24 = vld [vmem:[%s4516_s9 + $0xc0] sm:$0x3]  ;;  %v1668_v31 = vld [vmem:[%s7556_s1 + $0x98] sm:$0xff]  ;;  %v562_v46 = vrot.slane %v4849_v54, 2 }
  0x59   : > { %3694 = vmatpush2.msra.mxu1 %v1671_v20  ;;  %1901 = vmatprep.subr.mxu0 %v7724_v40  ;;  %v4987_v20 = vsel %vm384_vm0, %v421_v18, %v422_v60  ;;  %v4995_v3 = vsel %vm529_vm1, %v539_v36, %v540_v55  ;;  %v5016_v0 = vsel %vm529_vm1, %v540_v55, %v542_v57 }
  0x5a   : > { %3663 = vmatprep.subr.mxu1 %v7724_v40  ;;  %7727 = vst [vmem:[#allocation32_spill] sm:$0xff] %v4987_v20  ;;  %1902 = vmatpush2.msra.mxu0 %v1670_v50  ;;  %v3937_v18 = vpack.i.bf16 %v4987_v20, %v4984_v48 }
  0x5b   : > { %3918 = vrot.lane.b32.xlu0 %v3917_v43, %s4392_s14  ;;  %3923 = vrot.lane.b32.xlu1 %v3922_v49, %s4392_s14  ;;  %v4992_v43 = vld [vmem:[%s4516_s9 + $0xd0] sm:$0xff]  ;;  %v426_v49 = vrot.slane %v4955_v11, 1 }
  0x5c   : > { %3695 = vmatpush2.msra.mxu1 %v1670_v50  ;;  %1903 = vmatprep.subr.mxu0 %v7724_v40  ;;  %v3942_v36 = vpack.i.bf16 %v4992_v43, %v4995_v3  ;;  %v5013_v50 = vsel %vm384_vm0, %v422_v60, %v424_v21  ;;  %v1667_v60 = vld [vmem:[%s7556_s1 + $0x90] sm:$0xff]  ;;  %v431_v62 = vrot.slane %v4992_v43, 1 }
  0x5d   : > { %3664 = vmatprep.subr.mxu1 %v7724_v40  ;;  %1904 = vmatpush2.msra.mxu0 %v1669_v6  ;;  %7728 = vst [vmem:[#allocation33_spill] sm:$0xff] %v5013_v50  ;;  %v3947_v47 = vpack.i.bf16 %v5016_v0, %v5013_v50 }
  0x5e   : > { %3696 = vmatpush2.msra.mxu1 %v1669_v6  ;;  %1905 = vmatprep.subr.mxu0 %v7724_v40  ;;  %v5024_v6 = vsel %vm384_vm0, %v424_v21, %v426_v49  ;;  %v5044_v21 = vld [vmem:[%s4516_s9 + $0xe0] sm:$0xff] }
  0x5f   : > { %3928 = vrot.lane.b32.xlu0 %v3927_v1, %s4392_s14  ;;  %3933 = vrot.lane.b32.xlu1 %v3932_v8, %s4392_s14  ;;  %v5021_v1 = vld [vmem:[%s4516_s9 + $0xd8] sm:$0xff]  ;;  %7729 = vst [vmem:[#allocation34_spill] sm:$0xff] %v5024_v6  ;;  %v428_v8 = vrot.slane %v5000_v24, 1 }
  0x60   : > { %3665 = vmatprep.subr.mxu1 %v7724_v40  ;;  %1906 = vmatpush2.msra.mxu0 %v1668_v31  ;;  %v3952_v55 = vpack.i.bf16 %v5024_v6, %v5021_v1 }
  0x61   : > { %3697 = vmatpush2.msra.mxu1 %v1668_v31  ;;  %1907 = vmatprep.subr.mxu0 %v7724_v40  ;;  %v5047_v31 = vsel %vm529_vm1, %v542_v57, %v544_v33  ;;  %v5052_v52 = vsel %vm384_vm0, %v426_v49, %v428_v8  ;;  %v1665_v57 = vld [vmem:[%s7556_s1 + $0x80] sm:$0xff]  ;;  %v5076_v33 = vld [vmem:[%s4516_s9 + $0xf0] sm:$0xff]  ;;  %v433_v8 = vrot.slane %v5021_v1, 1 }
  0x62   : > { %3666 = vmatprep.subr.mxu1 %v7724_v40  ;;  %1908 = vmatpush2.msra.mxu0 %v1667_v60  ;;  %7730 = vst [vmem:[#allocation35_spill] sm:$0xff] %v5052_v52  ;;  %v3957_v10 = vpack.i.bf16 %v5044_v21, %v5047_v31  ;;  %v3962_v5 = vpack.i.bf16 %v5055_v42, %v5052_v52  ;;  %v553_v52 = vrot.slane %v4734_v41, 2  ;;  %v5125_v41 = vld [vmem:[%s4516_s9 + $0x108] sm:$0xff]  ;;  %v439_v50 = vrot.slane %v5076_v33, 1 }
  0x63   : > { %3938 = vrot.lane.b32.xlu0 %v3937_v18, %s4392_s14  ;;  %3943 = vrot.lane.b32.xlu1 %v3942_v36, %s4392_s14  ;;  %v430_v18 = vrot.slane %v4984_v48, 1  ;;  %v548_v36 = vrot.slane %v4651_v59, 2  ;;  %v5070_v59 = vld [vmem:[%s7556_s1 + $0x238] sm:$0xff] }
  0x64   : > { %3698 = vmatpush2.msra.mxu1 %v1667_v60  ;;  %1909 = vmatprep.subr.mxu0 %v7724_v40  ;;  %v551_v60 = vrot.slane %v4710_v25, 2 }
  0x65   : > { %3667 = vmatprep.subr.mxu1 %v7724_v40  ;;  %1910 = vmatpush2.msra.mxu0 %v1666_v17  ;;  %v5079_v49 = vsel %vm384_vm0, %v430_v18, %v431_v62 }
  0x66   : > { %3699 = vmatpush2.msra.mxu1 %v1666_v17  ;;  %7731 = vst [vmem:[#allocation36_spill] sm:$0xff] %v5079_v49  ;;  %1911 = vmatprep.subr.mxu0 %v7724_v40  ;;  %v5088_v17 = vsel %vm529_vm1, %v548_v36, %v549_v37  ;;  %v3967_v25 = vpack.i.bf16 %v5079_v49, %v5076_v33  ;;  %v437_v49 = vrot.slane %v5093_v29, 1 }
  0x67   : > { %3948 = vrot.lane.b32.xlu0 %v3947_v47, %s4392_s14  ;;  %3953 = vrot.lane.b32.xlu1 %v3952_v55, %s4392_s14  ;;  %v5085_v47 = vld [vmem:[%s4516_s9 + $0xf8] sm:$0xff]  ;;  %7732 = vst [vmem:[#allocation37_spill] sm:$0xff] %v5088_v17  ;;  %v435_v55 = vrot.slane %v5044_v21, 1  ;;  %v5104_v36 = vsel %vm384_vm0, %v431_v62, %v433_v8 }
  0x68   : > { %3668 = vmatprep.subr.mxu1 %v7724_v40  ;;  %1912 = vmatpush2.msra.mxu0 %v1665_v57  ;;  %v3972_v18 = vpack.i.bf16 %v5085_v47, %v5088_v17  ;;  %7733 = vst [vmem:[#allocation38_spill] sm:$0xff] %v5104_v36 }
  0x69   : > { %3700 = vmatpush2.msra.mxu1 %v1665_v57  ;;  %3525 = vmatprep.subr.mxu0 %v5070_v59  ;;  %v5107_v57 = vsel %vm529_vm1, %v549_v37, %v551_v60  ;;  %v5114_v6 = vsel %vm384_vm0, %v433_v8, %v435_v55  ;;  %v5128_v8 = vsel %vm529_vm1, %v551_v60, %v553_v52 }
  0x6a   : > { %2234 = vmatprep.subr.mxu1 %v7724_v40  ;;  %7734 = vst [vmem:[#allocation39_spill] sm:$0xff] %v5107_v57  ;;  %7735 = vst [vmem:[#allocation40_spill] sm:$0xff] %v5114_v6  ;;  %v3977_v62 = vpack.i.bf16 %v5107_v57, %v5104_v36  ;;  %v3987_v60 = vpack.i.bf16 %v5125_v41, %v5128_v8 }
  0x6b   : > { %3958 = vrot.lane.b32.xlu0 %v3957_v10, %s4392_s14  ;;  %3963 = vrot.lane.b32.xlu1 %v3962_v5, %s4392_s14  ;;  %v5111_v10 = vld [vmem:[%s4516_s9 + $0x100] sm:$0xff]  ;;  %v555_v5 = vrot.slane %v4806_v23, 2  ;;  %7736 = vst [vmem:[#allocation41_spill] sm:$0xff] %v5128_v8  ;;  %v440_v23 = vrot.slane %v5085_v47, 1 }
  0x6c   : > { %v3982_v37 = vpack.i.bf16 %v5114_v6, %v5111_v10  ;;  %v558_v6 = vrot.slane %v4791_v7, 2  ;;  %v560_v7 = vrot.slane %v4825_v39, 2 }
  0x6d   : > { %v5136_v36 = vsel %vm529_vm1, %v553_v52, %v555_v5  ;;  %v5150_v52 = vsel %vm384_vm0, %v439_v50, %v440_v23 }
  0x6e   : > { %7738 = vst [vmem:[#allocation43_spill] sm:$0xff] %v5136_v36  ;;  %7739 = vst [vmem:[#allocation44_spill] sm:$0xff] %v5150_v52 }
  0x6f   : > { %3968 = vrot.lane.b32.xlu0 %v3967_v25, %s4392_s14  ;;  %3973 = vrot.lane.b32.xlu1 %v3972_v18, %s4392_s14  ;;  %v5133_v25 = vsel %vm384_vm0, %v435_v55, %v437_v49  ;;  %v557_v18 = vrot.slane %v4766_v56, 2  ;;  %v5147_v49 = vld [vmem:[%s4516_s9 + $0x118] sm:$0xff]  ;;  %v442_v56 = vrot.slane %v5111_v10, 1  ;;  %v5155_v55 = vld [vmem:[%s4516_s9 + $0x120] sm:$0xff] }
  0x70   : > { %7737 = vst [vmem:[#allocation42_spill] sm:$0xff] %v5133_v25  ;;  %v3992_v20 = vpack.i.bf16 %v5136_v36, %v5133_v25  ;;  %v3997_v50 = vpack.i.bf16 %v5150_v52, %v5147_v49  ;;  %v448_v4 = vrot.slane %v5147_v49, 1 }
  0x71   : > { %v5158_v5 = vsel %vm529_vm1, %v557_v18, %v558_v6  ;;  %v5171_v25 = vsel %vm384_vm0, %v440_v23, %v442_v56  ;;  %v5174_v18 = vsel %vm529_vm1, %v558_v6, %v560_v7  ;;  %v5192_v6 = vld [vmem:[%s4516_s9 + $0x130] sm:$0xff] }
  0x72   : > { %7740 = vst [vmem:[#allocation45_spill] sm:$0xff] %v5158_v5  ;;  %v4002_v39 = vpack.i.bf16 %v5155_v55, %v5158_v5  ;;  %7741 = vst [vmem:[#allocation46_spill] sm:$0xff] %v5171_v25  ;;  %v4007_v23 = vpack.i.bf16 %v5174_v18, %v5171_v25 }
  0x73   : > { %3978 = vrot.lane.b32.xlu0 %v3977_v62, %s4392_s14  ;;  %3983 = vrot.lane.b32.xlu1 %v3982_v37, %s4392_s14  ;;  %v444_v62 = vrot.slane %v5125_v41, 1  ;;  %v5162_v37 = vld [vmem:[%s4516_s9 + $0x110] sm:$0x3] }
  0x74   : > { %v446_v52 = vrot.slane %v5162_v37, 1 }
  0x77   : > { %3988 = vrot.lane.b32.xlu0 %v3987_v60, %s4392_s14  ;;  %3993 = vrot.lane.b32.xlu1 %v3992_v20, %s4392_s14  ;;  %v5181_v60 = vsel %vm384_vm0, %v442_v56, %v444_v62  ;;  %v564_v20 = vrot.slane %v4920_v30, 2  ;;  %v5195_v56 = vsel %vm529_vm1, %v560_v7, %v562_v46  ;;  %v449_v30 = vrot.slane %v5155_v55, 1 }
  0x78   : > { %7742 = vst [vmem:[#allocation47_spill] sm:$0xff] %v5181_v60  ;;  %v4012_v54 = vpack.i.bf16 %v5181_v60, %v5178_v51  ;;  %v567_v60 = vrot.slane %v4903_v53, 2  ;;  %v4017_v7 = vpack.i.bf16 %v5192_v6, %v5195_v56  ;;  %v569_v53 = vrot.slane %v4934_v2, 2 }
  0x79   : > { %v5203_v25 = vsel %vm529_vm1, %v562_v46, %v564_v20  ;;  %v5217_v46 = vsel %vm384_vm0, %v448_v4, %v449_v30 }
  0x7a   : > { %7744 = vst [vmem:[#allocation49_spill] sm:$0xff] %v5217_v46 }
  0x7b   : > { %3998 = vrot.lane.b32.xlu0 %v3997_v50, %s4392_s14  ;;  %4003 = vrot.lane.b32.xlu1 %v4002_v39, %s4392_s14  ;;  %v5200_v50 = vsel %vm384_vm0, %v444_v62, %v446_v52  ;;  %v566_v39 = vrot.slane %v4881_v28, 2  ;;  %v5214_v52 = vld [vmem:[%s4516_s9 + $0x140] sm:$0xff]  ;;  %v451_v28 = vrot.slane %v5178_v51, 1  ;;  %v5222_v62 = vld [vmem:[%s4516_s9 + $0x148] sm:$0xff] }
  0x7c   : > { %7743 = vst [vmem:[#allocation48_spill] sm:$0xff] %v5200_v50  ;;  %v4022_v34 = vpack.i.bf16 %v5203_v25, %v5200_v50  ;;  %v4027_v4 = vpack.i.bf16 %v5217_v46, %v5214_v52  ;;  %v457_v14 = vrot.slane %v5214_v52, 1 }
  0x7d   : > { %v5225_v20 = vsel %vm529_vm1, %v566_v39, %v567_v60  ;;  %v5238_v50 = vsel %vm384_vm0, %v449_v30, %v451_v28  ;;  %v5241_v39 = vsel %vm529_vm1, %v567_v60, %v569_v53  ;;  %v5259_v60 = vld [vmem:[%s4516_s9 + $0x158] sm:$0xff] }
  0x7e   : > { %7745 = vst [vmem:[#allocation50_spill] sm:$0xff] %v5225_v20  ;;  %v4032_v2 = vpack.i.bf16 %v5222_v62, %v5225_v20  ;;  %7746 = vst [vmem:[#allocation51_spill] sm:$0xff] %v5238_v50  ;;  %v4037_v30 = vpack.i.bf16 %v5241_v39, %v5238_v50 }
  0x7f   : > { %4008 = vrot.lane.b32.xlu0 %v4007_v23, %s4392_s14  ;;  %4013 = vrot.lane.b32.xlu1 %v4012_v54, %s4392_s14  ;;  %v453_v23 = vrot.slane %v5192_v6, 1  ;;  %v5229_v54 = vld [vmem:[%s4516_s9 + $0x138] sm:$0x3]  ;;  %7747 = vst [vmem:[#allocation52_spill] sm:$0xff] %v5241_v39 }
  0x80   : > { %v455_v46 = vrot.slane %v5229_v54, 1 }
  0x83   : > { %4018 = vrot.lane.b32.xlu0 %v4017_v7, %s4392_s14  ;;  %4023 = vrot.lane.b32.xlu1 %v4022_v34, %s4392_s14  ;;  %v5248_v7 = vsel %vm384_vm0, %v451_v28, %v453_v23  ;;  %v573_v34 = vrot.slane %v5000_v24, 2  ;;  %v5262_v28 = vsel %vm529_vm1, %v569_v53, %v571_v63  ;;  %v458_v24 = vrot.slane %v5222_v62, 1 }
  0x84   : > { %7748 = vst [vmem:[#allocation53_spill] sm:$0xff] %v5248_v7  ;;  %v4042_v11 = vpack.i.bf16 %v5248_v7, %v5245_v45  ;;  %7749 = vst [vmem:[#allocation54_spill] sm:$0xff] %v5262_v28  ;;  %v576_v7 = vrot.slane %v4992_v43, 2  ;;  %v4047_v53 = vpack.i.bf16 %v5259_v60, %v5262_v28  ;;  %v5289_v43 = vld [vmem:[%s4516_s9 + $0x170] sm:$0xff] }
  0x85   : > { %v5270_v50 = vsel %vm529_vm1, %v571_v63, %v573_v34  ;;  %v460_v63 = vrot.slane %v5245_v45, 1  ;;  %v530_v34 = vrot.slane %v4541_v12, 2 }
  0x86   : > { %7751 = vst [vmem:[#allocation56_spill] sm:$0xff] %v5270_v50 }
  0x87   : > { %4028 = vrot.lane.b32.xlu0 %v4027_v4, %s4392_s14  ;;  %4033 = vrot.lane.b32.xlu1 %v4032_v2, %s4392_s14  ;;  %v5267_v4 = vsel %vm384_vm0, %v453_v23, %v455_v46  ;;  %v575_v2 = vrot.slane %v4984_v48, 2  ;;  %v5284_v46 = vsel %vm384_vm0, %v457_v14, %v458_v24  ;;  %v578_v48 = vrot.slane %v5021_v1, 2 }
  0x88   : > { %7750 = vst [vmem:[#allocation55_spill] sm:$0xff] %v5267_v4  ;;  %v4052_v58 = vpack.i.bf16 %v5270_v50, %v5267_v4  ;;  %7752 = vst [vmem:[#allocation57_spill] sm:$0xff] %v5284_v46  ;;  %v638_v14 = vrot.slane %v4551_v15, 2  ;;  %v639_v4 = vrot.slane %v4554_v16, 2  ;;  %v4057_v1 = vpack.i.bf16 %v5284_v46, %v5281_v44  ;;  %v5313_v16 = vld [vmem:[%s4516_s9 + $0x160] sm:$0x3] }
  0x89   : > { %v5292_v23 = vsel %vm529_vm1, %v575_v2, %v576_v7  ;;  %v5306_v12 = vsel %vm384_vm0, %v458_v24, %v460_v63  ;;  %v580_v15 = vrot.slane %v5044_v21, 2  ;;  %v533_v21 = vrot.slane %v4559_v19, 2  ;;  %v5331_v50 = vld [vmem:[%s4516_s9 + $0x180] sm:$0xff] }
  0x8a   : > { %7753 = vst [vmem:[#allocation58_spill] sm:$0xff] %v5292_v23  ;;  %v4062_v2 = vpack.i.bf16 %v5289_v43, %v5292_v23  ;;  %7754 = vst [vmem:[#allocation59_spill] sm:$0xff] %v5306_v12  ;;  %v5323_v23 = vsel %vm529_vm1, %v638_v14, %v639_v4  ;;  %v582_v14 = vrot.slane %v5093_v29, 2 }
  0x8b   : > { %4038 = vrot.lane.b32.xlu0 %v4037_v30, %s4392_s14  ;;  %4043 = vrot.lane.b32.xlu1 %v4042_v11, %s4392_s14  ;;  %v462_v30 = vrot.slane %v5259_v60, 1  ;;  %v531_v11 = vrot.slane %v4544_v13, 2  ;;  %v5309_v13 = vsel %vm529_vm1, %v576_v7, %v578_v48  ;;  %7757 = vst [vmem:[#allocation62_spill] sm:$0xff] %v5323_v23 }
  0x8c   : > { %7755 = vst [vmem:[#allocation60_spill] sm:$0xff] %v5309_v13  ;;  %v4067_v7 = vpack.i.bf16 %v5309_v13, %v5306_v12  ;;  %v5351_v22 = vsel %vm529_vm1, %v580_v15, %v582_v14 }
  0x8d   : > { %v5319_v46 = vsel %vm384_vm0, %v460_v63, %v462_v30  ;;  %v5334_v63 = vsel %vm529_vm1, %v578_v48, %v580_v15  ;;  %7760 = vst [vmem:[#allocation65_spill] sm:$0xff] %v5351_v22  ;;  %v1696_v15 = vld [vmem:[%s7556_s1 + $0x178] sm:$0xff] }
  0x8e   : > { %7756 = vst [vmem:[#allocation61_spill] sm:$0xff] %v5319_v46  ;;  %7758 = vst [vmem:[#allocation63_spill] sm:$0xff] %v5334_v63  ;;  %v4077_v48 = vpack.i.bf16 %v5331_v50, %v5334_v63 }
  0x8f   : > { %4048 = vrot.lane.b32.xlu0 %v4047_v53, %s4392_s14  ;;  %4053 = vrot.lane.b32.xlu1 %v4052_v58, %s4392_s14  ;;  %v5316_v53 = vld [vmem:[%s4516_s9 + $0x178] sm:$0xff]  ;;  %v532_v58 = vsel %vm529_vm1, %v530_v34, %v531_v11  ;;  %v464_v34 = vrot.slane %v5313_v16, 1 }
  0x90   : > { %v4072_v12 = vpack.i.bf16 %v5319_v46, %v5316_v53 }
  0x93   : > { %4058 = vrot.lane.b32.xlu0 %v4057_v1, %s4392_s14  ;;  %4063 = vrot.lane.b32.xlu1 %v4062_v2, %s4392_s14 }
  0x94   : > { %v3779_v24 = vpop.permute.xlu0 %3778  ;;  %v3789_v1 = vpop.permute.xlu1 %3788 }
  0x95   : > { %v3781_v32 = vunpack.i.h.bf16 %v3779_v24  ;;  %v3780_v28 = vunpack.i.l.bf16 %v3779_v24  ;;  %v3791_v13 = vunpack.i.h.bf16 %v3789_v1  ;;  %v3790_v29 = vunpack.i.l.bf16 %v3789_v1 }
  0x96   : > { %v5348_v24 = vsel %vm384_vm0, %v462_v30, %v464_v34  ;;  %v643_v1 = vrot.slane %v4576_v27, 2  ;;  %v5369_v27 = vld [vmem:[%s4516_s9 + $0x1e0] sm:$0xff] }
  0x97   : > { %v1513_v19 = vsel %vm1448_vm2, %v532_v58, %v3780_v28  ;;  %v1561_v2 = vsel %vm1448_vm2, %v5323_v23, %v3781_v32  ;;  %4068 = vrot.lane.b32.xlu0 %v4067_v7, %s4392_s14  ;;  %7759 = vst [vmem:[#allocation64_spill] sm:$0xff] %v5348_v24  ;;  %v534_v32 = vsel %vm529_vm1, %v531_v11, %v533_v21  ;;  %v535_v7 = vrot.slane %v4573_v26, 2  ;;  %v4217_v11 = vld [vmem:[%s4516_s9] sm:$0xff] }
  0x98   : > { %1913 = vmatprep.mubr.f32.mxu0 %v1513_v19  ;;  %2153 = vmatprep.mubr.f32.mxu1 %v1561_v2  ;;  %v5355_v58 = vsel %vm529_vm1, %v639_v4, %v641_v9  ;;  %v4082_v4 = vpack.i.bf16 %v5351_v22, %v5348_v24  ;;  %v1514_v14 = vsel %vm1448_vm2, %v534_v32, %v3790_v29  ;;  %v1695_v29 = vld [vmem:[%s7556_s1 + $0x170] sm:$0xff]  ;;  %v5609_v23 = vld [vmem:[%s4516_s9 + $0x1a0] sm:$0xff] }
  0x99   : > { %v3784_v28 = vpop.permute.xlu0 %3783  ;;  %7761 = vst [vmem:[#allocation66_spill] sm:$0xff] %v5355_v58  ;;  %4073 = vrot.lane.b32.xlu1 %v4072_v12, %s4392_s14  ;;  %v3809_v34 = vpop.permute.xlu1 %3808 }
  0x9a   : > { %v3786_v19 = vunpack.i.h.bf16 %v3784_v28  ;;  %v3785_v30 = vunpack.i.l.bf16 %v3784_v28  ;;  %v3811_v2 = vunpack.i.h.bf16 %v3809_v34  ;;  %v3810_v46 = vunpack.i.l.bf16 %v3809_v34 }
  0x9b   : > { %4078 = vrot.lane.b32.xlu0 %v4077_v48, %s4392_s14  ;;  %v1562_v28 = vsel %vm1448_vm2, %v5355_v58, %v3791_v13  ;;  %v536_v34 = vsel %vm529_vm1, %v533_v21, %v535_v7  ;;  %v645_v21 = vrot.slane %v4602_v38, 2  ;;  %v5426_v58 = vld [vmem:[%s4516_s9 + $0x1f0] sm:$0xff] }
  0x9c   : > { %v1449_v26 = vsel %vm1448_vm2, %v4217_v11, %v3785_v30  ;;  %v5373_v12 = vsel %vm1448_vm2, %v5369_v27, %v3786_v19  ;;  %v5381_v30 = vsel %vm529_vm1, %v641_v9, %v643_v1  ;;  %v537_v11 = vrot.slane %v4595_v35, 2 }
  0x9d   : > { %7762 = vst [vmem:[#allocation67_spill] sm:$0xff] %v5373_v12  ;;  %1914 = vmatmul.mubr.f32.vlgmr.msra.gmra.mxu0 %v1449_v26  ;;  %2154 = vmatmul.mubr.f32.vlgmr.msra.gmra.mxu1 %v5373_v12  ;;  %v3794_v48 = vpop.permute.xlu0 %3793  ;;  %7763 = vst [vmem:[#allocation68_spill] sm:$0xff] %v5381_v30  ;;  %v3814_v19 = vpop.permute.xlu1 %3813  ;;  %v4219_v26 = vld [vmem:[%s4516_s9 + $0x8] sm:$0xff] }
  0x9e   : > { %2235 = vmatpush1.msra.mxu1 %v1696_v15  ;;  %3526 = vmatpush3.msra.mxu0 %v5070_v59  ;;  %v3796_v13 = vunpack.i.h.bf16 %v3794_v48  ;;  %v3795_v32 = vunpack.i.l.bf16 %v3794_v48  ;;  %v1450_v12 = vsel %vm1448_vm2, %v4219_v26, %v3810_v46  ;;  %v3816_v35 = vunpack.i.h.bf16 %v3814_v19  ;;  %v5392_v15 = vld [vmem:[%s4516_s9 + $0x1e8] sm:$0xff]  ;;  %v5412_v26 = vld [vmem:[%s4516_s9 + $0x210] sm:$0xff] }
  0x9f   : > { %1918 = vmatprep.mubr.f32.mxu0 %v1514_v14  ;;  %2158 = vmatprep.mubr.f32.mxu1 %v1562_v28  ;;  %v3815_v9 = vunpack.i.l.bf16 %v3814_v19  ;;  %v5396_v59 = vsel %vm1448_vm2, %v5392_v15, %v3811_v2  ;;  %v1694_v46 = vld [vmem:[%s7556_s1 + $0x168] sm:$0xff]  ;;  %v538_v2 = vsel %vm529_vm1, %v535_v7, %v537_v11  ;;  %v4223_v11 = vld [vmem:[%s4516_s9 + $0x10] sm:$0xff] }
  0xa0   : > { %7764 = vst [vmem:[#allocation69_spill] sm:$0xff] %v5396_v59  ;;  %2236 = vmatprep.subr.mxu1 %v7724_v40  ;;  %v1515_v38 = vsel %vm1448_vm2, %v536_v34, %v3795_v32  ;;  %4083 = vrot.lane.b32.xlu1 %v4082_v4, %s4392_s14  ;;  %v1563_v28 = vsel %vm1448_vm2, %v5381_v30, %v3796_v13  ;;  %v5408_v48 = vld [vmem:[%s4516_s9 + $0x208] sm:$0xff]  ;;  %v648_v34 = vrot.slane %v5412_v26, 2  ;;  %v1693_v4 = vld [vmem:[%s7556_s1 + $0x160] sm:$0xff] }
  0xa1   : > { %2237 = vmatpush1.msra.mxu1 %v1695_v29  ;;  %1919 = vmatmul.mubr.f32.gmra.mxu0 %v1450_v12  ;;  %v3799_v14 = vpop.permute.xlu0 %3798  ;;  %v647_v19 = vrot.slane %v5408_v48, 2  ;;  %v3819_v7 = vpop.permute.xlu1 %3818  ;;  %v1451_v13 = vsel %vm1448_vm2, %v4223_v11, %v3815_v9  ;;  %v5423_v32 = vsel %vm529_vm1, %v643_v1, %v645_v21  ;;  %v1692_v1 = vld [vmem:[%s7556_s1 + $0x158] sm:$0xff] }
  0xa2   : > { %2238 = vmatprep.subr.mxu1 %v7724_v40  ;;  %2159 = vmatmul.mubr.f32.gmra.mxu1 %v5396_v59  ;;  %v3801_v12 = vunpack.i.h.bf16 %v3799_v14  ;;  %v3800_v29 = vunpack.i.l.bf16 %v3799_v14  ;;  %7765 = vst [vmem:[#allocation70_spill] sm:$0xff] %v5423_v32  ;;  %v3821_v24 = vunpack.i.h.bf16 %v3819_v7  ;;  %v3820_v30 = vunpack.i.l.bf16 %v3819_v7  ;;  %v5450_v7 = vld [vmem:[%s4516_s9 + $0x218] sm:$0xff] }
  0xa3   : > { %2239 = vmatpush1.msra.mxu1 %v1694_v46  ;;  %1923 = vmatprep.mubr.f32.mxu0 %v1515_v38  ;;  %v5430_v59 = vsel %vm1448_vm2, %v5426_v58, %v3816_v35  ;;  %v5440_v35 = vsel %vm529_vm1, %v647_v19, %v648_v34  ;;  %v1691_v38 = vld [vmem:[%s7556_s1 + $0x150] sm:$0xff]  ;;  %v650_v19 = vrot.slane %v5450_v7, 2 }
  0xa4   : > { %7766 = vst [vmem:[#allocation71_spill] sm:$0xff] %v5430_v59  ;;  %2240 = vmatprep.subr.mxu1 %v7724_v40  ;;  %2163 = vmatprep.mubr.f32.mxu1 %v1563_v28  ;;  %v1516_v21 = vsel %vm1448_vm2, %v538_v2, %v3800_v29  ;;  %v1564_v46 = vsel %vm1448_vm2, %v5423_v32, %v3801_v12  ;;  %7767 = vst [vmem:[#allocation72_spill] sm:$0xff] %v5440_v35 }
  0xa5   : > { %2241 = vmatpush1.msra.mxu1 %v1693_v4  ;;  %1924 = vmatmul.mubr.f32.gmra.mxu0 %v1451_v13  ;;  %v3804_v9 = vpop.permute.xlu0 %3803  ;;  %v3824_v2 = vpop.permute.xlu1 %3823  ;;  %v4225_v4 = vld [vmem:[%s4516_s9 + $0x18] sm:$0xff] }
  0xa6   : > { %2242 = vmatprep.subr.mxu1 %v7724_v40  ;;  %2164 = vmatmul.mubr.f32.gmra.mxu1 %v5430_v59  ;;  %v3806_v14 = vunpack.i.h.bf16 %v3804_v9  ;;  %v3805_v28 = vunpack.i.l.bf16 %v3804_v9  ;;  %v1452_v29 = vsel %vm1448_vm2, %v4225_v4, %v3820_v30  ;;  %v3826_v12 = vunpack.i.h.bf16 %v3824_v2  ;;  %v5454_v13 = vld [vmem:[%s4516_s9 + $0x1f8] sm:$0xff]  ;;  %v1690_v30 = vld [vmem:[%s7556_s1 + $0x148] sm:$0xff] }
  0xa7   : > { %2243 = vmatpush1.msra.mxu1 %v1692_v1  ;;  %1928 = vmatprep.mubr.f32.mxu0 %v1516_v21  ;;  %v3825_v11 = vunpack.i.l.bf16 %v3824_v2  ;;  %v5458_v59 = vsel %vm1448_vm2, %v5454_v13, %v3821_v24  ;;  %v5469_v2 = vld [vmem:[%s4516_s9 + $0x220] sm:$0xff] }
  0xa8   : > { %7768 = vst [vmem:[#allocation73_spill] sm:$0xff] %v5458_v59  ;;  %2244 = vmatprep.subr.mxu1 %v7724_v40  ;;  %2168 = vmatprep.mubr.f32.mxu1 %v1564_v46  ;;  %v1517_v1 = vsel %vm1448_vm2, %v4995_v3, %v3805_v28  ;;  %v1565_v9 = vsel %vm1448_vm2, %v5440_v35, %v3806_v14  ;;  %v1689_v46 = vld [vmem:[%s7556_s1 + $0x140] sm:$0xff]  ;;  %v4229_v28 = vld [vmem:[%s4516_s9 + $0x28] sm:$0xff] }
  0xa9   : > { %2245 = vmatpush1.msra.mxu1 %v1691_v38  ;;  %1929 = vmatmul.mubr.f32.gmra.mxu0 %v1452_v29  ;;  %v3829_v21 = vpop.permute.xlu0 %3828  ;;  %v3834_v38 = vpop.permute.xlu1 %3833  ;;  %v1453_v29 = vsel %vm1448_vm2, %v4229_v28, %v3825_v11  ;;  %v5480_v14 = vsel %vm529_vm1, %v648_v34, %v650_v19  ;;  %v466_v11 = vrot.slane %v5281_v44, 1  ;;  %v1687_v44 = vld [vmem:[%s7556_s1 + $0x130] sm:$0xff] }
  0xaa   : > { %2246 = vmatprep.subr.mxu1 %v7724_v40  ;;  %2169 = vmatmul.mubr.f32.gmra.mxu1 %v5458_v59  ;;  %v3831_v4 = vunpack.i.h.bf16 %v3829_v21  ;;  %v3830_v3 = vunpack.i.l.bf16 %v3829_v21  ;;  %7769 = vst [vmem:[#allocation74_spill] sm:$0xff] %v5480_v14  ;;  %v3836_v24 = vunpack.i.h.bf16 %v3834_v38  ;;  %v3835_v35 = vunpack.i.l.bf16 %v3834_v38  ;;  %v1688_v21 = vld [vmem:[%s7556_s1 + $0x138] sm:$0xff] }
  0xab   : > { %2247 = vmatpush1.msra.mxu1 %v1690_v30  ;;  %1933 = vmatprep.mubr.f32.mxu0 %v1517_v1  ;;  %v5484_v59 = vsel %vm1448_vm2, %v5408_v48, %v3826_v12  ;;  %v467_v30 = vrot.slane %v5289_v43, 1  ;;  %v7771_v12 = vrot.slane %v5469_v2, 2  ;;  %v584_v38 = vrot.slane %v5076_v33, 2 }
  0xac   : > { %7770 = vst [vmem:[#allocation75_spill] sm:$0xff] %v5484_v59  ;;  %2248 = vmatprep.subr.mxu1 %v7724_v40  ;;  %2173 = vmatprep.mubr.f32.mxu1 %v1565_v9  ;;  %v1518_v34 = vsel %vm1448_vm2, %v5016_v0, %v3830_v3  ;;  %v1566_v48 = vsel %vm1448_vm2, %v5480_v14, %v3831_v4  ;;  %v4230_v4 = vld [vmem:[%s4516_s9 + $0x30] sm:$0xff]  ;;  %v7776_v14 = vrot.slane %v5469_v2, 2 }
  0xad   : > { %2249 = vmatpush1.msra.mxu1 %v1689_v46  ;;  %1934 = vmatmul.mubr.f32.gmra.mxu0 %v1453_v29  ;;  %v3839_v1 = vpop.permute.xlu0 %3838  ;;  %v5499_v9 = vsel %vm529_vm1, %v650_v19, %v7771_v12  ;;  %v3844_v46 = vpop.permute.xlu1 %3843  ;;  %v1454_v3 = vsel %vm1448_vm2, %v4230_v4, %v3835_v35  ;;  %v585_v19 = vrot.slane %v5085_v47, 2  ;;  %v5512_v28 = vsel %vm1448_vm2, %v5412_v26, %v3836_v24  ;;  %v4231_v29 = vld [vmem:[%s4516_s9 + $0x228] sm:$0x3] }
  0xae   : > { %7772 = vst [vmem:[#allocation76_spill] sm:$0xff] %v5499_v9  ;;  %2250 = vmatprep.subr.mxu1 %v7724_v40  ;;  %2174 = vmatmul.mubr.f32.gmra.mxu1 %v5484_v59  ;;  %v3841_v0 = vunpack.i.h.bf16 %v3839_v1  ;;  %v3840_v43 = vunpack.i.l.bf16 %v3839_v1  ;;  %v3845_v33 = vunpack.i.l.bf16 %v3844_v46  ;;  %7773 = vst [vmem:[#allocation77_spill] sm:$0xff] %v5512_v28  ;;  %v654_v12 = vrot.slane %v4231_v29, 2  ;;  %v1686_v47 = vld [vmem:[%s7556_s1 + $0x128] sm:$0xff] }
  0xaf   : > { %2251 = vmatpush1.msra.mxu1 %v1688_v21  ;;  %1938 = vmatprep.mubr.f32.mxu0 %v1518_v34  ;;  %v3846_v1 = vunpack.i.h.bf16 %v3844_v46  ;;  %v5523_v21 = vld [vmem:[%s4516_s9 + $0x190] sm:$0xff]  ;;  %v5526_v26 = vsel %vm384_vm0, %v466_v11, %v467_v30  ;;  %v5543_v46 = vsel %vm529_vm1, %v584_v38, %v585_v19 }
  0xb0   : > { %2252 = vmatprep.subr.mxu1 %v7724_v40  ;;  %2178 = vmatprep.mubr.f32.mxu1 %v1566_v48  ;;  %v1519_v35 = vsel %vm1448_vm2, %v5047_v31, %v3840_v43  ;;  %7774 = vst [vmem:[#allocation78_spill] sm:$0xff] %v5526_v26  ;;  %v1567_v48 = vsel %vm1448_vm2, %v5499_v9, %v3841_v0  ;;  %v1685_v31 = vld [vmem:[%s7556_s1 + $0x120] sm:$0xff]  ;;  %v1719_v11 = vld [vmem:[%s7556_s1 + $0x230] sm:$0xff]  ;;  %7775 = vst [vmem:[#allocation79_spill] sm:$0xff] %v5543_v46 }
  0xb1   : > { %2253 = vmatpush1.msra.mxu1 %v1687_v44  ;;  %1939 = vmatmul.mubr.f32.gmra.mxu0 %v1454_v3  ;;  %v3849_v34 = vpop.permute.xlu0 %3848  ;;  %v3854_v43 = vpop.permute.xlu1 %3853  ;;  %v5540_v44 = vld [vmem:[%s4516_s9 + $0x198] sm:$0xff]  ;;  %v5546_v0 = vld [vmem:[%s4516_s9 + $0x230] sm:$0xff]  ;;  %v4087_v38 = vpack.i.bf16 %v5526_v26, %v5523_v21  ;;  %v5561_v32 = vsel %vm529_vm1, %v7776_v14, %v654_v12 }
  0xb2   : > { %2254 = vmatprep.subr.mxu1 %v7724_v40  ;;  %2179 = vmatmul.mubr.f32.gmra.mxu1 %v5512_v28  ;;  %v656_v4 = vrot.slane %v5546_v0, 2  ;;  %v5550_v3 = vld [vmem:[%s4516_s9 + $0x238] sm:$0xff]  ;;  %v3850_v59 = vunpack.i.l.bf16 %v3849_v34  ;;  %7777 = vst [vmem:[#allocation80_spill] sm:$0xff] %v5561_v32  ;;  %v3851_v29 = vunpack.i.h.bf16 %v3849_v34  ;;  %v3856_v14 = vunpack.i.h.bf16 %v3854_v43 }
  0xb3   : > { %2255 = vmatpush1.msra.mxu1 %v1686_v47  ;;  %1943 = vmatprep.mubr.f32.mxu0 %v1519_v35  ;;  %v4234_v28 = vld [vmem:[%s4516_s9 + $0x38] sm:$0xff]  ;;  %v5566_v47 = vsel %vm1448_vm2, %v5450_v7, %v3846_v1  ;;  %v7781_v35 = vrot.slane %v5111_v10, 2  ;;  %v3855_v12 = vunpack.i.l.bf16 %v3854_v43  ;;  %v4092_v7 = vpack.i.bf16 %v5540_v44, %v5543_v46 }
  0xb4   : > { %v1455_v9 = vsel %vm1448_vm2, %v4234_v28, %v3845_v33  ;;  %2256 = vmatprep.subr.mxu1 %v7724_v40  ;;  %2183 = vmatprep.mubr.f32.mxu1 %v1567_v48  ;;  %7778 = vst [vmem:[#allocation81_spill] sm:$0xff] %v5566_v47  ;;  %v7779_v33 = vrot.slane %v5316_v53, 1  ;;  %v1684_v34 = vld [vmem:[%s7556_s1 + $0x118] sm:$0xff]  ;;  %v5585_v48 = vld [vmem:[%s4516_s9 + $0x188] sm:$0x3]  ;;  %v7783_v26 = vrot.slane %v5550_v3, 2 }
  0xb5   : > { %v5576_v24 = vsel %vm529_vm1, %v585_v19, %v7781_v35  ;;  %2257 = vmatpush1.msra.mxu1 %v1685_v31  ;;  %3527 = vmatprep.subr.mxu0 %v1719_v11  ;;  %v3859_v1 = vpop.permute.xlu0 %3858  ;;  %v3864_v19 = vpop.permute.xlu1 %3863  ;;  %v5589_v31 = vld [vmem:[%s4516_s9 + $0x240] sm:$0xff]  ;;  %v1520_v35 = vsel %vm1448_vm2, %v5055_v42, %v3850_v59  ;;  %v7785_v42 = vrot.slane %v5331_v50, 1  ;;  %v7786_v59 = vrot.slane %v5316_v53, 1 }
  0xb6   : > { %v5571_v28 = vsel %vm384_vm0, %v467_v30, %v7779_v33  ;;  %7782 = vst [vmem:[#allocation83_spill] sm:$0xff] %v5576_v24  ;;  %v589_v30 = vrot.slane %v5125_v41, 2  ;;  %2258 = vmatprep.subr.mxu1 %v7724_v40  ;;  %1944 = vmatmul.mubr.f32.gmra.mxu0 %v1455_v9  ;;  %v1683_v33 = vld [vmem:[%s7556_s1 + $0x110] sm:$0xff]  ;;  %v3860_v41 = vunpack.i.l.bf16 %v3859_v1  ;;  %v5603_v43 = vsel %vm529_vm1, %v656_v4, %v7783_v26  ;;  %v4236_v4 = vld [vmem:[%s4516_s9 + $0x40] sm:$0xff] }
  0xb7   : > { %7780 = vst [vmem:[#allocation82_spill] sm:$0xff] %v5571_v28  ;;  %2184 = vmatmul.mubr.f32.gmra.mxu1 %v5566_v47  ;;  %3528 = vmatpush3.msra.mxu0 %v1719_v11  ;;  %v4097_v9 = vpack.i.bf16 %v5576_v24, %v5571_v28  ;;  %7784 = vst [vmem:[#allocation84_spill] sm:$0xff] %v5603_v43  ;;  %v3861_v11 = vunpack.i.h.bf16 %v3859_v1  ;;  %v1568_v47 = vsel %vm1448_vm2, %v5561_v32, %v3851_v29  ;;  %v5628_v1 = vld [vmem:[%s4516_s9 + $0x1a8] sm:$0xff] }
  0xb8   : > { %2259 = vmatpush1.msra.mxu1 %v1684_v34  ;;  %4088 = vrot.lane.b32.xlu0 %v4087_v38, %s4392_s14  ;;  %v5616_v28 = vsel %vm384_vm0, %v7786_v59, %v7785_v42  ;;  %v473_v24 = vrot.slane %v5585_v48, 1  ;;  %v3865_v26 = vunpack.i.l.bf16 %v3864_v19  ;;  %v1456_v38 = vsel %vm1448_vm2, %v4236_v4, %v3855_v12 }
  0xb9   : > { %7787 = vst [vmem:[#allocation85_spill] sm:$0xff] %v5616_v28  ;;  %2260 = vmatprep.subr.mxu1 %v7724_v40  ;;  %4093 = vrot.lane.b32.xlu1 %v4092_v7, %s4392_s14  ;;  %v5625_v29 = vsel %vm1448_vm2, %v5469_v2, %v3856_v14  ;;  %v3869_v34 = vpop.permute.xlu0 %3868  ;;  %v7789_v53 = vrot.slane %v5111_v10, 2  ;;  %v3866_v59 = vunpack.i.h.bf16 %v3864_v19  ;;  %v1682_v7 = vld [vmem:[%s7556_s1 + $0x108] sm:$0xff]  ;;  %v3874_v12 = vpop.permute.xlu1 %3873  ;;  %v591_v2 = vrot.slane %v5162_v37, 2  ;;  %v1681_v19 = vld [vmem:[%s7556_s1 + $0x100] sm:$0xff] }
  0xba   : > { %7788 = vst [vmem:[#allocation86_spill] sm:$0xff] %v5625_v29  ;;  %2261 = vmatpush1.msra.mxu1 %v1683_v33  ;;  %1948 = vmatprep.mubr.f32.mxu0 %v1520_v35  ;;  %v1521_v10 = vsel %vm1448_vm2, %v5088_v17, %v3860_v41  ;;  %v4102_v14 = vpack.i.bf16 %v5616_v28, %v5609_v23  ;;  %v3870_v33 = vunpack.i.l.bf16 %v3869_v34  ;;  %v7791_v41 = vrot.slane %v5589_v31, 2 }
  0xbb   : > { %v5633_v42 = vsel %vm529_vm1, %v7789_v53, %v589_v30  ;;  %2188 = vmatprep.mubr.f32.mxu1 %v1568_v47  ;;  %2262 = vmatprep.subr.mxu1 %v7724_v40  ;;  %v1569_v37 = vsel %vm1448_vm2, %v5603_v43, %v3861_v11  ;;  %v7792_v35 = vrot.slane %v5550_v3, 2  ;;  %v4237_v53 = vld [vmem:[%s4516_s9 + $0x50] sm:$0xff]  ;;  %v7794_v11 = vrot.slane %v5331_v50, 1  ;;  %v5670_v43 = vld [vmem:[%s4516_s9 + $0x248] sm:$0xff] }
  0xbc   : > { %7790 = vst [vmem:[#allocation87_spill] sm:$0xff] %v5633_v42  ;;  %1949 = vmatmul.mubr.f32.gmra.mxu0 %v1456_v38  ;;  %2189 = vmatmul.mubr.f32.gmra.mxu1 %v5625_v29  ;;  %v4107_v47 = vpack.i.bf16 %v5628_v1, %v5633_v42  ;;  %v3871_v38 = vunpack.i.h.bf16 %v3869_v34  ;;  %v5662_v29 = vsel %vm1448_vm2, %v4237_v53, %v3865_v26  ;;  %v7649_v32 = vrot.slane %v5670_v43, 2 }
  0xbd   : > { %v5657_v4 = vsel %vm529_vm1, %v7792_v35, %v7791_v41  ;;  %2263 = vmatpush1.msra.mxu1 %v1682_v7  ;;  %4098 = vrot.lane.b32.xlu0 %v4097_v9, %s4392_s14  ;;  %v3879_v28 = vpop.permute.xlu0 %3878  ;;  %v5667_v17 = vsel %vm384_vm0, %v7794_v11, %v473_v24  ;;  %v3875_v7 = vunpack.i.l.bf16 %v3874_v12  ;;  %v5676_v9 = vsel %vm1448_vm2, %v5546_v0, %v3866_v59  ;;  %v5678_v26 = vpop.permute.xlu1 %3883  ;;  %v1712_v41 = vld [vmem:[%s7556_s1 + $0x1f8] sm:$0xff]  ;;  %v4240_v0 = vld [vmem:[%s4516_s9 + $0x250] sm:$0x3] }
  0xbe   : > { %7793 = vst [vmem:[#allocation88_spill] sm:$0xff] %v5657_v4  ;;  %7795 = vst [vmem:[#allocation89_spill] sm:$0xff] %v5667_v17  ;;  %2264 = vmatprep.subr.mxu1 %v7724_v40  ;;  %1953 = vmatprep.mubr.f32.mxu0 %v1521_v10  ;;  %v5681_v34 = vsel %vm529_vm1, %v589_v30, %v591_v2  ;;  %v475_v50 = vrot.slane %v5523_v21, 1  ;;  %v3876_v24 = vunpack.i.h.bf16 %v3874_v12  ;;  %v593_v35 = vrot.slane %v5147_v49, 2  ;;  %v1711_v49 = vld [vmem:[%s7556_s1 + $0x1f0] sm:$0xff] }
  0xbf   : > { %7796 = vst [vmem:[#allocation90_spill] sm:$0xff] %v5676_v9  ;;  %7797 = vst [vmem:[#allocation91_spill] sm:$0xff] %v5681_v34  ;;  %2265 = vmatpush1.msra.mxu1 %v1681_v19  ;;  %2193 = vmatprep.mubr.f32.mxu1 %v1569_v37  ;;  %v3880_v30 = vunpack.i.l.bf16 %v3879_v28  ;;  %v1522_v59 = vsel %vm1448_vm2, %v5107_v57, %v3870_v33  ;;  %v3881_v12 = vunpack.i.h.bf16 %v3879_v28  ;;  %v4239_v33 = vld [vmem:[%s4516_s9 + $0x58] sm:$0xff]  ;;  %v7798_v28 = vrot.slane %v5589_v31, 2 }
  0xc0   : > { %2266 = vmatprep.subr.mxu1 %v7724_v40  ;;  %1954 = vmatmul.mubr.f32.gmra.mxu0 %v5662_v29  ;;  %v1570_v2 = vsel %vm1448_vm2, %v5657_v4, %v3871_v38  ;;  %v4112_v19 = vpack.i.bf16 %v5681_v34, %v5667_v17  ;;  %v5709_v53 = vsel %vm1448_vm2, %v4239_v33, %v3875_v7  ;;  %v663_v10 = vrot.slane %v4240_v0, 2 }
  0xc1   : > { %2194 = vmatmul.mubr.f32.gmra.mxu1 %v5676_v9  ;;  %4103 = vrot.lane.b32.xlu1 %v4102_v14, %s4392_s14  ;;  %v5703_v37 = vpop.permute.xlu0 %3888  ;;  %v3885_v14 = vunpack.i.l.bf16 %v5678_v26  ;;  %v5716_v38 = vsel %vm529_vm1, %v7798_v28, %v7649_v32  ;;  %v5718_v11 = vpop.permute.xlu1 %3893  ;;  %v5725_v7 = vsel %vm1448_vm2, %v5550_v3, %v3876_v24  ;;  %v7801_v33 = vrot.slane %v5540_v44, 1  ;;  %v5736_v32 = vld [vmem:[%s4516_s9 + $0x1c0] sm:$0xff]  ;;  %v1710_v3 = vld [vmem:[%s7556_s1 + $0x1e8] sm:$0xff] }
  0xc2   : > { %2267 = vmatpush2.msra.mxu1 %v1712_v41  ;;  %4108 = vrot.lane.b32.xlu0 %v4107_v47, %s4392_s14  ;;  %7799 = vst [vmem:[#allocation92_spill] sm:$0xff] %v5716_v38  ;;  %v3886_v47 = vunpack.i.h.bf16 %v5678_v26  ;;  %7800 = vst [vmem:[#allocation93_spill] sm:$0xff] %v5725_v7  ;;  %v5728_v41 = vld [vmem:[%s4516_s9 + $0x1b8] sm:$0xff]  ;;  %v7803_v0 = vrot.slane %v5155_v55, 2  ;;  %v1523_v26 = vsel %vm1448_vm2, %v5128_v8, %v3880_v30  ;;  %v1709_v30 = vld [vmem:[%s7556_s1 + $0x1e0] sm:$0xff]  ;;  %v7806_v8 = vrot.slane %v5670_v43, 2 }
  0xc3   : > { %2268 = vmatprep.subr.mxu1 %v7724_v40  ;;  %1958 = vmatprep.mubr.f32.mxu0 %v1522_v59  ;;  %v5733_v28 = vsel %vm384_vm0, %v475_v50, %v7801_v33  ;;  %v4242_v24 = vld [vmem:[%s4516_s9 + $0x60] sm:$0xff]  ;;  %v480_v57 = vrot.slane %v5628_v1, 1 }
  0xc4   : > { %7802 = vst [vmem:[#allocation94_spill] sm:$0xff] %v5733_v28  ;;  %v5741_v59 = vsel %vm529_vm1, %v593_v35, %v7803_v0  ;;  %2269 = vmatpush2.msra.mxu1 %v1711_v49  ;;  %2198 = vmatprep.mubr.f32.mxu1 %v1570_v2  ;;  %v1571_v35 = vsel %vm1448_vm2, %v5716_v38, %v3881_v12  ;;  %v5757_v2 = vld [vmem:[%s4516_s9 + $0x258] sm:$0xff]  ;;  %v3890_v0 = vunpack.i.l.bf16 %v5703_v37 }
  0xc5   : > { %7804 = vst [vmem:[#allocation95_spill] sm:$0xff] %v5741_v59  ;;  %2270 = vmatprep.subr.mxu1 %v7724_v40  ;;  %1959 = vmatmul.mubr.f32.gmra.mxu0 %v5709_v53  ;;  %v5754_v49 = vpop.permute.xlu0 %3898  ;;  %v665_v33 = vrot.slane %v5757_v2, 2  ;;  %v5768_v12 = vsel %vm1448_vm2, %v4242_v24, %v3885_v14  ;;  %v4117_v50 = vpack.i.bf16 %v5733_v28, %v5728_v41  ;;  %v5774_v17 = vpop.permute.xlu1 %3903  ;;  %v5787_v24 = vld [vmem:[%s4516_s9 + $0x260] sm:$0xff]  ;;  %v7812_v28 = vrot.slane %v5155_v55, 2 }
  0xc6   : > { %2199 = vmatmul.mubr.f32.gmra.mxu1 %v5725_v7  ;;  %4113 = vrot.lane.b32.xlu1 %v4112_v19, %s4392_s14  ;;  %v4122_v9 = vpack.i.bf16 %v5736_v32, %v5741_v59  ;;  %v3891_v19 = vunpack.i.h.bf16 %v5703_v37  ;;  %v5779_v7 = vsel %vm1448_vm2, %v5589_v31, %v3886_v47  ;;  %v5784_v14 = vsel %vm529_vm1, %v7806_v8, %v663_v10  ;;  %v1708_v31 = vld [vmem:[%s7556_s1 + $0x1d8] sm:$0xff] }
  0xc7   : > { %2271 = vmatpush2.msra.mxu1 %v1710_v3  ;;  %1963 = vmatprep.mubr.f32.mxu0 %v1523_v26  ;;  %7805 = vst [vmem:[#allocation96_spill] sm:$0xff] %v5779_v7  ;;  %7807 = vst [vmem:[#allocation97_spill] sm:$0xff] %v5784_v14  ;;  %v3896_v3 = vunpack.i.h.bf16 %v5718_v11  ;;  %v3895_v37 = vunpack.i.l.bf16 %v5718_v11  ;;  %v7808_v47 = vrot.slane %v5609_v23, 1  ;;  %v7809_v8 = vrot.slane %v5540_v44, 1 }
  0xc8   : > { %2272 = vmatprep.subr.mxu1 %v7724_v40  ;;  %2203 = vmatprep.mubr.f32.mxu1 %v1571_v35  ;;  %v7811_v26 = vrot.slane %v5178_v51, 2  ;;  %v1524_v55 = vsel %vm1448_vm2, %v5136_v36, %v3890_v0  ;;  %v4244_v0 = vld [vmem:[%s4516_s9 + $0x68] sm:$0xff]  ;;  %v5847_v36 = vld [vmem:[%s4516_s9 + $0x1b0] sm:$0x3] }
  0xc9   : > { %v5801_v10 = vsel %vm384_vm0, %v7809_v8, %v7808_v47  ;;  %2273 = vmatpush2.msra.mxu1 %v1709_v30  ;;  %1964 = vmatmul.mubr.f32.gmra.mxu0 %v5768_v12  ;;  %v5811_v11 = vpop.permute.xlu0 %3908  ;;  %v1707_v47 = vld [vmem:[%s7556_s1 + $0x1d0] sm:$0xff]  ;;  %v3900_v8 = vunpack.i.l.bf16 %v5754_v49  ;;  %v1572_v30 = vsel %vm1448_vm2, %v5784_v14, %v3891_v19  ;;  %v7815_v19 = vrot.slane %v5787_v24, 2 }
  0xca   : > { %7810 = vst [vmem:[#allocation98_spill] sm:$0xff] %v5801_v10  ;;  %v5808_v35 = vsel %vm529_vm1, %v7812_v28, %v7811_v26  ;;  %2274 = vmatprep.subr.mxu1 %v7724_v40  ;;  %2204 = vmatmul.mubr.f32.gmra.mxu1 %v5779_v7  ;;  %v3901_v28 = vunpack.i.h.bf16 %v5754_v49  ;;  %v5827_v7 = vpop.permute.xlu1 %3913  ;;  %v5838_v49 = vsel %vm1448_vm2, %v5670_v43, %v3896_v3  ;;  %v1706_v43 = vld [vmem:[%s7556_s1 + $0x1c8] sm:$0xff]  ;;  %v5885_v14 = vld [vmem:[%s4516_s9 + $0x1d0] sm:$0xff] }
  0xcb   : > { %7813 = vst [vmem:[#allocation99_spill] sm:$0xff] %v5808_v35  ;;  %2275 = vmatpush2.msra.mxu1 %v1708_v31  ;;  %4118 = vrot.lane.b32.xlu0 %v4117_v50, %s4392_s14  ;;  %v4127_v26 = vpack.i.bf16 %v5808_v35, %v5801_v10  ;;  %v5834_v50 = vsel %vm1448_vm2, %v4244_v0, %v3895_v37  ;;  %7814 = vst [vmem:[#allocation100_spill] sm:$0xff] %v5838_v49  ;;  %v598_v10 = vrot.slane %v5192_v6, 2 }
  0xcc   : > { %2276 = vmatprep.subr.mxu1 %v7724_v40  ;;  %4123 = vrot.lane.b32.xlu1 %v4122_v9, %s4392_s14  ;;  %v5843_v31 = vsel %vm529_vm1, %v665_v33, %v7815_v19  ;;  %v3906_v9 = vunpack.i.h.bf16 %v5774_v17  ;;  %v3905_v37 = vunpack.i.l.bf16 %v5774_v17  ;;  %v1525_v6 = vsel %vm1448_vm2, %v5158_v5, %v3900_v8  ;;  %v5860_v33 = vld [vmem:[%s4516_s9 + $0x268] sm:$0xff]  ;;  %v1705_v17 = vld [vmem:[%s7556_s1 + $0x1c0] sm:$0xff] }
  0xcd   : > { %7816 = vst [vmem:[#allocation101_spill] sm:$0xff] %v5843_v31  ;;  %2277 = vmatpush2.msra.mxu1 %v1707_v47  ;;  %1968 = vmatprep.mubr.f32.mxu0 %v1524_v55  ;;  %v5854_v3 = vpop.permute.xlu0 %3918  ;;  %v668_v47 = vrot.slane %v5860_v33, 2  ;;  %v1573_v55 = vsel %vm1448_vm2, %v5843_v31, %v3901_v28  ;;  %v7817_v8 = vrot.slane %v5609_v23, 1  ;;  %v482_v19 = vrot.slane %v5847_v36, 1  ;;  %v1704_v31 = vld [vmem:[%s7556_s1 + $0x1b8] sm:$0xff] }
  0xce   : > { %2208 = vmatprep.mubr.f32.mxu1 %v1572_v30  ;;  %2278 = vmatprep.subr.mxu1 %v7724_v40  ;;  %v5871_v30 = vld [vmem:[%s4516_s9 + $0x1c8] sm:$0xff]  ;;  %v600_v5 = vrot.slane %v5229_v54, 2  ;;  %v7819_v28 = vrot.slane %v5178_v51, 2  ;;  %v3910_v54 = vunpack.i.l.bf16 %v5811_v11  ;;  %v5901_v4 = vsel %vm1448_vm2, %v5757_v2, %v3906_v9  ;;  %v5903_v51 = vpop.permute.xlu1 %3923  ;;  %v5917_v2 = vld [vmem:[%s4516_s9 + $0x270] sm:$0xff] }
  0xcf   : > { %1969 = vmatmul.mubr.f32.gmra.mxu0 %v5834_v50  ;;  %2209 = vmatmul.mubr.f32.gmra.mxu1 %v5838_v49  ;;  %v5876_v0 = vsel %vm384_vm0, %v7817_v8, %v480_v57  ;;  %v1718_v49 = vld [vmem:[%s7556_s1 + $0x228] sm:$0xff]  ;;  %v3911_v8 = vunpack.i.h.bf16 %v5811_v11  ;;  %7821 = vst [vmem:[#allocation104_spill] sm:$0xff] %v5901_v4  ;;  %v3920_v9 = vunpack.i.l.bf16 %v5854_v3  ;;  %v603_v35 = vrot.slane %v5222_v62, 2 }
  0xd0   : > { %7818 = vst [vmem:[#allocation102_spill] sm:$0xff] %v5876_v0  ;;  %2279 = vmatpush2.msra.mxu1 %v1706_v43  ;;  %4128 = vrot.lane.b32.xlu0 %v4127_v26, %s4392_s14  ;;  %v5890_v38 = vsel %vm529_vm1, %v7819_v28, %v598_v10  ;;  %v4246_v26 = vld [vmem:[%s4516_s9 + $0x78] sm:$0xff]  ;;  %v3915_v28 = vunpack.i.l.bf16 %v5827_v7  ;;  %v4132_v11 = vpack.i.bf16 %v5876_v0, %v5871_v30  ;;  %v3925_v59 = vunpack.i.l.bf16 %v5903_v51 }
  0xd1   : > { %7820 = vst [vmem:[#allocation103_spill] sm:$0xff] %v5890_v38  ;;  %2280 = vmatprep.subr.mxu1 %v7724_v40  ;;  %1973 = vmatprep.mubr.f32.mxu0 %v1525_v6  ;;  %v5897_v43 = vsel %vm1448_vm2, %v4246_v26, %v3905_v37  ;;  %v7822_v37 = vrot.slane %v5787_v24, 2  ;;  %v5925_v26 = vsel %vm384_vm0, %v480_v57, %v482_v19  ;;  %v485_v57 = vrot.slane %v5736_v32, 1 }
  0xd2   : > { %2281 = vmatpush2.msra.mxu1 %v1705_v17  ;;  %2213 = vmatprep.mubr.f32.mxu1 %v1573_v55  ;;  %v3916_v17 = vunpack.i.h.bf16 %v5827_v7  ;;  %v4137_v55 = vpack.i.bf16 %v5885_v14, %v5890_v38  ;;  %7824 = vst [vmem:[#allocation106_spill] sm:$0xff] %v5925_v26  ;;  %v5928_v0 = vsel %vm529_vm1, %v598_v10, %v600_v5  ;;  %v1703_v7 = vld [vmem:[%s7556_s1 + $0x1b0] sm:$0xff]  ;;  %v484_v38 = vrot.slane %v5728_v41, 1 }
  0xd3   : > { %v5914_v6 = vsel %vm529_vm1, %v7822_v37, %v668_v47  ;;  %2282 = vmatprep.subr.mxu1 %v7724_v40  ;;  %3529 = vmatprep.subr.mxu0 %v1718_v49  ;;  %v5930_v37 = vpop.permute.xlu0 %3928  ;;  %v602_v5 = vrot.slane %v5214_v52, 2  ;;  %v3921_v10 = vunpack.i.h.bf16 %v5854_v3  ;;  %v1526_v19 = vsel %vm1448_vm2, %v5174_v18, %v3910_v54  ;;  %v4248_v52 = vld [vmem:[%s4516_s9 + $0x80] sm:$0xff] }
  0xd4   : > { %7823 = vst [vmem:[#allocation105_spill] sm:$0xff] %v5914_v6  ;;  %1974 = vmatmul.mubr.f32.gmra.mxu0 %v5897_v43  ;;  %2214 = vmatmul.mubr.f32.gmra.mxu1 %v5901_v4  ;;  %v1574_v4 = vsel %vm1448_vm2, %v5914_v6, %v3911_v8  ;;  %v7825_v3 = vrot.slane %v5917_v2, 2  ;;  %v3926_v62 = vunpack.i.h.bf16 %v5903_v51  ;;  %v5965_v54 = vsel %vm1448_vm2, %v5787_v24, %v3916_v17 }
  0xd5   : > { %2283 = vmatpush2.msra.mxu1 %v1704_v31  ;;  %3530 = vmatpush3.msra.mxu0 %v1718_v49  ;;  %v5952_v49 = vsel %vm1448_vm2, %v4248_v52, %v3915_v28  ;;  %v4142_v31 = vpack.i.bf16 %v5928_v0, %v5925_v26  ;;  %7827 = vst [vmem:[#allocation108_spill] sm:$0xff] %v5965_v54  ;;  %v1702_v28 = vld [vmem:[%s7556_s1 + $0x1a8] sm:$0xff]  ;;  %v6006_v26 = vld [vmem:[%s4516_s9 + $0x1d8] sm:$0x3] }
  0xd6   : > { %4133 = vrot.lane.b32.xlu1 %v4132_v11, %s4392_s14  ;;  %2284 = vmatprep.subr.mxu1 %v7724_v40  ;;  %v5959_v8 = vsel %vm529_vm1, %v668_v47, %v7825_v3  ;;  %v3934_v11 = vpop.permute.xlu1 %3933  ;;  %v1527_v47 = vsel %vm1448_vm2, %v5195_v56, %v3920_v9  ;;  %v5981_v24 = vsel %vm529_vm1, %v602_v5, %v603_v35  ;;  %v487_v9 = vrot.slane %v5871_v30, 1  ;;  %v4250_v52 = vld [vmem:[%s4516_s9 + $0x88] sm:$0xff] }
  0xd7   : > { %7826 = vst [vmem:[#allocation107_spill] sm:$0xff] %v5959_v8  ;;  %4138 = vrot.lane.b32.xlu0 %v4137_v55, %s4392_s14  ;;  %2285 = vmatpush2.msra.mxu1 %v1703_v7  ;;  %v5973_v55 = vsel %vm384_vm0, %v484_v38, %v485_v57  ;;  %v4249_v7 = vld [vmem:[%s4516_s9 + $0x278] sm:$0x3]  ;;  %v5983_v17 = vpop.permute.xlu0 %3938  ;;  %v1701_v38 = vld [vmem:[%s7556_s1 + $0x1a0] sm:$0xff]  ;;  %v605_v5 = vrot.slane %v5245_v45, 2  ;;  %v3931_v3 = vunpack.i.h.bf16 %v5930_v37  ;;  %v3935_v45 = vunpack.i.l.bf16 %v3934_v11 }
  0xd8   : > { %1978 = vmatprep.mubr.f32.mxu0 %v1526_v19  ;;  %2218 = vmatprep.mubr.f32.mxu1 %v1574_v4  ;;  %7828 = vst [vmem:[#allocation109_spill] sm:$0xff] %v5973_v55  ;;  %v672_v51 = vrot.slane %v4249_v7, 2  ;;  %v1575_v4 = vsel %vm1448_vm2, %v5959_v8, %v3921_v10  ;;  %v3930_v19 = vunpack.i.l.bf16 %v5930_v37  ;;  %v5994_v10 = vsel %vm1448_vm2, %v4250_v52, %v3925_v59  ;;  %v1700_v37 = vld [vmem:[%s7556_s1 + $0x198] sm:$0xff] }
  0xd9   : > { %2286 = vmatprep.subr.mxu1 %v7724_v40  ;;  %1979 = vmatmul.mubr.f32.gmra.mxu0 %v5952_v49  ;;  %v6000_v7 = vsel %vm1448_vm2, %v5860_v33, %v3926_v62  ;;  %v3936_v59 = vunpack.i.h.bf16 %v3934_v11  ;;  %v4152_v33 = vpack.i.bf16 %v5392_v15, %v5981_v24  ;;  %v7830_v62 = vrot.slane %v5917_v2, 2  ;;  %v1699_v15 = vld [vmem:[%s7556_s1 + $0x190] sm:$0xff] }
  0xda   : > { %2219 = vmatmul.mubr.f32.gmra.mxu1 %v5965_v54  ;;  %4143 = vrot.lane.b32.xlu1 %v4142_v31, %s4392_s14  ;;  %7829 = vst [vmem:[#allocation110_spill] sm:$0xff] %v6000_v7  ;;  %v4147_v31 = vpack.i.bf16 %v5973_v55, %v5369_v27  ;;  %v489_v54 = vrot.slane %v5885_v14, 1  ;;  %v1528_v11 = vsel %vm1448_vm2, %v5203_v25, %v3930_v19  ;;  %v609_v19 = vrot.slane %v5313_v16, 2  ;;  %v1698_v16 = vld [vmem:[%s7556_s1 + $0x188] sm:$0xff] }
  0xdb   : > { %2287 = vmatpush2.msra.mxu1 %v1702_v28  ;;  %1983 = vmatprep.mubr.f32.mxu0 %v1527_v47  ;;  %v6017_v27 = vsel %vm529_vm1, %v7830_v62, %v672_v51  ;;  %v3944_v28 = vpop.permute.xlu1 %3943  ;;  %v6021_v47 = vsel %vm384_vm0, %v485_v57, %v487_v9  ;;  %v6031_v51 = vsel %vm529_vm1, %v603_v35, %v605_v5  ;;  %v491_v57 = vrot.slane %v6006_v26, 1  ;;  %v3949_v62 = vpop.permute.xlu0 %3948 }
  0xdc   : > { %2288 = vmatprep.subr.mxu1 %v7724_v40  ;;  %2223 = vmatprep.mubr.f32.mxu1 %v1575_v4  ;;  %7831 = vst [vmem:[#allocation111_spill] sm:$0xff] %v6021_v47  ;;  %v607_v4 = vrot.slane %v5259_v60, 2  ;;  %v1576_v52 = vsel %vm1448_vm2, %v6017_v27, %v3931_v3  ;;  %v3941_v60 = vunpack.i.h.bf16 %v5983_v17  ;;  %v3945_v35 = vunpack.i.l.bf16 %v3944_v28 }
  0xdd   : > { %2289 = vmatpush2.msra.mxu1 %v1701_v38  ;;  %1984 = vmatmul.mubr.f32.gmra.mxu0 %v5994_v10  ;;  %v3940_v38 = vunpack.i.l.bf16 %v5983_v17  ;;  %v6052_v3 = vsel %vm1448_vm2, %v5917_v2, %v3936_v59  ;;  %v6066_v2 = vsel %vm384_vm0, %v489_v54, %v491_v57  ;;  %v1697_v59 = vld [vmem:[%s7556_s1 + $0x180] sm:$0xff] }
  0xde   : > { %2290 = vmatprep.subr.mxu1 %v7724_v40  ;;  %2224 = vmatmul.mubr.f32.gmra.mxu1 %v6000_v7  ;;  %v6040_v7 = vsel %vm384_vm0, %v487_v9, %v489_v54  ;;  %7833 = vst [vmem:[#allocation113_spill] sm:$0xff] %v6052_v3  ;;  %v3946_v9 = vunpack.i.h.bf16 %v3944_v28  ;;  %7834 = vst [vmem:[#allocation114_spill] sm:$0xff] %v6066_v2  ;;  %v3951_v54 = vunpack.i.h.bf16 %v3949_v62  ;;  %v4252_v57 = vld [vmem:[%s4516_s9 + $0xa0] sm:$0xff] }
  0xdf   : > { %2291 = vmatpush2.msra.mxu1 %v1700_v37  ;;  %4148 = vrot.lane.b32.xlu0 %v4147_v31, %s4392_s14  ;;  %7832 = vst [vmem:[#allocation112_spill] sm:$0xff] %v6040_v7  ;;  %v4251_v37 = vld [vmem:[%s4516_s9 + $0x90] sm:$0xff]  ;;  %v6059_v17 = vpop.permute.xlu1 %3953  ;;  %v1529_v28 = vsel %vm1448_vm2, %v5225_v20, %v3940_v38  ;;  %v7871_v20 = vld [vmem:[#allocation34_spill] sm:$0xff] }
  0xe0   : > { %2292 = vmatprep.subr.mxu1 %v7724_v40  ;;  %4153 = vrot.lane.b32.xlu1 %v4152_v33, %s4392_s14  ;;  %v6048_v31 = vsel %vm1448_vm2, %v4251_v37, %v3935_v45  ;;  %v4157_v33 = vpack.i.bf16 %v6031_v51, %v6021_v47  ;;  %v6063_v45 = vsel %vm529_vm1, %v605_v5, %v607_v4  ;;  %v3955_v38 = vunpack.i.l.bf16 %v6059_v17 }
  0xe1   : > { %2293 = vmatpush2.msra.mxu1 %v1699_v15  ;;  %1988 = vmatprep.mubr.f32.mxu0 %v1528_v11  ;;  %v4162_v15 = vpack.i.bf16 %v6040_v7, %v5426_v58  ;;  %v6078_v5 = vsel %vm529_vm1, %v607_v4, %v609_v19  ;;  %v3950_v11 = vunpack.i.l.bf16 %v3949_v62  ;;  %v1577_v37 = vsel %vm1448_vm2, %v4657_v61, %v3945_v35  ;;  %v3959_v4 = vpop.permute.xlu0 %3958  ;;  %v6101_v19 = vld [vmem:[%s4516_s9 + $0x168] sm:$0xff]  ;;  %v7838_v7 = vld [vmem:[#allocation56_spill] sm:$0xff] }
  0xe2   : > { %2228 = vmatprep.mubr.f32.mxu1 %v1576_v52  ;;  %2294 = vmatprep.subr.mxu1 %v7724_v40  ;;  %v6083_v52 = vsel %vm1448_vm2, %v4252_v57, %v3941_v60  ;;  %v1530_v58 = vsel %vm1448_vm2, %v5241_v39, %v3946_v9  ;;  %v4172_v61 = vpack.i.bf16 %v6078_v5, %v6066_v2  ;;  %v6105_v60 = vld [vmem:[%s4516_s9 + $0x170] sm:$0xff]  ;;  %v3956_v9 = vunpack.i.h.bf16 %v6059_v17  ;;  %v6121_v17 = vld [vmem:[%s4516_s9 + $0x178] sm:$0xff] }
  0xe3   : > { %1989 = vmatmul.mubr.f32.gmra.mxu0 %v6048_v31  ;;  %2229 = vmatmul.mubr.f32.gmra.mxu1 %v6052_v3  ;;  %v3964_v62 = vpop.permute.xlu1 %3963  ;;  %v612_v35 = vrot.slane %v6105_v60, 2  ;;  %v614_v2 = vrot.slane %v6121_v17, 2  ;;  %v7867_v39 = vld [vmem:[#allocation103_spill] sm:$0xff] }
  0xe4   : > { %2295 = vmatpush2.msra.mxu1 %v1698_v16  ;;  %2298 = vmatprep.mubr.f32.mxu1 %v5662_v29  ;;  %v4167_v29 = vpack.i.bf16 %v5454_v13, %v6063_v45  ;;  %v611_v13 = vrot.slane %v6101_v19, 2  ;;  %v3960_v16 = vunpack.i.l.bf16 %v3959_v4 }
  0xe5   : > { %2296 = vmatprep.subr.mxu1 %v7724_v40  ;;  %4158 = vrot.lane.b32.xlu0 %v4157_v33, %s4392_s14  ;;  %v1717_v40 = vld [vmem:[%s7556_s1 + $0x220] sm:$0xff]  ;;  %v4255_v33 = vld [vmem:[%s4516_s9 + $0xa8] sm:$0xff]  ;;  %v3969_v3 = vpop.permute.xlu0 %3968 }
  0xe6   : > { %2297 = vmatpush2.msra.mxu1 %v1697_v59  ;;  %1993 = vmatprep.mubr.f32.mxu0 %v1529_v28  ;;  %v6112_v59 = vsel %vm1448_vm2, %v4255_v33, %v3950_v11  ;;  %v7835_v28 = vld [vmem:[#allocation10_spill] sm:$0xff]  ;;  %v4258_v33 = vld [vmem:[%s4516_s9 + $0xb0] sm:$0xff]  ;;  %v3970_v55 = vunpack.i.l.bf16 %v3969_v3 }
  0xe7   : > { %1994 = vmatmul.mubr.f32.gmra.mxu0 %v6083_v52  ;;  %2299 = vmatmul.mubr.f32.vlgmr.msra.gmra.mxu1 %v1577_v37  ;;  %v1578_v57 = vsel %vm1448_vm2, %v7835_v28, %v3951_v54  ;;  %v3961_v37 = vunpack.i.h.bf16 %v3959_v4  ;;  %v6126_v54 = vsel %vm529_vm1, %v611_v13, %v612_v35  ;;  %v3966_v4 = vunpack.i.h.bf16 %v3964_v62  ;;  %v7837_v13 = vld [vmem:[#allocation12_spill] sm:$0xff] }
  0xe8   : > { %4163 = vrot.lane.b32.xlu1 %v4162_v15, %s4392_s14  ;;  %1998 = vmatprep.mubr.f32.mxu0 %v1530_v58  ;;  %v7836_v15 = vld [vmem:[#allocation54_spill] sm:$0xff]  ;;  %v6139_v28 = vsel %vm1448_vm2, %v4258_v33, %v3956_v9  ;;  %v620_v9 = vrot.slane %v5523_v21, 2 }
  0xe9   : > { %2303 = vmatprep.mubr.f32.mxu1 %v5709_v53  ;;  %4168 = vrot.lane.b32.xlu0 %v4167_v29, %s4392_s14  ;;  %v1531_v58 = vsel %vm1448_vm2, %v7836_v15, %v3955_v38  ;;  %v6129_v53 = vld [vmem:[%s4516_s9 + $0x180] sm:$0xff]  ;;  %v1716_v29 = vld [vmem:[%s7556_s1 + $0x218] sm:$0xff]  ;;  %v3965_v38 = vunpack.i.l.bf16 %v3964_v62  ;;  %v1532_v47 = vsel %vm1448_vm2, %v7838_v7, %v3961_v37  ;;  %v3974_v15 = vpop.permute.xlu1 %3973  ;;  %v3979_v62 = vpop.permute.xlu0 %3978  ;;  %v1715_v37 = vld [vmem:[%s7556_s1 + $0x210] sm:$0xff] }
  0xea   : > { %3531 = vmatprep.subr.mxu0 %v1717_v40  ;;  %v616_v11 = vrot.slane %v6129_v53, 2  ;;  %v7840_v21 = vld [vmem:[#allocation58_spill] sm:$0xff] }
  0xeb   : > { %1999 = vmatmul.mubr.f32.gmra.mxu0 %v6112_v59  ;;  %2304 = vmatmul.mubr.f32.gmra.mxu1 %v1578_v57  ;;  %v1579_v57 = vsel %vm1448_vm2, %v7837_v13, %v3960_v16  ;;  %v621_v16 = vrot.slane %v5540_v44, 2  ;;  %v7839_v13 = vld [vmem:[#allocation14_spill] sm:$0xff]  ;;  %v1533_v44 = vsel %vm1448_vm2, %v7840_v21, %v3970_v55 }
  0xec   : > { %2308 = vmatprep.mubr.f32.mxu1 %v5768_v12  ;;  %4173 = vrot.lane.b32.xlu1 %v4172_v61, %s4392_s14  ;;  %v6148_v12 = vsel %vm529_vm1, %v612_v35, %v614_v2  ;;  %v618_v61 = vrot.slane %v5585_v48, 2  ;;  %v3971_v48 = vunpack.i.h.bf16 %v3969_v3  ;;  %v3975_v35 = vunpack.i.l.bf16 %v3974_v15 }
  0xed   : > { %2003 = vmatprep.mubr.f32.mxu0 %v1531_v58  ;;  %3532 = vmatpush3.msra.mxu0 %v1717_v40  ;;  %v6153_v40 = vsel %vm529_vm1, %v614_v2, %v616_v11  ;;  %v4259_v58 = vld [vmem:[%s4516_s9 + $0xb8] sm:$0xff]  ;;  %v1580_v2 = vsel %vm1448_vm2, %v7839_v13, %v3966_v4  ;;  %v623_v3 = vrot.slane %v5609_v23, 2  ;;  %v6179_v55 = vsel %vm529_vm1, %v620_v9, %v621_v16 }
  0xee   : > { %1296 = vrot.lane.b32.xlu0 %v6126_v54, %s4392_s14  ;;  %3533 = vmatprep.subr.mxu0 %v1716_v29  ;;  %v6163_v33 = vsel %vm1448_vm2, %v4259_v58, %v3965_v38  ;;  %v3980_v4 = vunpack.i.l.bf16 %v3979_v62  ;;  %v4260_v38 = vld [vmem:[%s4516_s9 + $0xc8] sm:$0xff]  ;;  %v7842_v9 = vld [vmem:[#allocation60_spill] sm:$0xff] }
  0xef   : > { %2004 = vmatmul.mubr.f32.gmra.mxu0 %v6139_v28  ;;  %2309 = vmatmul.mubr.f32.gmra.mxu1 %v1579_v57  ;;  %v3976_v57 = vunpack.i.h.bf16 %v3974_v15  ;;  %v625_v15 = vrot.slane %v5628_v1, 2  ;;  %v6188_v23 = vsel %vm1448_vm2, %v4260_v38, %v3971_v48  ;;  %v4261_v38 = vld [vmem:[%s4516_s9 + $0xd0] sm:$0xff] }
  0xf0   : > { %2008 = vmatprep.mubr.f32.mxu0 %v1532_v47  ;;  %2313 = vmatprep.mubr.f32.mxu1 %v5834_v50  ;;  %v3984_v47 = vpop.permute.xlu1 %3983  ;;  %v6174_v50 = vsel %vm529_vm1, %v616_v11, %v618_v61  ;;  %v3981_v11 = vunpack.i.h.bf16 %v3979_v62  ;;  %v7841_v61 = vld [vmem:[#allocation16_spill] sm:$0xff]  ;;  %v627_v62 = vrot.slane %v5847_v36, 2 }
  0xf1   : > { %1298 = vrot.lane.b32.xlu1 %v6148_v12, %s4392_s14  ;;  %3534 = vmatpush3.msra.mxu0 %v1716_v29  ;;  %v1714_v29 = vld [vmem:[%s7556_s1 + $0x208] sm:$0xff]  ;;  %v1581_v58 = vsel %vm1448_vm2, %v7841_v61, %v3975_v35  ;;  %v1534_v13 = vsel %vm1448_vm2, %v7842_v9, %v3976_v57  ;;  %v3985_v1 = vunpack.i.l.bf16 %v3984_v47  ;;  %v6204_v35 = vsel %vm529_vm1, %v623_v3, %v625_v15 }
  0xf2   : > { %1300 = vrot.lane.b32.xlu0 %v6153_v40, %s4392_s14  ;;  %3535 = vmatprep.subr.mxu0 %v1715_v37  ;;  %v629_v57 = vrot.slane %v5728_v41, 2  ;;  %v3986_v36 = vunpack.i.h.bf16 %v3984_v47  ;;  %v6214_v61 = vsel %vm1448_vm2, %v4261_v38, %v3980_v4  ;;  %v632_v47 = vrot.slane %v5871_v30, 2 }
  0xf3   : > { %2009 = vmatmul.mubr.f32.gmra.mxu0 %v6163_v33  ;;  %2314 = vmatmul.mubr.f32.gmra.mxu1 %v1580_v2  ;;  %v3989_v2 = vpop.permute.xlu0 %3988  ;;  %v634_v4 = vrot.slane %v5885_v14, 2 }
  0xf4   : > { %2318 = vmatprep.mubr.f32.mxu1 %v5897_v43  ;;  %2013 = vmatprep.mubr.f32.mxu0 %v1533_v44  ;;  %v6199_v43 = vsel %vm529_vm1, %v621_v16, %v623_v3  ;;  %v3994_v48 = vpop.permute.xlu1 %3993  ;;  %v1713_v44 = vld [vmem:[%s7556_s1 + $0x200] sm:$0xff]  ;;  %v3990_v16 = vunpack.i.l.bf16 %v3989_v2  ;;  %v3991_v9 = vunpack.i.h.bf16 %v3989_v2  ;;  %v7844_v2 = vld [vmem:[#allocation20_spill] sm:$0xff] }
  0xf5   : > { %1302 = vrot.lane.b32.xlu1 %v6174_v50, %s4392_s14  ;;  %3536 = vmatpush3.msra.mxu0 %v1715_v37  ;;  %v630_v37 = vrot.slane %v5736_v32, 2  ;;  %v1535_v32 = vsel %vm1448_vm2, %v5334_v63, %v3985_v1  ;;  %v4262_v1 = vld [vmem:[%s4516_s9 + $0xd8] sm:$0xff] }
  0xf6   : > { %1304 = vrot.lane.b32.xlu0 %v6179_v55, %s4392_s14  ;;  %3537 = vmatprep.subr.mxu0 %v1714_v29  ;;  %v1583_v30 = vsel %vm1448_vm2, %v7844_v2, %v3990_v16  ;;  %v4263_v16 = vld [vmem:[%s4516_s9 + $0xe0] sm:$0xff]  ;;  %v7846_v2 = vld [vmem:[#allocation24_spill] sm:$0xff] }
  0xf7   : > { %2014 = vmatmul.mubr.f32.gmra.mxu0 %v6188_v23  ;;  %2319 = vmatmul.mubr.f32.gmra.mxu1 %v1581_v58  ;;  %v7843_v58 = vld [vmem:[#allocation18_spill] sm:$0xff]  ;;  %v3999_v41 = vpop.permute.xlu0 %3998  ;;  %v6247_v14 = vsel %vm529_vm1, %v630_v37, %v632_v47 }
  0xf8   : > { %2018 = vmatprep.mubr.f32.mxu0 %v1534_v13  ;;  %2323 = vmatprep.mubr.f32.mxu1 %v5952_v49  ;;  %v1582_v3 = vsel %vm1448_vm2, %v7843_v58, %v3981_v11  ;;  %v6225_v49 = vsel %vm529_vm1, %v625_v15, %v627_v62  ;;  %v6230_v11 = vsel %vm529_vm1, %v629_v57, %v630_v37  ;;  %v3995_v13 = vunpack.i.l.bf16 %v3994_v48  ;;  %v4004_v38 = vpop.permute.xlu1 %4003  ;;  %v7845_v37 = vld [vmem:[#allocation22_spill] sm:$0xff] }
  0xf9   : > { %1306 = vrot.lane.b32.xlu1 %v6199_v43, %s4392_s14  ;;  %3538 = vmatpush3.msra.mxu0 %v1714_v29  ;;  %v3996_v29 = vunpack.i.h.bf16 %v3994_v48  ;;  %v6236_v15 = vsel %vm1448_vm2, %v4262_v1, %v3986_v36  ;;  %v1536_v62 = vsel %vm1448_vm2, %v5351_v22, %v3991_v9  ;;  %v4000_v57 = vunpack.i.l.bf16 %v3999_v41 }
  0xfa   : > { %1308 = vrot.lane.b32.xlu0 %v6204_v35, %s4392_s14  ;;  %3539 = vmatprep.subr.mxu0 %v1713_v44  ;;  %v6252_v9 = vsel %vm529_vm1, %v632_v47, %v634_v4  ;;  %v4001_v36 = vunpack.i.h.bf16 %v3999_v41  ;;  %v6257_v58 = vsel %vm1448_vm2, %v4263_v16, %v3995_v13 }
  0xfb   : > { %2019 = vmatmul.mubr.f32.gmra.mxu0 %v6214_v61  ;;  %2324 = vmatmul.mubr.f32.gmra.mxu1 %v1582_v3  ;;  %v4009_v48 = vpop.permute.xlu0 %4008  ;;  %v4006_v3 = vunpack.i.h.bf16 %v4004_v38 }
  0xfc   : > { %2328 = vmatprep.mubr.f32.mxu1 %v5994_v10  ;;  %2023 = vmatprep.mubr.f32.mxu0 %v1535_v32  ;;  %v636_v10 = vrot.slane %v6006_v26, 2  ;;  %v1584_v26 = vsel %vm1448_vm2, %v7845_v37, %v3996_v29  ;;  %v1537_v32 = vsel %vm1448_vm2, %v5543_v46, %v4000_v57  ;;  %v4014_v1 = vpop.permute.xlu1 %4013  ;;  %v4011_v41 = vunpack.i.h.bf16 %v4009_v48  ;;  %v4264_v29 = vld [vmem:[%s4516_s9 + $0xf0] sm:$0xff]  ;;  %v7849_v37 = vld [vmem:[#allocation26_spill] sm:$0xff] }
  0xfd   : > { %1310 = vrot.lane.b32.xlu1 %v6225_v49, %s4392_s14  ;;  %3540 = vmatpush3.msra.mxu0 %v1713_v44  ;;  %v4005_v44 = vunpack.i.l.bf16 %v4004_v38  ;;  %v4010_v47 = vunpack.i.l.bf16 %v4009_v48  ;;  %v6274_v13 = vsel %vm1448_vm2, %v4264_v29, %v4001_v36  ;;  %v4015_v57 = vunpack.i.l.bf16 %v4014_v1 }
  0xfe   : > { %1312 = vrot.lane.b32.xlu0 %v6230_v11, %s4392_s14  ;;  %v4016_v48 = vunpack.i.h.bf16 %v4014_v1 }
  0xff   : > { %2024 = vmatmul.mubr.f32.gmra.mxu0 %v6236_v15  ;;  %2329 = vmatmul.mubr.f32.gmra.mxu1 %v1583_v30  ;;  %v1585_v30 = vsel %vm1448_vm2, %v7846_v2, %v4005_v44  ;;  %v4019_v38 = vpop.permute.xlu0 %4018  ;;  %v4265_v44 = vld [vmem:[%s4516_s9 + $0xf8] sm:$0xff]  ;;  %v7850_v2 = vld [vmem:[#allocation66_spill] sm:$0xff] }
 0x100   : > { %2028 = vmatprep.mubr.f32.mxu0 %v1536_v62  ;;  %2333 = vmatprep.mubr.f32.mxu1 %v6048_v31  ;;  %v6268_v31 = vsel %vm529_vm1, %v634_v4, %v636_v10  ;;  %v7847_v62 = vld [vmem:[#allocation83_spill] sm:$0xff]  ;;  %v4024_v10 = vpop.permute.xlu1 %4023  ;;  %v4020_v36 = vunpack.i.l.bf16 %v4019_v38  ;;  %v6288_v16 = vsel %vm1448_vm2, %v4265_v44, %v4010_v47 }
 0x101   : > { %1314 = vrot.lane.b32.xlu1 %v6247_v14, %s4392_s14  ;;  %v1538_v4 = vsel %vm1448_vm2, %v7847_v62, %v4006_v3  ;;  %v4021_v3 = vunpack.i.h.bf16 %v4019_v38  ;;  %v4026_v1 = vunpack.i.h.bf16 %v4024_v10  ;;  %v4025_v47 = vunpack.i.l.bf16 %v4024_v10  ;;  %v6370_v62 = vld [vmem:[%s4516_s9 + $0x2b0] sm:$0xff] }
 0x102   : > { %1316 = vrot.lane.b32.xlu0 %v6252_v9, %s4392_s14 }
 0x103   : > { %2029 = vmatmul.mubr.f32.gmra.mxu0 %v6257_v58  ;;  %2334 = vmatmul.mubr.f32.gmra.mxu1 %v1584_v26  ;;  %v1586_v26 = vsel %vm1448_vm2, %v7849_v37, %v4011_v41  ;;  %v4029_v29 = vpop.permute.xlu0 %4028  ;;  %v4266_v41 = vld [vmem:[%s4516_s9 + $0x100] sm:$0xff]  ;;  %v1540_v38 = vsel %vm1448_vm2, %v5681_v34, %v4021_v3  ;;  %v4267_v3 = vld [vmem:[%s4516_s9 + $0x108] sm:$0xff]  ;;  %v7860_v34 = vld [vmem:[#allocation99_spill] sm:$0xff] }
 0x104   : > { %2338 = vmatprep.mubr.f32.mxu1 %v6083_v52  ;;  %2033 = vmatprep.mubr.f32.mxu0 %v1537_v32  ;;  %v7848_v52 = vld [vmem:[#allocation62_spill] sm:$0xff]  ;;  %v1539_v32 = vsel %vm1448_vm2, %v5633_v42, %v4015_v57  ;;  %v4030_v44 = vunpack.i.l.bf16 %v4029_v29  ;;  %v4034_v37 = vpop.permute.xlu1 %4033 }
 0x105   : > { %1318 = vrot.lane.b32.xlu1 %v6268_v31, %s4392_s14 }
 0x106   : > { %1320 = vrot.lane.b32.xlu0 %v7848_v52, %s4392_s14 }
 0x107   : > { %2034 = vmatmul.mubr.f32.gmra.mxu0 %v6274_v13  ;;  %2339 = vmatmul.mubr.f32.gmra.mxu1 %v1585_v30  ;;  %v6302_v30 = vsel %vm1448_vm2, %v4266_v41, %v4016_v48  ;;  %v4039_v10 = vpop.permute.xlu0 %4038  ;;  %v4031_v48 = vunpack.i.h.bf16 %v4029_v29  ;;  %v7855_v41 = vld [vmem:[#allocation30_spill] sm:$0xff] }
 0x108   : > { %2038 = vmatprep.mubr.f32.mxu0 %v1538_v4  ;;  %2343 = vmatprep.mubr.f32.mxu1 %v6112_v59  ;;  %v7851_v59 = vld [vmem:[#allocation68_spill] sm:$0xff] }
 0x109   : > { %1322 = vrot.lane.b32.xlu1 %v7850_v2, %s4392_s14  ;;  %v7852_v4 = vld [vmem:[#allocation28_spill] sm:$0xff]  ;;  %v6322_v2 = vpop.permute.xlu1 %4043 }
 0x10a   : > { %1324 = vrot.lane.b32.xlu0 %v7851_v59, %s4392_s14  ;;  %v1587_v57 = vsel %vm1448_vm2, %v7852_v4, %v4020_v36  ;;  %v4035_v36 = vunpack.i.l.bf16 %v4034_v37  ;;  %v1588_v4 = vsel %vm1448_vm2, %v7855_v41, %v4026_v1  ;;  %v7858_v1 = vld [vmem:[#allocation76_spill] sm:$0xff]  ;;  %v4046_v46 = vunpack.i.h.bf16 %v6322_v2 }
 0x10b   : > { %2039 = vmatmul.mubr.f32.gmra.mxu0 %v6288_v16  ;;  %2344 = vmatmul.mubr.f32.gmra.mxu1 %v1586_v26  ;;  %v7853_v26 = vld [vmem:[#allocation70_spill] sm:$0xff] }
 0x10c   : > { %2348 = vmatprep.mubr.f32.mxu1 %v6139_v28  ;;  %2043 = vmatprep.mubr.f32.mxu0 %v1539_v32  ;;  %v7854_v28 = vld [vmem:[#allocation72_spill] sm:$0xff]  ;;  %v6316_v32 = vsel %vm1448_vm2, %v4267_v3, %v4025_v47  ;;  %v6331_v47 = vld [vmem:[%s4516_s9 + $0x288] sm:$0xff] }
 0x10d   : > { %1326 = vrot.lane.b32.xlu1 %v7853_v26, %s4392_s14  ;;  %v4036_v26 = vunpack.i.h.bf16 %v4034_v37  ;;  %v4040_v37 = vunpack.i.l.bf16 %v4039_v10  ;;  %v4270_v3 = vld [vmem:[%s4516_s9 + $0x118] sm:$0xff] }
 0x10e   : > { %1328 = vrot.lane.b32.xlu0 %v7854_v28, %s4392_s14  ;;  %v7856_v28 = vld [vmem:[#allocation95_spill] sm:$0xff]  ;;  %v6340_v41 = vsel %vm1448_vm2, %v4270_v3, %v4031_v48  ;;  %v7863_v3 = vld [vmem:[#allocation84_spill] sm:$0xff] }
 0x10f   : > { %2044 = vmatmul.mubr.f32.gmra.mxu0 %v6302_v30  ;;  %2349 = vmatmul.mubr.f32.gmra.mxu1 %v1587_v57  ;;  %v1541_v59 = vsel %vm1448_vm2, %v7856_v28, %v4030_v44  ;;  %v7857_v57 = vld [vmem:[#allocation74_spill] sm:$0xff]  ;;  %v4041_v44 = vunpack.i.h.bf16 %v4039_v10  ;;  %v6345_v28 = vld [vmem:[%s4516_s9 + $0x290] sm:$0xff]  ;;  %v4049_v10 = vpop.permute.xlu0 %4048 }
 0x110   : > { %2048 = vmatprep.mubr.f32.mxu0 %v1540_v38  ;;  %2353 = vmatprep.mubr.f32.mxu1 %v6163_v33  ;;  %v6327_v33 = vld [vmem:[%s4516_s9 + $0x280] sm:$0xff]  ;;  %v744_v38 = vrot.slane %v6331_v47, 1  ;;  %v4050_v22 = vunpack.i.l.bf16 %v4049_v10 }
 0x111   : > { %1330 = vrot.lane.b32.xlu1 %v7857_v57, %s4392_s14  ;;  %v743_v29 = vrot.slane %v6327_v33, 1  ;;  %v7859_v57 = vld [vmem:[#allocation32_spill] sm:$0xff]  ;;  %v816_v42 = vrot.slane %v6327_v33, 2 }
 0x112   : > { %1332 = vrot.lane.b32.xlu0 %v7858_v1, %s4392_s14  ;;  %v1589_v52 = vsel %vm1448_vm2, %v7859_v57, %v4035_v36  ;;  %v746_v1 = vrot.slane %v6345_v28, 1  ;;  %v6357_v36 = vld [vmem:[%s4516_s9 + $0x298] sm:$0xff] }
 0x113   : > { %2049 = vmatmul.mubr.f32.gmra.mxu0 %v6316_v32  ;;  %2354 = vmatmul.mubr.f32.gmra.mxu1 %v1588_v4  ;;  %v7861_v4 = vld [vmem:[#allocation80_spill] sm:$0xff]  ;;  %v6354_v48 = vsel %vm384_vm0, %v743_v29, %v744_v38  ;;  %v748_v57 = vrot.slane %v6357_v36, 1  ;;  %v299_v29 = vld [vmem:[%s4516_s9 + $0x2a8] sm:$0xff] }
 0x114   : > { %2358 = vmatprep.mubr.f32.mxu1 %v6188_v23  ;;  %2053 = vmatprep.mubr.f32.mxu0 %v1541_v59  ;;  %v1542_v23 = vsel %vm1448_vm2, %v7860_v34, %v4036_v26  ;;  %v4045_v59 = vunpack.i.l.bf16 %v6322_v2  ;;  %7862 = vst [vmem:[#allocation10_spill] sm:$0xff] %v6354_v48  ;;  %v6365_v34 = vld [vmem:[%s4516_s9 + $0x2a0] sm:$0x3]  ;;  %v6383_v7 = vsel %vm384_vm0, %v744_v38, %v746_v1  ;;  %v6387_v2 = vpop.permute.xlu0 %4058  ;;  %v830_v38 = vrot.slane %v299_v29, 1 }
 0x115   : > { %1334 = vrot.lane.b32.xlu1 %v7861_v4, %s4392_s14  ;;  %v4054_v4 = vpop.permute.xlu1 %4053  ;;  %v7864_v26 = vld [vmem:[#allocation33_spill] sm:$0xff]  ;;  %7866 = vst [vmem:[#allocation12_spill] sm:$0xff] %v6383_v7  ;;  %v1591_v29 = vsel %vm1448_vm2, %v7871_v20, %v4050_v22  ;;  %v7873_v22 = vrot.slane %v6331_v47, 2 }
 0x116   : > { %1336 = vrot.lane.b32.xlu0 %v7863_v3, %s4392_s14  ;;  %v4273_v3 = vld [vmem:[%s4516_s9 + $0x120] sm:$0xff]  ;;  %v1590_v63 = vsel %vm1448_vm2, %v7864_v26, %v4041_v44  ;;  %v750_v44 = vrot.slane %v6365_v34, 1  ;;  %v7870_v26 = vld [vmem:[#allocation92_spill] sm:$0xff] }
 0x117   : > { %2054 = vmatmul.mubr.f32.gmra.mxu0 %v6340_v41  ;;  %2359 = vmatmul.mubr.f32.gmra.mxu1 %v1589_v52  ;;  %v6376_v33 = vsel %vm1448_vm2, %v4273_v3, %v4040_v37  ;;  %v7865_v52 = vld [vmem:[#allocation101_spill] sm:$0xff]  ;;  %v7868_v37 = vld [vmem:[#allocation88_spill] sm:$0xff]  ;;  %v6392_v3 = vsel %vm384_vm0, %v746_v1, %v748_v57  ;;  %v4056_v1 = vunpack.i.h.bf16 %v4054_v4 }
 0x118   : > { %2058 = vmatprep.mubr.f32.mxu0 %v1542_v23  ;;  %2363 = vmatprep.mubr.f32.mxu1 %v6214_v61  ;;  %v4177_v21 = vpack.i.bf16 %v7865_v52, %v6354_v48  ;;  %v4051_v23 = vunpack.i.h.bf16 %v4049_v10  ;;  %v1543_v61 = vsel %vm1448_vm2, %v7867_v39, %v4045_v59  ;;  %7869 = vst [vmem:[#allocation14_spill] sm:$0xff] %v6392_v3  ;;  %v831_v10 = vrot.slane %v6370_v62, 1  ;;  %v301_v48 = vld [vmem:[%s4516_s9 + $0x2b8] sm:$0xff] }
 0x119   : > { %1338 = vrot.lane.b32.xlu1 %v7868_v37, %s4392_s14  ;;  %v819_v59 = vrot.slane %v6345_v28, 2  ;;  %v4055_v52 = vunpack.i.l.bf16 %v4054_v4  ;;  %v4274_v37 = vld [vmem:[%s4516_s9 + $0x128] sm:$0xff]  ;;  %v4182_v62 = vpack.i.bf16 %v5914_v6, %v6383_v7  ;;  %v4060_v28 = vunpack.i.l.bf16 %v6387_v2  ;;  %v4064_v4 = vpop.permute.xlu1 %4063  ;;  %v4069_v7 = vpop.permute.xlu0 %4068 }
 0x11a   : > { %1340 = vrot.lane.b32.xlu0 %v7870_v26, %s4392_s14  ;;  %v6404_v39 = vsel %vm1448_vm2, %v4274_v37, %v4046_v46  ;;  %v302_v26 = vld [vmem:[%s4516_s9 + $0x2c0] sm:$0xff]  ;;  %v6419_v20 = vsel %vm384_vm0, %v748_v57, %v750_v44  ;;  %v832_v37 = vsel %vm384_vm0, %v830_v38, %v831_v10  ;;  %v303_v6 = vld [vmem:[%s4516_s9 + $0x2c8] sm:$0x3]  ;;  %v4065_v57 = vunpack.i.l.bf16 %v4064_v4  ;;  %v4275_v44 = vld [vmem:[%s4516_s9 + $0x130] sm:$0xff] }
 0x11b   : > { %2059 = vmatmul.mubr.f32.gmra.mxu0 %v6376_v33  ;;  %2364 = vmatmul.mubr.f32.gmra.mxu1 %v1590_v63  ;;  %v4187_v63 = vpack.i.bf16 %v5959_v8, %v6392_v3  ;;  %v7872_v46 = vld [vmem:[#allocation97_spill] sm:$0xff]  ;;  %v821_v3 = vrot.slane %v6357_v36, 2  ;;  %v835_v8 = vrot.slane %v302_v26, 1  ;;  %v7874_v38 = vld [vmem:[#allocation35_spill] sm:$0xff]  ;;  %v4192_v36 = vpack.i.bf16 %v6017_v27, %v6419_v20 }
 0x11c   : > { %2368 = vmatprep.mubr.f32.mxu1 %v6236_v15  ;;  %2063 = vmatprep.mubr.f32.mxu0 %v1543_v61  ;;  %v1544_v15 = vsel %vm1448_vm2, %v5928_v0, %v4051_v23  ;;  %v6425_v61 = vsel %vm529_vm1, %v816_v42, %v7873_v22  ;;  %v833_v23 = vrot.slane %v301_v48, 1  ;;  %v6435_v42 = vsel %vm1448_vm2, %v4275_v44, %v4055_v52 }
 0x11d   : > { %1342 = vrot.lane.b32.xlu1 %v7872_v46, %s4392_s14  ;;  %v1592_v48 = vsel %vm1448_vm2, %v7874_v38, %v4056_v1  ;;  %v1545_v26 = vsel %vm1448_vm2, %v5981_v24, %v4060_v28  ;;  %v7875_v52 = vmov %v7873_v22  ;;  %v837_v22 = vrot.slane %v303_v6, 1  ;;  %v4079_v38 = vpop.permute.xlu0 %4078 }
 0x11e   : > { %4178 = vrot.lane.b32.xlu0 %v4177_v21, %s4392_s14  ;;  %v4061_v21 = vunpack.i.h.bf16 %v6387_v2  ;;  %v6449_v2 = vsel %vm529_vm1, %v7875_v52, %v819_v59  ;;  %v834_v1 = vsel %vm384_vm0, %v831_v10, %v833_v23  ;;  %v6455_v28 = vsel %vm529_vm1, %v819_v59, %v821_v3  ;;  %v7876_v10 = vld [vmem:[#allocation36_spill] sm:$0xff] }
 0x11f   : > { %2064 = vmatmul.mubr.f32.gmra.mxu0 %v6404_v39  ;;  %2369 = vmatmul.mubr.f32.gmra.mxu1 %v1591_v29  ;;  %v4066_v29 = vunpack.i.h.bf16 %v4064_v4  ;;  %v823_v4 = vrot.slane %v6365_v34, 2  ;;  %v4071_v47 = vunpack.i.h.bf16 %v4069_v7  ;;  %v1593_v34 = vsel %vm1448_vm2, %v7876_v10, %v4065_v57 }
 0x120   : > { %2068 = vmatprep.mubr.f32.mxu0 %v1544_v15  ;;  %2373 = vmatprep.mubr.f32.mxu1 %v6257_v58  ;;  %v4074_v15 = vpop.permute.xlu1 %4073  ;;  %v4197_v58 = vpack.i.bf16 %v6425_v61, %v832_v37  ;;  %v4276_v37 = vld [vmem:[%s4516_s9 + $0x140] sm:$0xff]  ;;  %v4081_v52 = vunpack.i.h.bf16 %v4079_v38 }
 0x121   : > { %4183 = vrot.lane.b32.xlu1 %v4182_v62, %s4392_s14  ;;  %v836_v62 = vsel %vm384_vm0, %v833_v23, %v835_v8  ;;  %v6461_v44 = vsel %vm1448_vm2, %v4276_v37, %v4061_v21  ;;  %v1546_v6 = vsel %vm1448_vm2, %v6031_v51, %v4066_v29  ;;  %v4075_v59 = vunpack.i.l.bf16 %v4074_v15  ;;  %v4277_v29 = vld [vmem:[%s4516_s9 + $0x148] sm:$0xff] }
 0x122   : > { %4188 = vrot.lane.b32.xlu0 %v4187_v63, %s4392_s14  ;;  %v4070_v63 = vunpack.i.l.bf16 %v4069_v7  ;;  %v4207_v7 = vpack.i.bf16 %v6455_v28, %v836_v62  ;;  %v6472_v23 = vsel %vm529_vm1, %v821_v3, %v823_v4  ;;  %v838_v21 = vsel %vm384_vm0, %v835_v8, %v837_v22  ;;  %v4278_v22 = vld [vmem:[%s4516_s9 + $0x150] sm:$0xff] }
 0x123   : > { %2069 = vmatmul.mubr.f32.gmra.mxu0 %v6435_v42  ;;  %2374 = vmatmul.mubr.f32.gmra.mxu1 %v1592_v48  ;;  %v4076_v48 = vunpack.i.h.bf16 %v4074_v15  ;;  %v1547_v8 = vsel %vm1448_vm2, %v6063_v45, %v4075_v59  ;;  %v1548_v37 = vsel %vm1448_vm2, %v6078_v5, %v4081_v52 }
 0x124   : > { %2378 = vmatprep.mubr.f32.mxu1 %v6274_v13  ;;  %2073 = vmatprep.mubr.f32.mxu0 %v1545_v26  ;;  %v4202_v13 = vpack.i.bf16 %v6449_v2, %v834_v1  ;;  %v4084_v57 = vpop.permute.xlu1 %4083  ;;  %v6479_v26 = vsel %vm1448_vm2, %v4277_v29, %v4070_v63  ;;  %v4212_v1 = vpack.i.bf16 %v6472_v23, %v838_v21 }
 0x125   : > { %4193 = vrot.lane.b32.xlu1 %v4192_v36, %s4392_s14  ;;  %v4080_v36 = vunpack.i.l.bf16 %v4079_v38  ;;  %v4085_v15 = vunpack.i.l.bf16 %v4084_v57  ;;  %v6492_v62 = vsel %vm1448_vm2, %v4278_v22, %v4076_v48  ;;  %v4279_v38 = vld [vmem:[%s4516_s9 + $0x158] sm:$0xff] }
 0x126   : > { %4198 = vrot.lane.b32.xlu0 %v4197_v58, %s4392_s14  ;;  %v7877_v58 = vld [vmem:[#allocation38_spill] sm:$0xff] }
 0x127   : > { %2074 = vmatmul.mubr.f32.gmra.mxu0 %v6461_v44  ;;  %2379 = vmatmul.mubr.f32.gmra.mxu1 %v1593_v34  ;;  %v1594_v3 = vsel %vm1448_vm2, %v7877_v58, %v4071_v47  ;;  %v7878_v47 = vld [vmem:[#allocation40_spill] sm:$0xff] }
 0x128   : > { %2078 = vmatprep.mubr.f32.mxu0 %v1546_v6  ;;  %2383 = vmatprep.mubr.f32.mxu1 %v6288_v16  ;;  %v4086_v16 = vunpack.i.h.bf16 %v4084_v57  ;;  %v1595_v63 = vsel %vm1448_vm2, %v7878_v47, %v4080_v36 }
 0x129   : > { %4203 = vrot.lane.b32.xlu1 %v4202_v13, %s4392_s14  ;;  %v6503_v13 = vsel %vm1448_vm2, %v4279_v38, %v4085_v15  ;;  %v7881_v15 = vld [vmem:[#allocation46_spill] sm:$0xff] }
 0x12a   : > { %v4089_v4 = vpop.permute.xlu0 %4088  ;;  %4208 = vrot.lane.b32.xlu0 %v4207_v7, %s4392_s14  ;;  %v7879_v7 = vld [vmem:[#allocation42_spill] sm:$0xff] }
 0x12b   : > { %2079 = vmatmul.mubr.f32.gmra.mxu0 %v6479_v26  ;;  %2384 = vmatmul.mubr.f32.gmra.mxu1 %v1594_v3  ;;  %v4090_v10 = vunpack.i.l.bf16 %v4089_v4  ;;  %v4094_v34 = vpop.permute.xlu1 %4093  ;;  %v4091_v6 = vunpack.i.h.bf16 %v4089_v4  ;;  %v1596_v21 = vsel %vm1448_vm2, %v7879_v7, %v4086_v16  ;;  %v7880_v3 = vld [vmem:[#allocation44_spill] sm:$0xff] }
 0x12c   : > { %2388 = vmatprep.mubr.f32.mxu1 %v6302_v30  ;;  %2083 = vmatprep.mubr.f32.mxu0 %v1547_v8  ;;  %v4095_v59 = vunpack.i.l.bf16 %v4094_v34  ;;  %v4096_v57 = vunpack.i.h.bf16 %v4094_v34  ;;  %v7882_v34 = vld [vmem:[#allocation47_spill] sm:$0xff] }
 0x12d   : > { %4213 = vrot.lane.b32.xlu1 %v4212_v1, %s4392_s14  ;;  %v1549_v48 = vsel %vm1448_vm2, %v6126_v54, %v4090_v10  ;;  %v6513_v58 = vsel %vm1448_vm2, %v6101_v19, %v4091_v6 }
 0x12e   : > { %v1597_v52 = vsel %vm1448_vm2, %v7880_v3, %v4095_v59  ;;  %v1550_v8 = vsel %vm1448_vm2, %v6148_v12, %v4096_v57  ;;  %v7883_v57 = vld [vmem:[#allocation48_spill] sm:$0xff] }
 0x12f   : > { %2084 = vmatmul.mubr.f32.gmra.mxu0 %v6492_v62  ;;  %2389 = vmatmul.mubr.f32.gmra.mxu1 %v1595_v63  ;;  %v4099_v30 = vpop.permute.xlu0 %4098 }
 0x130   : > { %2088 = vmatprep.mubr.f32.mxu0 %v1548_v37  ;;  %2393 = vmatprep.mubr.f32.mxu1 %v6316_v32  ;;  %v4101_v32 = vunpack.i.h.bf16 %v4099_v30  ;;  %v4100_v29 = vunpack.i.l.bf16 %v4099_v30 }
 0x132   : > { %v6523_v19 = vsel %vm1448_vm2, %v6105_v60, %v4100_v29  ;;  %v1598_v22 = vsel %vm1448_vm2, %v7881_v15, %v4101_v32  ;;  %v7885_v15 = vld [vmem:[#allocation51_spill] sm:$0xff] }
 0x133   : > { %2089 = vmatmul.mubr.f32.gmra.mxu0 %v6503_v13  ;;  %2394 = vmatmul.mubr.f32.gmra.mxu1 %v1596_v21  ;;  %v4104_v36 = vpop.permute.xlu1 %4103 }
 0x134   : > { %2398 = vmatprep.mubr.f32.mxu1 %v6340_v41  ;;  %2093 = vmatprep.mubr.f32.mxu0 %v1549_v48  ;;  %v4105_v1 = vunpack.i.l.bf16 %v4104_v36  ;;  %v4109_v4 = vpop.permute.xlu0 %4108  ;;  %v4106_v41 = vunpack.i.h.bf16 %v4104_v36 }
 0x135   : > { %v4110_v16 = vunpack.i.l.bf16 %v4109_v4  ;;  %v4111_v63 = vunpack.i.h.bf16 %v4109_v4 }
 0x136   : > { %v1551_v37 = vsel %vm1448_vm2, %v6153_v40, %v4105_v1  ;;  %v6533_v60 = vsel %vm1448_vm2, %v6121_v17, %v4106_v41  ;;  %v4281_v41 = vld [vmem:[%s4516_s9 + $0x198] sm:$0xff] }
 0x137   : > { %2094 = vmatmul.mubr.f32.gmra.mxu0 %v6513_v58  ;;  %2399 = vmatmul.mubr.f32.gmra.mxu1 %v1597_v52  ;;  %v1599_v30 = vsel %vm1448_vm2, %v7882_v34, %v4110_v16  ;;  %v1552_v6 = vsel %vm1448_vm2, %v6174_v50, %v4111_v63  ;;  %v4280_v52 = vld [vmem:[%s4516_s9 + $0x190] sm:$0xff] }
 0x138   : > { %2098 = vmatprep.mubr.f32.mxu0 %v1550_v8  ;;  %2403 = vmatprep.mubr.f32.mxu1 %v6376_v33  ;;  %v4114_v47 = vpop.permute.xlu1 %4113  ;;  %v7884_v8 = vld [vmem:[#allocation49_spill] sm:$0xff] }
 0x139   : > { %v4116_v33 = vunpack.i.h.bf16 %v4114_v47  ;;  %v4115_v10 = vunpack.i.l.bf16 %v4114_v47 }
 0x13b   : > { %2099 = vmatmul.mubr.f32.gmra.mxu0 %v6523_v19  ;;  %2404 = vmatmul.mubr.f32.gmra.mxu1 %v1598_v22  ;;  %v6543_v17 = vsel %vm1448_vm2, %v6129_v53, %v4115_v10  ;;  %v1600_v48 = vsel %vm1448_vm2, %v7883_v57, %v4116_v33 }
 0x13c   : > { %2408 = vmatprep.mubr.f32.mxu1 %v6404_v39  ;;  %2103 = vmatprep.mubr.f32.mxu0 %v1551_v37 }
 0x13d   : > { %v4119_v59 = vpop.permute.xlu0 %4118 }
 0x13e   : > { %v4120_v38 = vunpack.i.l.bf16 %v4119_v59  ;;  %v4124_v7 = vpop.permute.xlu1 %4123  ;;  %v4121_v39 = vunpack.i.h.bf16 %v4119_v59  ;;  %v7886_v59 = vld [vmem:[#allocation53_spill] sm:$0xff] }
 0x13f   : > { %2104 = vmatmul.mubr.f32.gmra.mxu0 %v6533_v60  ;;  %2409 = vmatmul.mubr.f32.gmra.mxu1 %v1599_v30  ;;  %v4125_v21 = vunpack.i.l.bf16 %v4124_v7  ;;  %v4126_v36 = vunpack.i.h.bf16 %v4124_v7  ;;  %v4282_v30 = vld [vmem:[%s4516_s9 + $0x1a0] sm:$0xff] }
 0x140   : > { %2108 = vmatprep.mubr.f32.mxu0 %v1552_v6  ;;  %2413 = vmatprep.mubr.f32.mxu1 %v6435_v42  ;;  %v1553_v32 = vsel %vm1448_vm2, %v6179_v55, %v4120_v38  ;;  %v6553_v53 = vsel %vm1448_vm2, %v4280_v52, %v4121_v39 }
 0x141   : > { %v1601_v1 = vsel %vm1448_vm2, %v7884_v8, %v4125_v21  ;;  %v1554_v4 = vsel %vm1448_vm2, %v6199_v43, %v4126_v36 }
 0x142   : > { %v4129_v29 = vpop.permute.xlu0 %4128 }
 0x143   : > { %2109 = vmatmul.mubr.f32.gmra.mxu0 %v6543_v17  ;;  %2414 = vmatmul.mubr.f32.gmra.mxu1 %v1600_v48  ;;  %v4131_v42 = vunpack.i.h.bf16 %v4129_v29  ;;  %v4130_v3 = vunpack.i.l.bf16 %v4129_v29  ;;  %v7887_v48 = vld [vmem:[#allocation55_spill] sm:$0xff] }
 0x144   : > { %2418 = vmatprep.mubr.f32.mxu1 %v6461_v44  ;;  %2113 = vmatprep.mubr.f32.mxu0 %v1553_v32 }
 0x145   : > { %v6563_v16 = vsel %vm1448_vm2, %v4281_v41, %v4130_v3  ;;  %v1602_v22 = vsel %vm1448_vm2, %v7885_v15, %v4131_v42 }
 0x147   : > { %2114 = vmatmul.mubr.f32.gmra.mxu0 %v6553_v53  ;;  %2419 = vmatmul.mubr.f32.gmra.mxu1 %v1601_v1  ;;  %v4284_v1 = vld [vmem:[%s4516_s9 + $0x1b8] sm:$0xff] }
 0x148   : > { %2118 = vmatprep.mubr.f32.mxu0 %v1554_v4  ;;  %2423 = vmatprep.mubr.f32.mxu1 %v6479_v26  ;;  %v4134_v44 = vpop.permute.xlu1 %4133 }
 0x149   : > { %v4136_v47 = vunpack.i.h.bf16 %v4134_v44  ;;  %v4135_v63 = vunpack.i.l.bf16 %v4134_v44  ;;  %v4139_v37 = vpop.permute.xlu0 %4138  ;;  %v7888_v44 = vld [vmem:[#allocation57_spill] sm:$0xff] }
 0x14a   : > { %v4141_v33 = vunpack.i.h.bf16 %v4139_v37  ;;  %v4140_v10 = vunpack.i.l.bf16 %v4139_v37  ;;  %v4285_v37 = vld [vmem:[%s4516_s9 + $0x1c0] sm:$0xff] }
 0x14b   : > { %2119 = vmatmul.mubr.f32.gmra.mxu0 %v6563_v16  ;;  %2424 = vmatmul.mubr.f32.gmra.mxu1 %v1602_v22  ;;  %v1555_v26 = vsel %vm1448_vm2, %v6204_v35, %v4135_v63  ;;  %v6573_v6 = vsel %vm1448_vm2, %v4282_v30, %v4136_v47 }
 0x14c   : > { %2428 = vmatprep.mubr.f32.mxu1 %v6492_v62  ;;  %2123 = vmatprep.mubr.f32.mxu0 %v1555_v26  ;;  %v4144_v34 = vpop.permute.xlu1 %4143  ;;  %v1603_v38 = vsel %vm1448_vm2, %v7886_v59, %v4140_v10  ;;  %v1556_v21 = vsel %vm1448_vm2, %v6225_v49, %v4141_v33  ;;  %v4283_v62 = vld [vmem:[%s4516_s9 + $0x1a8] sm:$0xff]  ;;  %v7889_v10 = vld [vmem:[#allocation59_spill] sm:$0xff] }
 0x14d   : > { %v4146_v7 = vunpack.i.h.bf16 %v4144_v34  ;;  %v4145_v39 = vunpack.i.l.bf16 %v4144_v34 }
 0x14f   : > { %2124 = vmatmul.mubr.f32.gmra.mxu0 %v6573_v6  ;;  %2429 = vmatmul.mubr.f32.gmra.mxu1 %v1603_v38  ;;  %v6583_v57 = vsel %vm1448_vm2, %v4283_v62, %v4145_v39  ;;  %v1604_v36 = vsel %vm1448_vm2, %v7887_v48, %v4146_v7  ;;  %v4286_v39 = vld [vmem:[%s4516_s9 + $0x1c8] sm:$0xff] }
 0x150   : > { %2128 = vmatprep.mubr.f32.mxu0 %v1556_v21  ;;  %2433 = vmatprep.mubr.f32.mxu1 %v6503_v13 }
 0x151   : > { %v4149_v32 = vpop.permute.xlu0 %4148 }
 0x152   : > { %v4151_v29 = vunpack.i.h.bf16 %v4149_v32  ;;  %v4150_v42 = vunpack.i.l.bf16 %v4149_v32  ;;  %v4154_v3 = vpop.permute.xlu1 %4153  ;;  %v7891_v32 = vld [vmem:[#allocation61_spill] sm:$0xff] }
 0x153   : > { %v4156_v52 = vunpack.i.h.bf16 %v4154_v3  ;;  %v4155_v8 = vunpack.i.l.bf16 %v4154_v3  ;;  %2129 = vmatmul.mubr.f32.gmra.mxu0 %v6583_v57  ;;  %2434 = vmatmul.mubr.f32.gmra.mxu1 %v1604_v36 }
 0x154   : > { %2438 = vmatprep.mubr.f32.mxu1 %v6513_v58  ;;  %v1557_v13 = vsel %vm1448_vm2, %v6230_v11, %v4150_v42  ;;  %v6593_v4 = vsel %vm1448_vm2, %v4284_v1, %v4151_v29 }
 0x155   : > { %2133 = vmatprep.mubr.f32.mxu0 %v1557_v13  ;;  %v1605_v41 = vsel %vm1448_vm2, %v7888_v44, %v4155_v8  ;;  %v1558_v15 = vsel %vm1448_vm2, %v6247_v14, %v4156_v52  ;;  %v4287_v13 = vld [vmem:[%s4516_s9 + $0x1d0] sm:$0xff]  ;;  %v7892_v44 = vld [vmem:[#allocation64_spill] sm:$0xff] }
 0x157   : > { %v4159_v22 = vpop.permute.xlu0 %4158  ;;  %2134 = vmatmul.mubr.f32.gmra.mxu0 %v6593_v4  ;;  %2439 = vmatmul.mubr.f32.gmra.mxu1 %v1605_v41 }
 0x158   : > { %v4161_v47 = vunpack.i.h.bf16 %v4159_v22  ;;  %v4160_v58 = vunpack.i.l.bf16 %v4159_v22  ;;  %2138 = vmatprep.mubr.f32.mxu0 %v1558_v15  ;;  %2443 = vmatprep.mubr.f32.mxu1 %v6523_v19 }
 0x15a   : > { %v4164_v63 = vpop.permute.xlu1 %4163  ;;  %v6603_v33 = vsel %vm1448_vm2, %v4285_v37, %v4160_v58  ;;  %v1606_v26 = vsel %vm1448_vm2, %v7889_v10, %v4161_v47 }
 0x15b   : > { %v4166_v34 = vunpack.i.h.bf16 %v4164_v63  ;;  %v4165_v30 = vunpack.i.l.bf16 %v4164_v63  ;;  %v4169_v59 = vpop.permute.xlu0 %4168  ;;  %2139 = vmatmul.mubr.f32.gmra.mxu0 %v6603_v33  ;;  %2444 = vmatmul.mubr.f32.gmra.mxu1 %v1606_v26  ;;  %v7894_v63 = vld [vmem:[#allocation37_spill] sm:$0xff] }
 0x15c   : > { %v4171_v38 = vunpack.i.h.bf16 %v4169_v59  ;;  %v4170_v7 = vunpack.i.l.bf16 %v4169_v59  ;;  %2448 = vmatprep.mubr.f32.mxu1 %v6533_v60  ;;  %v7897_v59 = vld [vmem:[#allocation39_spill] sm:$0xff] }
 0x15d   : > { %v1559_v19 = vsel %vm1448_vm2, %v6252_v9, %v4165_v30  ;;  %v6613_v21 = vsel %vm1448_vm2, %v4286_v39, %v4166_v34  ;;  %v6615_v62 = vpop.f32.mrf.mxu0  ;;  %v6617_v48 = vpop.f32.mrf.mxu1 }
 0x15e   : > { %7890 = vst [vmem:[#allocation16_spill] sm:$0xff] %v6617_v48  ;;  %2143 = vmatprep.mubr.f32.mxu0 %v1559_v19  ;;  %v4174_v36 = vpop.permute.xlu1 %4173  ;;  %v1607_v29 = vsel %vm1448_vm2, %v7891_v32, %v4170_v7  ;;  %v1560_v60 = vsel %vm1448_vm2, %v6268_v31, %v4171_v38  ;;  %v7899_v7 = vld [vmem:[#allocation82_spill] sm:$0xff] }
 0x15f   : > { %v4176_v42 = vunpack.i.h.bf16 %v4174_v36  ;;  %v4175_v3 = vunpack.i.l.bf16 %v4174_v36  ;;  %2144 = vmatmul.mubr.f32.gmra.mxu0 %v6613_v21  ;;  %2449 = vmatmul.mubr.f32.gmra.mxu1 %v1607_v29  ;;  %v1917_v52 = vpop.f32.mrf.mxu0  ;;  %v2157_v8 = vpop.f32.mrf.mxu1 }
 0x160   : > { %2148 = vmatprep.mubr.f32.mxu0 %v1560_v60  ;;  %2453 = vmatprep.mubr.f32.mxu1 %v6543_v17  ;;  %v1297_v15 = vpop.permute.xlu0 %1296  ;;  %v7895_v17 = vld [vmem:[#allocation78_spill] sm:$0xff]  ;;  %v7901_v60 = vld [vmem:[#allocation43_spill] sm:$0xff] }
 0x161   : > { %v6627_v1 = vsel %vm1448_vm2, %v4287_v13, %v4175_v3  ;;  %v1608_v41 = vsel %vm1448_vm2, %v7892_v44, %v4176_v42  ;;  %v6631_v22 = vpop.f32.mrf.mxu0  ;;  %v1609_v37 = vsel %vm1448_vm2, %v7895_v17, %v1297_v15  ;;  %v7903_v3 = vld [vmem:[#allocation85_spill] sm:$0xff] }
 0x162   : > { %v6633_v47 = vpop.f32.mrf.mxu1 }
 0x163   : > { %7893 = vst [vmem:[#allocation18_spill] sm:$0xff] %v6633_v47  ;;  %2149 = vmatmul.mubr.f32.gmra.mxu0 %v6627_v1  ;;  %2454 = vmatmul.mubr.f32.gmra.mxu1 %v1608_v41  ;;  %v1922_v58 = vpop.f32.mrf.mxu0  ;;  %v1299_v26 = vpop.permute.xlu1 %1298  ;;  %v4295_v47 = vld [vmem:[%s4516_s9 + $0x2c0] sm:$0xff] }
 0x164   : > { %2458 = vmatprep.mubr.f32.mxu1 %v6553_v53  ;;  %3541 = vmatprep.mubr.msk.f32.mxu0 %vm1448_vm2, %v7894_v63  ;;  %v2162_v10 = vpop.f32.mrf.mxu1  ;;  %v7898_v53 = vld [vmem:[#allocation41_spill] sm:$0xff]  ;;  %v1610_v19 = vsel %vm1448_vm2, %v7899_v7, %v1299_v26  ;;  %v1301_v36 = vpop.permute.xlu0 %1300  ;;  %v7909_v7 = vld [vmem:[#allocation52_spill] sm:$0xff] }
 0x165   : > { %v6641_v34 = vpop.f32.mrf.mxu0  ;;  %v1611_v52 = vsel %vm1448_vm2, %v7903_v3, %v1301_v36  ;;  %v7914_v3 = vld [vmem:[#allocation58_spill] sm:$0xff] }
 0x166   : > { %v6643_v30 = vpop.f32.mrf.mxu1 }
 0x167   : > { %7896 = vst [vmem:[#allocation20_spill] sm:$0xff] %v6643_v30  ;;  %2459 = vmatmul.mubr.f32.gmra.mxu1 %v1609_v37  ;;  %3542 = vmatmul.mubr.msk.f32.vlgmr.msra.gmra.mxu0 %vm1448_vm2, %v7897_v59  ;;  %v1927_v38 = vpop.f32.mrf.mxu0  ;;  %v1303_v13 = vpop.permute.xlu1 %1302 }
 0x168   : > { %2463 = vmatprep.mubr.f32.mxu1 %v6563_v16  ;;  %3544 = vmatprep.mubr.msk.f32.mxu0 %vm1448_vm2, %v7898_v53  ;;  %v2167_v39 = vpop.f32.mrf.mxu1  ;;  %v7902_v16 = vld [vmem:[#allocation45_spill] sm:$0xff]  ;;  %v1305_v17 = vpop.permute.xlu0 %1304 }
 0x169   : > { %v6652_v32 = vpop.f32.mrf.mxu0 }
 0x16a   : > { %v6654_v29 = vpop.f32.mrf.mxu1 }
 0x16b   : > { %7900 = vst [vmem:[#allocation22_spill] sm:$0xff] %v6654_v29  ;;  %2464 = vmatmul.mubr.f32.gmra.mxu1 %v1610_v19  ;;  %3545 = vmatmul.mubr.msk.f32.gmra.mxu0 %vm1448_vm2, %v7901_v60  ;;  %v1932_v42 = vpop.f32.mrf.mxu0  ;;  %v1307_v38 = vpop.permute.xlu1 %1306 }
 0x16c   : > { %2468 = vmatprep.mubr.f32.mxu1 %v6573_v6  ;;  %3547 = vmatprep.mubr.msk.f32.mxu0 %vm1448_vm2, %v7902_v16  ;;  %v2172_v8 = vpop.f32.mrf.mxu1  ;;  %v7905_v6 = vld [vmem:[#allocation89_spill] sm:$0xff]  ;;  %v1309_v60 = vpop.permute.xlu0 %1308  ;;  %v7913_v16 = vld [vmem:[#allocation56_spill] sm:$0xff] }
 0x16d   : > { %v6663_v44 = vpop.f32.mrf.mxu0  ;;  %v1612_v58 = vsel %vm1448_vm2, %v7905_v6, %v1303_v13 }
 0x16e   : > { %v6665_v41 = vpop.f32.mrf.mxu1 }
 0x16f   : > { %7904 = vst [vmem:[#allocation24_spill] sm:$0xff] %v6665_v41  ;;  %2469 = vmatmul.mubr.f32.gmra.mxu1 %v1611_v52  ;;  %3548 = vmatmul.mubr.msk.f32.gmra.mxu0 %vm1448_vm2, %v5174_v18  ;;  %v1937_v15 = vpop.f32.mrf.mxu0  ;;  %v7915_v52 = vld [vmem:[#allocation102_spill] sm:$0xff] }
 0x170   : > { %2473 = vmatprep.mubr.f32.mxu1 %v6583_v57  ;;  %3550 = vmatprep.mubr.msk.f32.mxu0 %vm1448_vm2, %v5195_v56  ;;  %v2177_v63 = vpop.f32.mrf.mxu1  ;;  %v7907_v57 = vld [vmem:[#allocation50_spill] sm:$0xff]  ;;  %v1311_v15 = vpop.permute.xlu1 %1310 }
 0x171   : > { %v6674_v37 = vpop.f32.mrf.mxu0  ;;  %v7908_v56 = vld [vmem:[#allocation94_spill] sm:$0xff]  ;;  %v7917_v63 = vld [vmem:[#allocation60_spill] sm:$0xff] }
 0x172   : > { %v6676_v10 = vpop.f32.mrf.mxu1  ;;  %v1613_v26 = vsel %vm1448_vm2, %v7908_v56, %v1305_v17  ;;  %v7919_v17 = vld [vmem:[#allocation106_spill] sm:$0xff]  ;;  %v1313_v56 = vpop.permute.xlu0 %1312 }
 0x173   : > { %7906 = vst [vmem:[#allocation26_spill] sm:$0xff] %v6676_v10  ;;  %2474 = vmatmul.mubr.f32.gmra.mxu1 %v1612_v58  ;;  %3551 = vmatmul.mubr.msk.f32.gmra.mxu0 %vm1448_vm2, %v5203_v25  ;;  %v1942_v18 = vpop.f32.mrf.mxu0  ;;  %v7911_v25 = vld [vmem:[#allocation54_spill] sm:$0xff] }
 0x174   : > { %2478 = vmatprep.mubr.f32.mxu1 %v6593_v4  ;;  %3553 = vmatprep.mubr.msk.f32.mxu0 %vm1448_vm2, %v7907_v57  ;;  %v2182_v59 = vpop.f32.mrf.mxu1  ;;  %v7912_v4 = vld [vmem:[#allocation98_spill] sm:$0xff]  ;;  %v1616_v18 = vsel %vm1448_vm2, %v7919_v17, %v1311_v15 }
 0x175   : > { %v1614_v39 = vsel %vm1448_vm2, %v7912_v4, %v1307_v38  ;;  %v7921_v38 = vld [vmem:[#allocation65_spill] sm:$0xff] }
 0x176   : > { %v6685_v53 = vpop.f32.mrf.mxu0 }
 0x177   : > { %2479 = vmatmul.mubr.f32.gmra.mxu1 %v1613_v26  ;;  %3554 = vmatmul.mubr.msk.f32.gmra.mxu0 %vm1448_vm2, %v7909_v7  ;;  %v6689_v19 = vpop.f32.mrf.mxu1 }
 0x178   : > { %7910 = vst [vmem:[#allocation28_spill] sm:$0xff] %v6689_v19  ;;  %2483 = vmatprep.mubr.f32.mxu1 %v6603_v33  ;;  %3556 = vmatprep.mubr.msk.f32.mxu0 %vm1448_vm2, %v7911_v25  ;;  %v1947_v36 = vpop.f32.mrf.mxu0  ;;  %v1615_v33 = vsel %vm1448_vm2, %v7915_v52, %v1309_v60  ;;  %v7922_v25 = vld [vmem:[#allocation67_spill] sm:$0xff]  ;;  %v7927_v52 = vld [vmem:[#allocation69_spill] sm:$0xff] }
 0x179   : > { %v2187_v42 = vpop.f32.mrf.mxu1  ;;  %v1315_v36 = vpop.permute.xlu1 %1314 }
 0x17b   : > { %2484 = vmatmul.mubr.f32.gmra.mxu1 %v1614_v39  ;;  %3557 = vmatmul.mubr.msk.f32.gmra.mxu0 %vm1448_vm2, %v7913_v16  ;;  %v7924_v39 = vld [vmem:[#allocation79_spill] sm:$0xff] }
 0x17c   : > { %2488 = vmatprep.mubr.f32.mxu1 %v6613_v21  ;;  %3559 = vmatprep.mubr.msk.f32.mxu0 %vm1448_vm2, %v7914_v3  ;;  %v6703_v8 = vpop.f32.mrf.mxu0  ;;  %v6705_v13 = vpop.f32.mrf.mxu1  ;;  %v7918_v21 = vld [vmem:[#allocation63_spill] sm:$0xff] }
 0x17d   : > { %7916 = vst [vmem:[#allocation30_spill] sm:$0xff] %v6705_v13  ;;  %v7926_v16 = vld [vmem:[#allocation83_spill] sm:$0xff] }
 0x17e   : > { %v1952_v6 = vpop.f32.mrf.mxu0  ;;  %v2192_v58 = vpop.f32.mrf.mxu1 }
 0x17f   : > { %2489 = vmatmul.mubr.f32.gmra.mxu1 %v1615_v33  ;;  %3560 = vmatmul.mubr.msk.f32.gmra.mxu0 %vm1448_vm2, %v7917_v63  ;;  %v7928_v33 = vld [vmem:[#allocation111_spill] sm:$0xff]  ;;  %v1317_v63 = vpop.permute.xlu0 %1316 }
 0x180   : > { %2493 = vmatprep.mubr.f32.mxu1 %v6627_v1  ;;  %3562 = vmatprep.mubr.msk.f32.mxu0 %vm1448_vm2, %v7918_v21  ;;  %v6714_v57 = vpop.f32.mrf.mxu0  ;;  %v7923_v1 = vld [vmem:[#allocation109_spill] sm:$0xff]  ;;  %v1618_v15 = vsel %vm1448_vm2, %v7928_v33, %v1315_v36  ;;  %v7929_v6 = vld [vmem:[#allocation87_spill] sm:$0xff] }
 0x181   : > { %v6716_v26 = vpop.f32.mrf.mxu1  ;;  %v1617_v4 = vsel %vm1448_vm2, %v7923_v1, %v1313_v56 }
 0x182   : > { %7920 = vst [vmem:[#allocation32_spill] sm:$0xff] %v6716_v26  ;;  %v1957_v59 = vpop.f32.mrf.mxu0 }
 0x183   : > { %2494 = vmatmul.mubr.f32.gmra.mxu1 %v1616_v18  ;;  %3563 = vmatmul.mubr.msk.f32.gmra.mxu0 %vm1448_vm2, %v7921_v38  ;;  %v2197_v7 = vpop.f32.mrf.mxu1  ;;  %v7931_v18 = vld [vmem:[#allocation91_spill] sm:$0xff]  ;;  %v7933_v38 = vld [vmem:[#allocation112_spill] sm:$0xff] }
 0x184   : > { %2498 = vmatprep.mubr.f32.mxu1 %v7922_v25  ;;  %3565 = vmatprep.mubr.msk.f32.mxu0 %vm1448_vm2, %v7924_v39  ;;  %v7932_v59 = vld [vmem:[#allocation71_spill] sm:$0xff]  ;;  %v1619_v7 = vsel %vm1448_vm2, %v7933_v38, %v1317_v63 }
 0x185   : > { %v6725_v60 = vpop.f32.mrf.mxu0  ;;  %v7934_v25 = vld [vmem:[#allocation95_spill] sm:$0xff] }
 0x186   : > { %v6727_v42 = vpop.f32.mrf.mxu1  ;;  %v7935_v39 = vld [vmem:[#allocation99_spill] sm:$0xff] }
 0x187   : > { %7925 = vst [vmem:[#allocation33_spill] sm:$0xff] %v6727_v42  ;;  %2499 = vmatmul.mubr.f32.gmra.mxu1 %v1617_v4  ;;  %3566 = vmatmul.mubr.msk.f32.gmra.mxu0 %vm1448_vm2, %v7926_v16  ;;  %v1962_v3 = vpop.f32.mrf.mxu0  ;;  %v1319_v4 = vpop.permute.xlu1 %1318 }
 0x188   : > { %2503 = vmatprep.mubr.f32.mxu1 %v7927_v52  ;;  %3568 = vmatprep.mubr.msk.f32.mxu0 %vm1448_vm2, %v7929_v6  ;;  %v2202_v58 = vpop.f32.mrf.mxu1  ;;  %v7937_v3 = vld [vmem:[#allocation73_spill] sm:$0xff]  ;;  %v7938_v52 = vld [vmem:[#allocation114_spill] sm:$0xff]  ;;  %v1321_v6 = vpop.permute.xlu0 %1320 }
 0x189   : > { %v6736_v21 = vpop.f32.mrf.mxu0  ;;  %v1620_v33 = vsel %vm1448_vm2, %v7938_v52, %v1319_v4 }
 0x18a   : > { %v6738_v17 = vpop.f32.mrf.mxu1 }
 0x18b   : > { %7930 = vst [vmem:[#allocation34_spill] sm:$0xff] %v6738_v17  ;;  %2504 = vmatmul.mubr.f32.gmra.mxu1 %v1618_v15  ;;  %3569 = vmatmul.mubr.msk.f32.gmra.mxu0 %vm1448_vm2, %v7931_v18  ;;  %v1967_v56 = vpop.f32.mrf.mxu0  ;;  %v7939_v15 = vld [vmem:[#allocation103_spill] sm:$0xff] }
 0x18c   : > { %2508 = vmatprep.mubr.f32.mxu1 %v7932_v59  ;;  %3571 = vmatprep.mubr.msk.f32.mxu0 %vm1448_vm2, %v7934_v25  ;;  %v2207_v1 = vpop.f32.mrf.mxu1  ;;  %v7940_v18 = vld [vmem:[#allocation75_spill] sm:$0xff]  ;;  %v7941_v56 = vld [vmem:[#allocation5_spill] sm:$0xff]  ;;  %v1323_v25 = vpop.permute.xlu1 %1322 }
 0x18d   : > { %v1621_v59 = vsel %vm1448_vm2, %v7941_v56, %v1321_v6  ;;  %v1325_v52 = vpop.permute.xlu0 %1324  ;;  %v7946_v6 = vld [vmem:[#allocation81_spill] sm:$0xff] }
 0x18f   : > { %2509 = vmatmul.mubr.f32.gmra.mxu1 %v1619_v7  ;;  %3572 = vmatmul.mubr.msk.f32.gmra.mxu0 %vm1448_vm2, %v7935_v39  ;;  %v6749_v36 = vpop.f32.mrf.mxu0  ;;  %v6751_v16 = vpop.f32.mrf.mxu1  ;;  %v7944_v39 = vld [vmem:[#allocation6_spill] sm:$0xff] }
 0x190   : > { %7936 = vst [vmem:[#allocation97_spill] sm:$0xff] %v6751_v16  ;;  %2513 = vmatprep.mubr.f32.mxu1 %v7937_v3  ;;  %3574 = vmatprep.mubr.msk.f32.mxu0 %vm1448_vm2, %v7939_v15  ;;  %v1622_v3 = vsel %vm1448_vm2, %v7944_v39, %v1323_v25  ;;  %v7951_v25 = vld [vmem:[#allocation8_spill] sm:$0xff] }
 0x191   : > { %v1972_v58 = vpop.f32.mrf.mxu0  ;;  %v2212_v63 = vpop.f32.mrf.mxu1 }
 0x193   : > { %2514 = vmatmul.mubr.f32.gmra.mxu1 %v1620_v33  ;;  %3575 = vmatmul.mubr.msk.f32.gmra.mxu0 %vm1448_vm2, %v5928_v0  ;;  %v7943_v0 = vld [vmem:[#allocation77_spill] sm:$0xff] }
 0x194   : > { %2518 = vmatprep.mubr.f32.mxu1 %v7940_v18  ;;  %3577 = vmatprep.mubr.msk.f32.mxu0 %vm1448_vm2, %v5981_v24  ;;  %v6765_v38 = vpop.f32.mrf.mxu0  ;;  %v6767_v7 = vpop.f32.mrf.mxu1 }
 0x195   : > { %7942 = vst [vmem:[#allocation35_spill] sm:$0xff] %v6767_v7  ;;  %v1327_v18 = vpop.permute.xlu1 %1326 }
 0x196   : > { %v1977_v1 = vpop.f32.mrf.mxu0  ;;  %v2217_v4 = vpop.f32.mrf.mxu1 }
 0x197   : > { %2519 = vmatmul.mubr.f32.gmra.mxu1 %v1621_v59  ;;  %3578 = vmatmul.mubr.msk.f32.gmra.mxu0 %vm1448_vm2, %v6031_v51  ;;  %v7947_v51 = vld [vmem:[#allocation7_spill] sm:$0xff]  ;;  %v7950_v59 = vld [vmem:[#allocation86_spill] sm:$0xff]  ;;  %v1624_v1 = vsel %vm1448_vm2, %v7951_v25, %v1327_v18 }
 0x198   : > { %2523 = vmatprep.mubr.f32.mxu1 %v7943_v0  ;;  %3580 = vmatprep.mubr.msk.f32.mxu0 %vm1448_vm2, %v6063_v45  ;;  %v1623_v58 = vsel %vm1448_vm2, %v7947_v51, %v1325_v52 }
 0x199   : > { %v6776_v24 = vpop.f32.mrf.mxu0 }
 0x19a   : > { %v6778_v33 = vpop.f32.mrf.mxu1 }
 0x19b   : > { %7945 = vst [vmem:[#allocation36_spill] sm:$0xff] %v6778_v33  ;;  %2524 = vmatmul.mubr.f32.gmra.mxu1 %v1622_v3  ;;  %3581 = vmatmul.mubr.msk.f32.gmra.mxu0 %vm1448_vm2, %v6078_v5  ;;  %v1982_v15 = vpop.f32.mrf.mxu0  ;;  %v7954_v3 = vld [vmem:[#allocation9_spill] sm:$0xff] }
 0x19c   : > { %2528 = vmatprep.mubr.f32.mxu1 %v7946_v6  ;;  %v2222_v63 = vpop.f32.mrf.mxu1  ;;  %3583 = vmatprep.mubr.msk.f32.mxu0 %vm1448_vm2, %v6126_v54  ;;  %v1329_v54 = vpop.permute.xlu0 %1328  ;;  %v4288_v33 = vld [vmem:[%s4516_s9 + $0x280] sm:$0xff] }
 0x19d   : > { %v6787_v45 = vpop.f32.mrf.mxu0  ;;  %v1625_v52 = vsel %vm1448_vm2, %v7954_v3, %v1329_v54  ;;  %v1331_v15 = vpop.permute.xlu1 %1330  ;;  %v7956_v63 = vld [vmem:[#allocation11_spill] sm:$0xff] }
 0x19e   : > { %7948 = vst [vmem:[#allocation38_spill] sm:$0xff] %v6787_v45  ;;  %v6789_v56 = vpop.f32.mrf.mxu1  ;;  %v1626_v18 = vsel %vm1448_vm2, %v7956_v63, %v1331_v15 }
 0x19f   : > { %7949 = vst [vmem:[#allocation40_spill] sm:$0xff] %v6789_v56  ;;  %2529 = vmatmul.mubr.f32.gmra.mxu1 %v1623_v58  ;;  %3584 = vmatmul.mubr.msk.f32.gmra.mxu0 %vm1448_vm2, %v6148_v12  ;;  %v1987_v5 = vpop.f32.mrf.mxu0  ;;  %v7953_v12 = vld [vmem:[#allocation90_spill] sm:$0xff] }
 0x1a0   : > { %2533 = vmatprep.mubr.f32.mxu1 %v7950_v59  ;;  %v2227_v4 = vpop.f32.mrf.mxu1  ;;  %3586 = vmatprep.mubr.msk.f32.mxu0 %vm1448_vm2, %v6153_v40 }
 0x1a1   : > { %v7958_v4 = vld [vmem:[#allocation13_spill] sm:$0xff] }
 0x1a3   : > { %v6798_v0 = vpop.f32.mrf.mxu0  ;;  %v6800_v39 = vpop.f32.mrf.mxu1  ;;  %2534 = vmatmul.mubr.f32.gmra.mxu1 %v1624_v1  ;;  %3587 = vmatmul.mubr.msk.f32.gmra.mxu0 %vm1448_vm2, %v6174_v50  ;;  %v7955_v50 = vld [vmem:[#allocation93_spill] sm:$0xff] }
 0x1a4   : > { %7952 = vst [vmem:[#allocation42_spill] sm:$0xff] %v6800_v39  ;;  %2538 = vmatprep.mubr.f32.mxu1 %v7953_v12  ;;  %3589 = vmatprep.mubr.msk.f32.mxu0 %vm1448_vm2, %v6179_v55  ;;  %v1333_v55 = vpop.permute.xlu0 %1332 }
 0x1a5   : > { %v1992_v6 = vpop.f32.mrf.mxu0  ;;  %v2232_v40 = vpop.f32.mrf.mxu1  ;;  %v1627_v54 = vsel %vm1448_vm2, %v7958_v4, %v1333_v55 }
 0x1a6   : > { %v7960_v6 = vld [vmem:[#allocation15_spill] sm:$0xff] }
 0x1a7   : > { %v6809_v51 = vpop.f32.mrf.mxu0  ;;  %v6811_v58 = vpop.f32.mrf.mxu1  ;;  %2539 = vmatmul.mubr.f32.gmra.mxu1 %v1625_v52  ;;  %3590 = vmatmul.mubr.msk.f32.gmra.mxu0 %vm1448_vm2, %v6199_v43  ;;  %v7957_v43 = vld [vmem:[#allocation96_spill] sm:$0xff] }
 0x1a8   : > { %2543 = vmatprep.mubr.f32.mxu1 %v7955_v50  ;;  %3592 = vmatprep.mubr.msk.f32.mxu0 %vm1448_vm2, %v6204_v35  ;;  %v1335_v35 = vpop.permute.xlu1 %1334 }
 0x1a9   : > { %v1997_v5 = vpop.f32.mrf.mxu0  ;;  %v2302_v59 = vpop.f32.mrf.mxu1  ;;  %v1628_v40 = vsel %vm1448_vm2, %v7960_v6, %v1335_v35  ;;  %v7966_v6 = vld [vmem:[#allocation19_spill] sm:$0xff] }
 0x1aa   : > { %v7962_v5 = vld [vmem:[#allocation17_spill] sm:$0xff] }
 0x1ab   : > { %v6820_v25 = vpop.f32.mrf.mxu0  ;;  %v6822_v1 = vpop.f32.mrf.mxu1  ;;  %2544 = vmatmul.mubr.f32.gmra.mxu1 %v1626_v18  ;;  %3593 = vmatmul.mubr.msk.f32.gmra.mxu0 %vm1448_vm2, %v6225_v49  ;;  %v7959_v49 = vld [vmem:[#allocation100_spill] sm:$0xff] }
 0x1ac   : > { %2548 = vmatprep.mubr.f32.mxu1 %v7957_v43  ;;  %3595 = vmatprep.mubr.msk.f32.mxu0 %vm1448_vm2, %v6230_v11  ;;  %v1337_v11 = vpop.permute.xlu0 %1336  ;;  %v7963_v43 = vld [vmem:[#allocation62_spill] sm:$0xff] }
 0x1ad   : > { %v2002_v12 = vpop.f32.mrf.mxu0  ;;  %v2307_v3 = vpop.f32.mrf.mxu1  ;;  %v1629_v59 = vsel %vm1448_vm2, %v7962_v5, %v1337_v11  ;;  %v7967_v11 = vld [vmem:[#allocation68_spill] sm:$0xff] }
 0x1af   : > { %v6831_v52 = vpop.f32.mrf.mxu0  ;;  %v6833_v15 = vpop.f32.mrf.mxu1  ;;  %2549 = vmatmul.mubr.f32.gmra.mxu1 %v1627_v54  ;;  %3596 = vmatmul.mubr.msk.f32.gmra.mxu0 %vm1448_vm2, %v6247_v14  ;;  %v7961_v14 = vld [vmem:[#allocation104_spill] sm:$0xff] }
 0x1b0   : > { %2553 = vmatprep.mubr.f32.mxu1 %v7959_v49  ;;  %3598 = vmatprep.mubr.msk.f32.mxu0 %vm1448_vm2, %v6252_v9  ;;  %v1339_v9 = vpop.permute.xlu1 %1338  ;;  %v1341_v4 = vpop.permute.xlu0 %1340  ;;  %v7964_v49 = vld [vmem:[#allocation66_spill] sm:$0xff] }
 0x1b1   : > { %v2007_v50 = vpop.f32.mrf.mxu0  ;;  %v2312_v63 = vpop.f32.mrf.mxu1 }
 0x1b3   : > { %v6842_v18 = vpop.f32.mrf.mxu0  ;;  %v6844_v55 = vpop.f32.mrf.mxu1  ;;  %2554 = vmatmul.mubr.f32.gmra.mxu1 %v1628_v40  ;;  %3599 = vmatmul.mubr.msk.f32.gmra.mxu0 %vm1448_vm2, %v6268_v31  ;;  %v7965_v31 = vld [vmem:[#allocation108_spill] sm:$0xff]  ;;  %v1630_v40 = vsel %vm1448_vm2, %v7966_v6, %v1339_v9 }
 0x1b4   : > { %2558 = vmatprep.mubr.f32.mxu1 %v7961_v14  ;;  %3601 = vmatprep.mubr.msk.f32.mxu0 %vm1448_vm2, %v7963_v43  ;;  %v1343_v50 = vpop.permute.xlu1 %1342  ;;  %v4179_v5 = vpop.permute.xlu0 %4178 }
 0x1b5   : > { %v2012_v54 = vpop.f32.mrf.mxu0  ;;  %v2317_v35 = vpop.f32.mrf.mxu1 }
 0x1b6   : > { %v7969_v35 = vld [vmem:[#allocation110_spill] sm:$0xff] }
 0x1b7   : > { %v6853_v12 = vpop.f32.mrf.mxu0  ;;  %v6855_v3 = vpop.f32.mrf.mxu1  ;;  %2559 = vmatmul.mubr.f32.gmra.mxu1 %v1629_v59  ;;  %3602 = vmatmul.mubr.msk.f32.gmra.mxu0 %vm1448_vm2, %v7964_v49  ;;  %v7968_v59 = vld [vmem:[#allocation70_spill] sm:$0xff]  ;;  %v7970_v49 = vld [vmem:[#allocation21_spill] sm:$0xff] }
 0x1b8   : > { %2563 = vmatprep.mubr.f32.mxu1 %v7965_v31  ;;  %3604 = vmatprep.mubr.msk.f32.mxu0 %vm1448_vm2, %v7967_v11  ;;  %v1631_v9 = vsel %vm1448_vm2, %v7970_v49, %v1341_v4  ;;  %v7971_v31 = vld [vmem:[#allocation72_spill] sm:$0xff]  ;;  %v4181_v49 = vunpack.i.h.bf16 %v4179_v5 }
 0x1b9   : > { %v2017_v63 = vpop.f32.mrf.mxu0  ;;  %v2322_v14 = vpop.f32.mrf.mxu1 }
 0x1ba   : > { %v4180_v63 = vunpack.i.l.bf16 %v4179_v5  ;;  %v4184_v14 = vpop.permute.xlu1 %4183  ;;  %v7977_v5 = vld [vmem:[#allocation84_spill] sm:$0xff] }
 0x1bb   : > { %v6864_v43 = vpop.f32.mrf.mxu0  ;;  %v6866_v54 = vpop.f32.mrf.mxu1  ;;  %2564 = vmatmul.mubr.f32.gmra.mxu1 %v1630_v40  ;;  %3605 = vmatmul.mubr.msk.f32.gmra.mxu0 %vm1448_vm2, %v7968_v59  ;;  %v7972_v40 = vld [vmem:[#allocation74_spill] sm:$0xff]  ;;  %v7973_v59 = vld [vmem:[#allocation113_spill] sm:$0xff]  ;;  %v4185_v7 = vunpack.i.l.bf16 %v4184_v14 }
 0x1bc   : > { %2568 = vmatprep.mubr.f32.mxu1 %v7969_v35  ;;  %3607 = vmatprep.mubr.msk.f32.mxu0 %vm1448_vm2, %v7971_v31  ;;  %v7974_v35 = vld [vmem:[#allocation23_spill] sm:$0xff]  ;;  %v7975_v31 = vld [vmem:[#allocation76_spill] sm:$0xff]  ;;  %v1641_v17 = vsel %vm1448_vm2, %v4288_v33, %v4180_v63  ;;  %v4289_v63 = vld [vmem:[%s4516_s9 + $0x288] sm:$0xff] }
 0x1bd   : > { %v2022_v6 = vpop.f32.mrf.mxu0  ;;  %v2327_v11 = vpop.f32.mrf.mxu1  ;;  %v1632_v4 = vsel %vm1448_vm2, %v7974_v35, %v1343_v50  ;;  %v4186_v50 = vunpack.i.h.bf16 %v4184_v14  ;;  %v7978_v35 = vld [vmem:[#allocation25_spill] sm:$0xff]  ;;  %v1642_v26 = vsel %vm1448_vm2, %v4289_v63, %v4185_v7 }
 0x1be   : > { %v4194_v42 = vpop.permute.xlu1 %4193 }
 0x1bf   : > { %v6875_v39 = vpop.f32.mrf.mxu0  ;;  %v6877_v56 = vpop.f32.mrf.mxu1  ;;  %2569 = vmatmul.mubr.f32.gmra.mxu1 %v1631_v9  ;;  %3608 = vmatmul.mubr.msk.f32.gmra.mxu0 %vm1448_vm2, %v7972_v40  ;;  %v4195_v7 = vunpack.i.l.bf16 %v4194_v42 }
 0x1c0   : > { %2573 = vmatprep.mubr.f32.mxu1 %v7973_v59  ;;  %3610 = vmatprep.mubr.msk.f32.mxu0 %vm1448_vm2, %v7975_v31  ;;  %v4189_v9 = vpop.permute.xlu0 %4188  ;;  %v7976_v59 = vld [vmem:[#allocation80_spill] sm:$0xff]  ;;  %v1633_v31 = vsel %vm1448_vm2, %v7978_v35, %v4181_v49  ;;  %v7981_v49 = vld [vmem:[#allocation27_spill] sm:$0xff] }
 0x1c1   : > { %v2027_v6 = vpop.f32.mrf.mxu0  ;;  %v2332_v11 = vpop.f32.mrf.mxu1  ;;  %v4190_v33 = vunpack.i.l.bf16 %v4189_v9  ;;  %v4191_v14 = vunpack.i.h.bf16 %v4189_v9  ;;  %v7982_v9 = vld [vmem:[#allocation101_spill] sm:$0xff] }
 0x1c3   : > { %v6888_v16 = vpop.f32.mrf.mxu0  ;;  %v6890_v40 = vpop.f32.mrf.mxu1  ;;  %2574 = vmatmul.mubr.f32.gmra.mxu1 %v1632_v4  ;;  %3611 = vmatmul.mubr.msk.f32.gmra.mxu0 %vm1448_vm2, %v7976_v59  ;;  %v7980_v59 = vld [vmem:[#allocation92_spill] sm:$0xff] }
 0x1c4   : > { %2578 = vmatprep.mubr.f32.mxu1 %v1641_v17  ;;  %3613 = vmatprep.mubr.msk.f32.mxu0 %vm1448_vm2, %v7977_v5  ;;  %v7979_v17 = vld [vmem:[#allocation88_spill] sm:$0xff]  ;;  %v1634_v5 = vsel %vm1448_vm2, %v7981_v49, %v4186_v50  ;;  %v4199_v13 = vpop.permute.xlu0 %4198  ;;  %v7983_v50 = vld [vmem:[#allocation29_spill] sm:$0xff] }
 0x1c5   : > { %v2032_v6 = vpop.f32.mrf.mxu0  ;;  %v2337_v11 = vpop.f32.mrf.mxu1 }
 0x1c6   : > { %v4290_v11 = vld [vmem:[%s4516_s9 + $0x290] sm:$0xff] }
 0x1c7   : > { %v6900_v4 = vpop.f32.mrf.mxu0  ;;  %v6902_v19 = vpop.f32.mrf.mxu1  ;;  %2579 = vmatmul.mubr.f32.gmra.mxu1 %v1633_v31  ;;  %3614 = vmatmul.mubr.msk.f32.gmra.mxu0 %vm1448_vm2, %v7979_v17  ;;  %v1643_v63 = vsel %vm1448_vm2, %v4290_v11, %v4190_v33  ;;  %v1635_v17 = vsel %vm1448_vm2, %v7983_v50, %v4191_v14  ;;  %v4200_v33 = vunpack.i.l.bf16 %v4199_v13  ;;  %v7986_v14 = vld [vmem:[#allocation31_spill] sm:$0xff] }
 0x1c8   : > { %2583 = vmatprep.mubr.f32.mxu1 %v1642_v26  ;;  %3616 = vmatprep.mubr.msk.f32.mxu0 %vm1448_vm2, %v7980_v59  ;;  %v4196_v26 = vunpack.i.h.bf16 %v4194_v42  ;;  %v4204_v11 = vpop.permute.xlu1 %4203  ;;  %v4201_v42 = vunpack.i.h.bf16 %v4199_v13  ;;  %v4209_v30 = vpop.permute.xlu0 %4208 }
 0x1c9   : > { %v2037_v35 = vpop.f32.mrf.mxu0  ;;  %v2342_v6 = vpop.f32.mrf.mxu1  ;;  %v4206_v13 = vunpack.i.h.bf16 %v4204_v11 }
 0x1ca   : > { %v4291_v35 = vld [vmem:[%s4516_s9 + $0x298] sm:$0xff] }
 0x1cb   : > { %v6912_v31 = vpop.f32.mrf.mxu0  ;;  %v6914_v41 = vpop.f32.mrf.mxu1  ;;  %2584 = vmatmul.mubr.f32.gmra.mxu1 %v1634_v5  ;;  %3617 = vmatmul.mubr.msk.f32.gmra.mxu0 %vm1448_vm2, %v7872_v46  ;;  %v1644_v6 = vsel %vm1448_vm2, %v4291_v35, %v4195_v7  ;;  %v7984_v46 = vld [vmem:[#allocation105_spill] sm:$0xff]  ;;  %v4205_v7 = vunpack.i.l.bf16 %v4204_v11 }
 0x1cc   : > { %2588 = vmatprep.mubr.f32.mxu1 %v1643_v63  ;;  %3619 = vmatprep.mubr.msk.f32.mxu0 %vm1448_vm2, %v7982_v9  ;;  %v7985_v63 = vld [vmem:[#allocation107_spill] sm:$0xff]  ;;  %v1636_v9 = vsel %vm1448_vm2, %v7986_v14, %v4196_v26  ;;  %v7987_v26 = vld [vmem:[#allocation10_spill] sm:$0xff]  ;;  %v4214_v48 = vpop.permute.xlu1 %4213 }
 0x1cd   : > { %v2042_v59 = vpop.f32.mrf.mxu0  ;;  %v2347_v49 = vpop.f32.mrf.mxu1  ;;  %v4293_v14 = vld [vmem:[%s4516_s9 + $0x2b0] sm:$0xff] }
 0x1ce   : > { %v4292_v49 = vld [vmem:[%s4516_s9 + $0x2a8] sm:$0xff] }
 0x1cf   : > { %v6924_v5 = vpop.f32.mrf.mxu0  ;;  %v6926_v10 = vpop.f32.mrf.mxu1  ;;  %2589 = vmatmul.mubr.f32.gmra.mxu1 %v1635_v17  ;;  %3620 = vmatmul.mubr.msk.f32.gmra.mxu0 %vm1448_vm2, %v7984_v46  ;;  %v1645_v35 = vsel %vm1448_vm2, %v4292_v49, %v4200_v33 }
 0x1d0   : > { %2593 = vmatprep.mubr.f32.mxu1 %v1644_v6  ;;  %3622 = vmatprep.mubr.msk.f32.mxu0 %vm1448_vm2, %v7985_v63  ;;  %v1637_v6 = vsel %vm1448_vm2, %v7987_v26, %v4201_v42  ;;  %v4210_v63 = vunpack.i.l.bf16 %v4209_v30  ;;  %v7989_v42 = vld [vmem:[#allocation12_spill] sm:$0xff] }
 0x1d1   : > { %v2047_v50 = vpop.f32.mrf.mxu0  ;;  %v2352_v59 = vpop.f32.mrf.mxu1 }
 0x1d2   : > { %v1646_v50 = vsel %vm1448_vm2, %v4293_v14, %v4205_v7  ;;  %v839_v59 = vrot.slane %v4292_v49, 2  ;;  %v1638_v7 = vsel %vm1448_vm2, %v7989_v42, %v4206_v13  ;;  %v4294_v49 = vld [vmem:[%s4516_s9 + $0x2b8] sm:$0xff]  ;;  %v7990_v13 = vld [vmem:[#allocation14_spill] sm:$0xff] }
 0x1d3   : > { %v6936_v17 = vpop.f32.mrf.mxu0  ;;  %v6938_v29 = vpop.f32.mrf.mxu1  ;;  %2594 = vmatmul.mubr.f32.gmra.mxu1 %v1636_v9  ;;  %3623 = vmatmul.mubr.msk.f32.gmra.mxu0 %vm1448_vm2, %v6017_v27  ;;  %v840_v9 = vrot.slane %v4293_v14, 2  ;;  %v1647_v14 = vsel %vm1448_vm2, %v4294_v49, %v4210_v63 }
 0x1d4   : > { %2598 = vmatprep.mubr.f32.mxu1 %v1645_v35  ;;  %3625 = vmatprep.mubr.msk.f32.mxu0 %vm1448_vm2, %v6425_v61  ;;  %v4211_v61 = vunpack.i.h.bf16 %v4209_v30  ;;  %v842_v35 = vrot.slane %v4294_v49, 2 }
 0x1d5   : > { %v2052_v46 = vpop.f32.mrf.mxu0  ;;  %v2357_v33 = vpop.f32.mrf.mxu1 }
 0x1d6   : > { %v4215_v33 = vunpack.i.l.bf16 %v4214_v48  ;;  %v1639_v42 = vsel %vm1448_vm2, %v7990_v13, %v4211_v61  ;;  %v843_v63 = vsel %vm529_vm1, %v840_v9, %v842_v35 }
 0x1d7   : > { %v6948_v27 = vpop.f32.mrf.mxu0  ;;  %v6950_v11 = vpop.f32.mrf.mxu1  ;;  %2599 = vmatmul.mubr.f32.gmra.mxu1 %v1637_v6  ;;  %3626 = vmatmul.mubr.msk.f32.gmra.mxu0 %vm1448_vm2, %v6449_v2  ;;  %v841_v6 = vsel %vm529_vm1, %v839_v59, %v840_v9  ;;  %v844_v2 = vrot.slane %v4295_v47, 2  ;;  %v4296_v59 = vld [vmem:[%s4516_s9 + $0x2c8] sm:$0x3]  ;;  %s202_s9 = sand.u32 1, %s4365_s16  }
 0x1d8   : > { %7988 = vst [vmem:[#allocation44_spill] sm:$0xff] %v6950_v11  ;;  %2603 = vmatprep.mubr.f32.mxu1 %v1646_v50  ;;  %3628 = vmatprep.mubr.msk.f32.mxu0 %vm1448_vm2, %v6455_v28  ;;  %v4216_v28 = vunpack.i.h.bf16 %v4214_v48  ;;  %v846_v49 = vrot.slane %v4296_v59, 2  ;;  %v1648_v45 = vsel %vm1448_vm2, %v4295_v47, %v4215_v33  ;;  %s3375_s30 = sshll.u32 %s202_s9, 9  ;;  %s7504_s14 = scalar_lea.sflag [#allocation3], %s202_s9 }
 0x1d9   : > { %v2057_v26 = vpop.f32.mrf.mxu0  ;;  %v2362_v46 = vpop.f32.mrf.mxu1  ;;  %s7106_s5 = scalar_lea.vmem [#allocation2], %s3375_s30  ;;  %s4303_s30 = scalar_lea.vmem %s4302_s27, 16384 }
 0x1da   : > { %v1640_v48 = vsel %vm1448_vm2, %v6419_v20, %v4216_v28  ;;  %v847_v9 = vsel %vm529_vm1, %v844_v2, %v846_v49  ;;  %s3292_s10 = sshll.u32 %s7106_s5, 4  ;;  %s7496_s10 = int_to_ptr.vmem [resolvable:$true] %s3292_s10 }
 0x1db   : > { %v6962_v30 = vpop.f32.mrf.mxu0  ;;  %v6964_v50 = vpop.f32.mrf.mxu1  ;;  %2604 = vmatmul.mubr.f32.gmra.mxu1 %v1638_v7  ;;  %3629 = vmatmul.mubr.msk.f32.gmra.mxu0 %vm1448_vm2, %v6472_v23  ;;  %v845_v7 = vsel %vm529_vm1, %v842_v35, %v844_v2  ;;  %s4297_s23 = scalar_lea.vmem %s7496_s10, 8192  ;;  %p4304_p2 = scmp.lt.s32.totalorder %s7496_s10, %s4302_s27 }
 0x1dc   : > { %2608 = vmatprep.mubr.f32.mxu1 %v1647_v14  ;;  %3631 = vmatprep.mubr.msk.f32.mxu0 %vm1448_vm2, %v841_v6  ;;  %p4298_p13 = scmp.ne.s32.totalorder %s7496_s10, %s4297_s23  ;;  %p4305_p4 = scmp.lt.s32.totalorder %s4303_s30, %s4297_s23 }
 0x1dd   : > { %v2062_v26 = vpop.f32.mrf.mxu0  ;;  %v2367_v46 = vpop.f32.mrf.mxu1 }
 0x1de   : > { %p4299_p0 = pnand %p4298_p13, %p4472_p3  ;;  %p4306_p5 = por %p4305_p4, %p4304_p2 }
 0x1df   : > { %v6975_v11 = vpop.f32.mrf.mxu0  ;;  %v6977_v23 = vpop.f32.mrf.mxu1  ;;  %2609 = vmatmul.mubr.f32.gmra.mxu1 %v1639_v42  ;;  %3632 = vmatmul.mubr.msk.f32.gmra.mxu0 %vm1448_vm2, %v843_v63 }
 0x1e0   : > { %2613 = vmatprep.mubr.f32.mxu1 %v1648_v45  ;;  %3634 = vmatprep.mubr.msk.f32.mxu0 %vm1448_vm2, %v845_v7  ;;  %p4300_p1 = pneg %p4299_p0 }
 0x1e1   : > { %v2067_v61 = vpop.f32.mrf.mxu0  ;;  %v2372_v14 = vpop.f32.mrf.mxu1 }
 0x1e2   : > { %p4307_p6 = pnand %p4306_p5, %p4300_p1 }
 0x1e3   : > { %v6984_v47 = vpop.f32.mrf.mxu0  ;;  %v2375_v35 = vpop.f32.mrf.mxu1  ;;  %2614 = vmatmul.mubr.f32.gmra.mxu1 %v1640_v48  ;;  %3635 = vmatmul.mubr.msk.f32.gmra.mxu0 %vm1448_vm2, %v847_v9 }
 0x1e4   : > { %v6988_v33 = vadd.f32 %v2375_v35, %v6798_v0 }
 0x1e5   : > { %v2072_v6 = vpop.f32.mrf.mxu0  ;;  %v2377_v45 = vpop.f32.mrf.mxu1 }
 0x1e7   : > { %v6990_v13 = vpop.f32.mrf.mxu0  ;;  %v2380_v42 = vpop.f32.mrf.mxu1 }
 0x1e8   : > { %v6993_v20 = vadd.f32 %v2380_v42, %v6809_v51 }
 0x1e9   : > { %v2077_v2 = vpop.f32.mrf.mxu0  ;;  %v2382_v28 = vpop.f32.mrf.mxu1 }
 0x1eb   : > { %v6995_v63 = vpop.f32.mrf.mxu0  ;;  %v2385_v59 = vpop.f32.mrf.mxu1 }
 0x1ec   : > { %v6998_v49 = vadd.f32 %v2385_v59, %v6820_v25 }
 0x1ed   : > { %v2082_v26 = vpop.f32.mrf.mxu0  ;;  %v2387_v46 = vpop.f32.mrf.mxu1 }
 0x1ef   : > { %v7000_v0 = vpop.f32.mrf.mxu0  ;;  %v2390_v7 = vpop.f32.mrf.mxu1 }
 0x1f0   : > { %v7003_v48 = vadd.f32 %v2390_v7, %v6831_v52 }
 0x1f1   : > { %v2087_v9 = vpop.f32.mrf.mxu0  ;;  %v2392_v61 = vpop.f32.mrf.mxu1 }
 0x1f3   : > { %v7005_v51 = vpop.f32.mrf.mxu0  ;;  %v2395_v14 = vpop.f32.mrf.mxu1 }
 0x1f4   : > { %v7008_v35 = vadd.f32 %v2395_v14, %v6842_v18 }
 0x1f5   : > { %v2092_v6 = vpop.f32.mrf.mxu0  ;;  %v2397_v45 = vpop.f32.mrf.mxu1 }
 0x1f7   : > { %v7010_v25 = vpop.f32.mrf.mxu0  ;;  %v2400_v42 = vpop.f32.mrf.mxu1 }
 0x1f8   : > { %7991 = vst [vmem:[#allocation46_spill] sm:$0xff] %v7010_v25  ;;  %v7013_v2 = vadd.f32 %v2400_v42, %v6853_v12 }
 0x1f9   : > { %v2097_v28 = vpop.f32.mrf.mxu0  ;;  %v2402_v59 = vpop.f32.mrf.mxu1 }
 0x1fb   : > { %v7015_v52 = vpop.f32.mrf.mxu0  ;;  %v2405_v26 = vpop.f32.mrf.mxu1 }
 0x1fc   : > { %v7018_v46 = vadd.f32 %v2405_v26, %v6864_v43 }
 0x1fd   : > { %v2102_v7 = vpop.f32.mrf.mxu0  ;;  %v2407_v9 = vpop.f32.mrf.mxu1 }
 0x1ff   : > { %v7020_v18 = vpop.f32.mrf.mxu0  ;;  %v2410_v61 = vpop.f32.mrf.mxu1 }
 0x200   : > { %7992 = vst [vmem:[#allocation47_spill] sm:$0xff] %v7020_v18  ;;  %v7023_v14 = vadd.f32 %v2410_v61, %v6875_v39 }
 0x201   : > { %v2107_v6 = vpop.f32.mrf.mxu0  ;;  %v2412_v45 = vpop.f32.mrf.mxu1 }
 0x203   : > { %v7025_v12 = vpop.f32.mrf.mxu0  ;;  %v2415_v42 = vpop.f32.mrf.mxu1 }
 0x204   : > { %7993 = vst [vmem:[#allocation48_spill] sm:$0xff] %v7025_v12  ;;  %v7028_v28 = vadd.f32 %v2415_v42, %v6888_v16 }
 0x205   : > { %v2112_v59 = vpop.f32.mrf.mxu0  ;;  %v2417_v25 = vpop.f32.mrf.mxu1 }
 0x207   : > { %v7030_v43 = vpop.f32.mrf.mxu0  ;;  %v2420_v26 = vpop.f32.mrf.mxu1 }
 0x208   : > { %7994 = vst [vmem:[#allocation49_spill] sm:$0xff] %v7030_v43  ;;  %v7033_v7 = vadd.f32 %v2420_v26, %v6900_v4 }
 0x209   : > { %v2117_v9 = vpop.f32.mrf.mxu0  ;;  %v2422_v18 = vpop.f32.mrf.mxu1 }
 0x20b   : > { %v7035_v39 = vpop.f32.mrf.mxu0  ;;  %v2425_v61 = vpop.f32.mrf.mxu1 }
 0x20c   : > { %7995 = vst [vmem:[#allocation51_spill] sm:$0xff] %v7035_v39  ;;  %v7038_v6 = vadd.f32 %v2425_v61, %v6912_v31 }
 0x20d   : > { %v2122_v45 = vpop.f32.mrf.mxu0  ;;  %v2427_v12 = vpop.f32.mrf.mxu1 }
 0x20f   : > { %v7040_v16 = vpop.f32.mrf.mxu0  ;;  %v2430_v42 = vpop.f32.mrf.mxu1 }
 0x210   : > { %7996 = vst [vmem:[#allocation53_spill] sm:$0xff] %v7040_v16  ;;  %v7043_v25 = vadd.f32 %v2430_v42, %v6924_v5 }
 0x211   : > { %v2127_v59 = vpop.f32.mrf.mxu0  ;;  %v2432_v43 = vpop.f32.mrf.mxu1 }
 0x213   : > { %v7045_v4 = vpop.f32.mrf.mxu0  ;;  %v2435_v26 = vpop.f32.mrf.mxu1 }
 0x214   : > { %7997 = vst [vmem:[#allocation55_spill] sm:$0xff] %v7045_v4  ;;  %v7048_v18 = vadd.f32 %v2435_v26, %v6936_v17 }
 0x215   : > { %v2132_v9 = vpop.f32.mrf.mxu0  ;;  %v2437_v39 = vpop.f32.mrf.mxu1 }
 0x217   : > { %v7050_v31 = vpop.f32.mrf.mxu0  ;;  %v2440_v61 = vpop.f32.mrf.mxu1 }
 0x218   : > { %7998 = vst [vmem:[#allocation57_spill] sm:$0xff] %v7050_v31  ;;  %v7053_v12 = vadd.f32 %v2440_v61, %v6948_v27 }
 0x219   : > { %v2137_v45 = vpop.f32.mrf.mxu0  ;;  %v2442_v16 = vpop.f32.mrf.mxu1 }
 0x21b   : > { %v7055_v5 = vpop.f32.mrf.mxu0  ;;  %v2445_v43 = vpop.f32.mrf.mxu1 }
 0x21c   : > { %7999 = vst [vmem:[#allocation59_spill] sm:$0xff] %v7055_v5  ;;  %v7058_v42 = vadd.f32 %v2445_v43, %v6962_v30  ;;  %v2306_v30 = vadd.f32 %v6822_v1, %v6631_v22 }
 0x21d   : > { %v2142_v59 = vpop.f32.mrf.mxu0  ;;  %v2447_v17 = vpop.f32.mrf.mxu1 }
 0x21f   : > { %v7060_v26 = vpop.f32.mrf.mxu0  ;;  %v2450_v39 = vpop.f32.mrf.mxu1 }
 0x220   : > { %8000 = vst [vmem:[#allocation61_spill] sm:$0xff] %v7060_v26  ;;  %v7063_v9 = vadd.f32 %v2450_v39, %v6975_v11  ;;  %v7075_v11 = vld [vmem:[%s7557_s2] ss:$0 sm:$0xff] }
 0x221   : > { %v2147_v31 = vpop.f32.mrf.mxu0  ;;  %v2452_v27 = vpop.f32.mrf.mxu1 }
 0x222   : > { %v2301_v31 = vadd.f32 %v6811_v58, %v6615_v62  ;;  %v2316_v27 = vadd.f32 %v6844_v55, %v6652_v32 }
 0x223   : > { %v7065_v61 = vpop.f32.mrf.mxu0  ;;  %v7067_v16 = vpop.f32.mrf.mxu1 }
 0x224   : > { %8001 = vst [vmem:[#allocation64_spill] sm:$0xff] %v7065_v61 }
 0x225   : > { %v2152_v45 = vpop.f32.mrf.mxu0  ;;  %v2457_v5 = vpop.f32.mrf.mxu1 }
 0x226   : > { %v7085_v5 = vld [vmem:[%s7558_s3] ss:$0 sm:$0xff] }
 0x227   : > { %v2460_v43 = vpop.f32.mrf.mxu1  ;;  %v3543_v59 = vpop.f32.mrf.mxu0 }
 0x228   : > { %v7080_v17 = vadd.f32 %v2460_v43, %v6990_v13  ;;  %v2691_v39 = vadd.f32 %v3543_v59, %v2306_v30  ;;  %v2311_v13 = vadd.f32 %v6833_v15, %v6641_v34  ;;  %v2321_v15 = vadd.f32 %v6855_v3, %v6663_v44 }
 0x229   : > { %v2462_v22 = vpop.f32.mrf.mxu1  ;;  %v2685_v1 = vpop.f32.mrf.mxu0 }
 0x22a   : > { %v3012_v45 = vmul.f32 %v7075_v11, %v2691_v39  ;;  %v2686_v26 = vadd.f32 %v2685_v1, %v2301_v31  ;;  %v2326_v1 = vadd.f32 %v6866_v54, %v6674_v37 }
 0x22b   : > { %v7092_v62 = vpop.f32.mrf.mxu1  ;;  %v3546_v58 = vpop.f32.mrf.mxu0 }
 0x22c   : > { %v3083_v30 = vadd.f32 %v7085_v5, %v3012_v45  ;;  %v3011_v43 = vmul.f32 %v7075_v11, %v2686_v26  ;;  %v2701_v59 = vadd.f32 %v3546_v58, %v2316_v27  ;;  %v2336_v58 = vadd.f32 %v6890_v40, %v6703_v8 }
 0x22d   : > { %v2467_v22 = vpop.f32.mrf.mxu1  ;;  %v2695_v61 = vpop.f32.mrf.mxu0 }
 0x22e   : > { %v3147_v32 = vmax.f32 %v3083_v30, 0.0  ;;  %v3082_v55 = vadd.f32 %v7085_v5, %v3011_v43  ;;  %v3014_v39 = vmul.f32 %v7075_v11, %v2701_v59  ;;  %v2696_v31 = vadd.f32 %v2695_v61, %v2311_v13 }
 0x22f   : > { %v7102_v4 = vpop.f32.mrf.mxu1  ;;  %v3549_v34 = vpop.f32.mrf.mxu0  ;;  %v2331_v22 = vadd.f32 %v6877_v56, %v6685_v53  ;;  %v2346_v53 = vadd.f32 %v6914_v41, %v6725_v60  ;;  %v2356_v41 = vadd.f32 %v6938_v29, %v6749_v36 }
 0x230   : > { %3212 = vst.msk [vmem:[%s7106_s5 + $0x8] sm:$0xff] %vm3210_vm3, %v3147_v32  ;;  %v3146_v26 = vmax.f32 %v3082_v55, 0.0  ;;  %v3085_v27 = vadd.f32 %v7085_v5, %v3014_v39  ;;  %v3013_v61 = vmul.f32 %v7075_v11, %v2696_v31  ;;  %v2711_v45 = vadd.f32 %v3549_v34, %v2326_v1 }
 0x231   : > { %v2472_v37 = vpop.f32.mrf.mxu1  ;;  %v2705_v54 = vpop.f32.mrf.mxu0 }
 0x232   : > { %3211 = vst.msk [vmem:[%s7106_s5] sm:$0xff] %vm3210_vm3, %v3146_v26  ;;  %v3149_v44 = vmax.f32 %v3085_v27, 0.0  ;;  %v3084_v3 = vadd.f32 %v7085_v5, %v3013_v61  ;;  %v2706_v13 = vadd.f32 %v2705_v54, %v2321_v15  ;;  %v3016_v30 = vmul.f32 %v7075_v11, %v2711_v45 }
 0x233   : > { %v7118_v43 = vpop.f32.mrf.mxu1  ;;  %v3552_v59 = vpop.f32.mrf.mxu0  ;;  %v2341_v61 = vadd.f32 %v6902_v19, %v6714_v57 }
 0x234   : > { %3214 = vst.msk [vmem:[%s7106_s5 + $0x18] sm:$0xff] %vm3210_vm3, %v3149_v44  ;;  %v3148_v32 = vmax.f32 %v3084_v3, 0.0  ;;  %v3015_v8 = vmul.f32 %v7075_v11, %v2706_v13  ;;  %v2721_v40 = vadd.f32 %v3552_v59, %v2336_v58  ;;  %v3087_v55 = vadd.f32 %v7085_v5, %v3016_v30 }
 0x235   : > { %v2477_v39 = vpop.f32.mrf.mxu1  ;;  %v2715_v31 = vpop.f32.mrf.mxu0 }
 0x236   : > { %3213 = vst.msk [vmem:[%s7106_s5 + $0x10] sm:$0xff] %vm3210_vm3, %v3148_v32  ;;  %v3086_v1 = vadd.f32 %v7085_v5, %v3015_v8  ;;  %v3018_v34 = vmul.f32 %v7075_v11, %v2721_v40  ;;  %v2716_v15 = vadd.f32 %v2715_v31, %v2331_v22  ;;  %v3151_v56 = vmax.f32 %v3087_v55, 0.0 }
 0x237   : > { %v7132_v26 = vpop.f32.mrf.mxu1  ;;  %v3555_v27 = vpop.f32.mrf.mxu0  ;;  %v2351_v22 = vadd.f32 %v6926_v10, %v6736_v21  ;;  %v2366_v10 = vadd.f32 %v6964_v50, %v6776_v24 }
 0x238   : > { %v3150_v45 = vmax.f32 %v3086_v1, 0.0  ;;  %v3089_v37 = vadd.f32 %v7085_v5, %v3018_v34  ;;  %v3017_v54 = vmul.f32 %v7075_v11, %v2716_v15  ;;  %3216 = vst.msk [vmem:[%s7106_s5 + $0x28] sm:$0xff] %vm3210_vm3, %v3151_v56  ;;  %v2731_v58 = vadd.f32 %v3555_v27, %v2346_v53  ;;  %v8002_v53 = vld [vmem:[#allocation44_spill] sm:$0xff] }
 0x239   : > { %v2482_v44 = vpop.f32.mrf.mxu1  ;;  %v2725_v3 = vpop.f32.mrf.mxu0  ;;  %v2361_v56 = vadd.f32 %v8002_v53, %v6765_v38 }
 0x23a   : > { %3215 = vst.msk [vmem:[%s7106_s5 + $0x20] sm:$0xff] %vm3210_vm3, %v3150_v45  ;;  %v3153_v60 = vmax.f32 %v3089_v37, 0.0  ;;  %v3088_v19 = vadd.f32 %v7085_v5, %v3017_v54  ;;  %v2726_v57 = vadd.f32 %v2725_v3, %v2341_v61  ;;  %v3020_v13 = vmul.f32 %v7075_v11, %v2731_v58 }
 0x23b   : > { %v7146_v30 = vpop.f32.mrf.mxu1  ;;  %v3558_v59 = vpop.f32.mrf.mxu0 }
 0x23c   : > { %3218 = vst.msk [vmem:[%s7106_s5 + $0x38] sm:$0xff] %vm3210_vm3, %v3153_v60  ;;  %v3152_v32 = vmax.f32 %v3088_v19, 0.0  ;;  %v3019_v29 = vmul.f32 %v7075_v11, %v2726_v57  ;;  %v2741_v36 = vadd.f32 %v3558_v59, %v2356_v41  ;;  %v3091_v8 = vadd.f32 %v7085_v5, %v3020_v13  ;;  %v8003_v60 = vld [vmem:[#allocation38_spill] sm:$0xff] }
 0x23d   : > { %v2487_v40 = vpop.f32.mrf.mxu1  ;;  %v2735_v55 = vpop.f32.mrf.mxu0  ;;  %v2371_v19 = vadd.f32 %v6977_v23, %v8003_v60 }
 0x23e   : > { %3217 = vst.msk [vmem:[%s7106_s5 + $0x30] sm:$0xff] %vm3210_vm3, %v3152_v32  ;;  %v3090_v39 = vadd.f32 %v7085_v5, %v3019_v29  ;;  %v3022_v31 = vmul.f32 %v7075_v11, %v2741_v36  ;;  %v2736_v1 = vadd.f32 %v2735_v55, %v2351_v22  ;;  %v3155_v21 = vmax.f32 %v3091_v8, 0.0 }
 0x23f   : > { %v7160_v34 = vpop.f32.mrf.mxu1  ;;  %v3561_v15 = vpop.f32.mrf.mxu0 }
 0x240   : > { %v3154_v27 = vmax.f32 %v3090_v39, 0.0  ;;  %v3093_v61 = vadd.f32 %v7085_v5, %v3022_v31  ;;  %v3021_v45 = vmul.f32 %v7075_v11, %v2736_v1  ;;  %3220 = vst.msk [vmem:[%s7106_s5 + $0x48] sm:$0xff] %vm3210_vm3, %v3155_v21  ;;  %v2751_v37 = vadd.f32 %v3561_v15, %v2366_v10 }
 0x241   : > { %v2492_v54 = vpop.f32.mrf.mxu1  ;;  %v2745_v58 = vpop.f32.mrf.mxu0 }
 0x242   : > { %3219 = vst.msk [vmem:[%s7106_s5 + $0x40] sm:$0xff] %vm3210_vm3, %v3154_v27  ;;  %v3157_v24 = vmax.f32 %v3093_v61, 0.0  ;;  %v3092_v50 = vadd.f32 %v7085_v5, %v3021_v45  ;;  %v2746_v44 = vadd.f32 %v2745_v58, %v2361_v56  ;;  %v3024_v38 = vmul.f32 %v7075_v11, %v2751_v37 }
 0x243   : > { %v7172_v3 = vpop.f32.mrf.mxu1  ;;  %v3564_v41 = vpop.f32.mrf.mxu0 }
 0x244   : > { %3222 = vst.msk [vmem:[%s7106_s5 + $0x58] sm:$0xff] %vm3210_vm3, %v3157_v24  ;;  %v3156_v57 = vmax.f32 %v3092_v50, 0.0  ;;  %v3023_v13 = vmul.f32 %v7075_v11, %v2746_v44  ;;  %v2761_v59 = vadd.f32 %v3564_v41, %v6988_v33  ;;  %v3095_v22 = vadd.f32 %v7085_v5, %v3024_v38 }
 0x245   : > { %v2497_v32 = vpop.f32.mrf.mxu1  ;;  %v2755_v29 = vpop.f32.mrf.mxu0 }
 0x246   : > { %3221 = vst.msk [vmem:[%s7106_s5 + $0x50] sm:$0xff] %vm3210_vm3, %v3156_v57  ;;  %v3094_v36 = vadd.f32 %v7085_v5, %v3023_v13  ;;  %v3026_v8 = vmul.f32 %v7075_v11, %v2761_v59  ;;  %v2756_v23 = vadd.f32 %v2755_v29, %v2371_v19  ;;  %v3159_v40 = vmax.f32 %v3095_v22, 0.0 }
 0x247   : > { %v7185_v55 = vpop.f32.mrf.mxu1  ;;  %v3567_v39 = vpop.f32.mrf.mxu0 }
 0x248   : > { %v3158_v31 = vmax.f32 %v3094_v36, 0.0  ;;  %v3097_v33 = vadd.f32 %v7085_v5, %v3026_v8  ;;  %v3025_v1 = vmul.f32 %v7075_v11, %v2756_v23  ;;  %3224 = vst.msk [vmem:[%s7106_s5 + $0x68] sm:$0xff] %vm3210_vm3, %v3159_v40  ;;  %v2771_v10 = vadd.f32 %v3567_v39, %v6998_v49 }
 0x249   : > { %v2502_v21 = vpop.f32.mrf.mxu1  ;;  %v2765_v15 = vpop.f32.mrf.mxu0 }
 0x24a   : > { %3223 = vst.msk [vmem:[%s7106_s5 + $0x60] sm:$0xff] %vm3210_vm3, %v3158_v31  ;;  %v3161_v53 = vmax.f32 %v3097_v33, 0.0  ;;  %v3096_v56 = vadd.f32 %v7085_v5, %v3025_v1  ;;  %v2766_v27 = vadd.f32 %v2765_v15, %v6993_v20  ;;  %v3028_v61 = vmul.f32 %v7075_v11, %v2771_v10 }
 0x24b   : > { %v7197_v45 = vpop.f32.mrf.mxu1  ;;  %v3570_v37 = vpop.f32.mrf.mxu0 }
 0x24c   : > { %3226 = vst.msk [vmem:[%s7106_s5 + $0x78] sm:$0xff] %vm3210_vm3, %v3161_v53  ;;  %v3160_v54 = vmax.f32 %v3096_v56, 0.0  ;;  %v3027_v49 = vmul.f32 %v7075_v11, %v2766_v27  ;;  %v2781_v58 = vadd.f32 %v3570_v37, %v7008_v35  ;;  %v3099_v24 = vadd.f32 %v7085_v5, %v3028_v61 }
 0x24d   : > { %v2507_v50 = vpop.f32.mrf.mxu1  ;;  %v2775_v44 = vpop.f32.mrf.mxu0 }
 0x24e   : > { %3225 = vst.msk [vmem:[%s7106_s5 + $0x70] sm:$0xff] %vm3210_vm3, %v3160_v54  ;;  %v3098_v20 = vadd.f32 %v7085_v5, %v3027_v49  ;;  %v3030_v38 = vmul.f32 %v7075_v11, %v2781_v58  ;;  %v2776_v41 = vadd.f32 %v2775_v44, %v7003_v48  ;;  %v3163_v60 = vmax.f32 %v3099_v24, 0.0 }
 0x24f   : > { %v7209_v19 = vpop.f32.mrf.mxu1  ;;  %v3573_v57 = vpop.f32.mrf.mxu0 }
 0x250   : > { %v3162_v13 = vmax.f32 %v3098_v20, 0.0  ;;  %v3101_v35 = vadd.f32 %v7085_v5, %v3030_v38  ;;  %v3029_v59 = vmul.f32 %v7075_v11, %v2776_v41  ;;  %3228 = vst.msk [vmem:[%s7106_s5 + $0x88] sm:$0xff] %vm3210_vm3, %v3163_v60  ;;  %v2791_v22 = vadd.f32 %v3573_v57, %v7018_v46 }
 0x251   : > { %v2512_v32 = vpop.f32.mrf.mxu1  ;;  %v2785_v29 = vpop.f32.mrf.mxu0 }
 0x252   : > { %3227 = vst.msk [vmem:[%s7106_s5 + $0x80] sm:$0xff] %vm3210_vm3, %v3162_v13  ;;  %v3165_v48 = vmax.f32 %v3101_v35, 0.0  ;;  %v3100_v36 = vadd.f32 %v7085_v5, %v3029_v59  ;;  %v2786_v8 = vadd.f32 %v2785_v29, %v7013_v2  ;;  %v3032_v23 = vmul.f32 %v7075_v11, %v2791_v22 }
 0x253   : > { %v7221_v40 = vpop.f32.mrf.mxu1  ;;  %v3576_v39 = vpop.f32.mrf.mxu0 }
 0x254   : > { %3230 = vst.msk [vmem:[%s7106_s5 + $0x98] sm:$0xff] %vm3210_vm3, %v3165_v48  ;;  %v3164_v31 = vmax.f32 %v3100_v36, 0.0  ;;  %v3031_v46 = vmul.f32 %v7075_v11, %v2786_v8  ;;  %v2801_v33 = vadd.f32 %v3576_v39, %v7028_v28  ;;  %v3103_v1 = vadd.f32 %v7085_v5, %v3032_v23 }
 0x255   : > { %v2517_v10 = vpop.f32.mrf.mxu1  ;;  %v2795_v21 = vpop.f32.mrf.mxu0 }
 0x256   : > { %3229 = vst.msk [vmem:[%s7106_s5 + $0x90] sm:$0xff] %vm3210_vm3, %v3164_v31  ;;  %v3102_v2 = vadd.f32 %v7085_v5, %v3031_v46  ;;  %v3034_v15 = vmul.f32 %v7075_v11, %v2801_v33  ;;  %v2796_v53 = vadd.f32 %v2795_v21, %v7023_v14  ;;  %v3167_v56 = vmax.f32 %v3103_v1, 0.0 }
 0x257   : > { %v7233_v27 = vpop.f32.mrf.mxu1  ;;  %v3579_v61 = vpop.f32.mrf.mxu0 }
 0x258   : > { %v3166_v37 = vmax.f32 %v3102_v2, 0.0  ;;  %v3105_v28 = vadd.f32 %v7085_v5, %v3034_v15  ;;  %v3033_v54 = vmul.f32 %v7075_v11, %v2796_v53  ;;  %3232 = vst.msk [vmem:[%s7106_s5 + $0xa8] sm:$0xff] %vm3210_vm3, %v3167_v56  ;;  %v2811_v49 = vadd.f32 %v3579_v61, %v7038_v6 }
 0x259   : > { %v2522_v58 = vpop.f32.mrf.mxu1  ;;  %v2805_v24 = vpop.f32.mrf.mxu0 }
 0x25a   : > { %3231 = vst.msk [vmem:[%s7106_s5 + $0xa0] sm:$0xff] %vm3210_vm3, %v3166_v37  ;;  %v3169_v14 = vmax.f32 %v3105_v28, 0.0  ;;  %v3104_v50 = vadd.f32 %v7085_v5, %v3033_v54  ;;  %v2806_v44 = vadd.f32 %v2805_v24, %v7033_v7  ;;  %v3036_v20 = vmul.f32 %v7075_v11, %v2811_v49 }
 0x25b   : > { %v7245_v38 = vpop.f32.mrf.mxu1  ;;  %v3582_v41 = vpop.f32.mrf.mxu0  ;;  %v2466_v54 = vadd.f32 %v7092_v62, %v6995_v63 }
 0x25c   : > { %3234 = vst.msk [vmem:[%s7106_s5 + $0xb8] sm:$0xff] %vm3210_vm3, %v3169_v14  ;;  %v3168_v60 = vmax.f32 %v3104_v50, 0.0  ;;  %v3035_v6 = vmul.f32 %v7075_v11, %v2806_v44  ;;  %v2821_v57 = vadd.f32 %v3582_v41, %v7048_v18  ;;  %v3107_v13 = vadd.f32 %v7085_v5, %v3036_v20 }
 0x25d   : > { %v2527_v35 = vpop.f32.mrf.mxu1  ;;  %v2815_v59 = vpop.f32.mrf.mxu0 }
 0x25e   : > { %3233 = vst.msk [vmem:[%s7106_s5 + $0xb0] sm:$0xff] %vm3210_vm3, %v3168_v60  ;;  %v3106_v7 = vadd.f32 %v7085_v5, %v3035_v6  ;;  %v3038_v22 = vmul.f32 %v7075_v11, %v2821_v57  ;;  %v2816_v32 = vadd.f32 %v2815_v59, %v7043_v25  ;;  %v3171_v29 = vmax.f32 %v3107_v13, 0.0 }
 0x25f   : > { %v7257_v48 = vpop.f32.mrf.mxu1  ;;  %v3585_v36 = vpop.f32.mrf.mxu0  ;;  %v2456_v25 = vadd.f32 %v7067_v16, %v6984_v47  ;;  %v2471_v59 = vadd.f32 %v7102_v4, %v7000_v0  ;;  %v2486_v0 = vadd.f32 %v7146_v30, %v7015_v52 }
 0x260   : > { %v3170_v8 = vmax.f32 %v3106_v7, 0.0  ;;  %v3109_v18 = vadd.f32 %v7085_v5, %v3038_v22  ;;  %v3037_v23 = vmul.f32 %v7075_v11, %v2816_v32  ;;  %3236 = vst.msk [vmem:[%s7106_s5 + $0xc8] sm:$0xff] %vm3210_vm3, %v3171_v29  ;;  %v2831_v39 = vadd.f32 %v3585_v36, %v7058_v42 }
 0x261   : > { %v2532_v31 = vpop.f32.mrf.mxu1  ;;  %v2825_v46 = vpop.f32.mrf.mxu0 }
 0x262   : > { %3235 = vst.msk [vmem:[%s7106_s5 + $0xc0] sm:$0xff] %vm3210_vm3, %v3170_v8  ;;  %v3173_v33 = vmax.f32 %v3109_v18, 0.0  ;;  %v3108_v1 = vadd.f32 %v7085_v5, %v3037_v23  ;;  %v2826_v10 = vadd.f32 %v2825_v46, %v7053_v12  ;;  %v3040_v21 = vmul.f32 %v7075_v11, %v2831_v39  ;;  %v8004_v39 = vld [vmem:[#allocation46_spill] sm:$0xff] }
 0x263   : > { %v7271_v2 = vpop.f32.mrf.mxu1  ;;  %v3588_v15 = vpop.f32.mrf.mxu0  ;;  %v2481_v31 = vadd.f32 %v7132_v26, %v8004_v39 }
 0x264   : > { %3238 = vst.msk [vmem:[%s7106_s5 + $0xd8] sm:$0xff] %vm3210_vm3, %v3173_v33  ;;  %v3172_v42 = vmax.f32 %v3108_v1, 0.0  ;;  %v3039_v53 = vmul.f32 %v7075_v11, %v2826_v10  ;;  %v2841_v56 = vadd.f32 %v3588_v15, %v2456_v25  ;;  %v3111_v47 = vadd.f32 %v7085_v5, %v3040_v21  ;;  %v8005_v15 = vld [vmem:[#allocation48_spill] sm:$0xff] }
 0x265   : > { %v2537_v16 = vpop.f32.mrf.mxu1  ;;  %v2835_v61 = vpop.f32.mrf.mxu0  ;;  %v2496_v52 = vadd.f32 %v7172_v3, %v8005_v15 }
 0x266   : > { %3237 = vst.msk [vmem:[%s7106_s5 + $0xd0] sm:$0xff] %vm3210_vm3, %v3172_v42  ;;  %v3110_v12 = vadd.f32 %v7085_v5, %v3039_v53  ;;  %v3042_v37 = vmul.f32 %v7075_v11, %v2841_v56  ;;  %v2836_v28 = vadd.f32 %v2835_v61, %v7063_v9  ;;  %v3175_v49 = vmax.f32 %v3111_v47, 0.0  ;;  %v8006_v16 = vld [vmem:[#allocation47_spill] sm:$0xff] }
 0x267   : > { %v7284_v58 = vpop.f32.mrf.mxu1  ;;  %v3591_v24 = vpop.f32.mrf.mxu0  ;;  %v2476_v9 = vadd.f32 %v7118_v43, %v7005_v51  ;;  %v2491_v61 = vadd.f32 %v7160_v34, %v8006_v16  ;;  %v8007_v34 = vld [vmem:[#allocation51_spill] sm:$0xff] }
 0x268   : > { %v3174_v14 = vmax.f32 %v3110_v12, 0.0  ;;  %v3113_v50 = vadd.f32 %v7085_v5, %v3042_v37  ;;  %v3041_v44 = vmul.f32 %v7075_v11, %v2836_v28  ;;  %3240 = vst.msk [vmem:[%s7106_s5 + $0xe8] sm:$0xff] %vm3210_vm3, %v3175_v49  ;;  %v2851_v20 = vadd.f32 %v3591_v24, %v2466_v54 }
 0x269   : > { %v2542_v41 = vpop.f32.mrf.mxu1  ;;  %v2845_v60 = vpop.f32.mrf.mxu0 }
 0x26a   : > { %3239 = vst.msk [vmem:[%s7106_s5 + $0xe0] sm:$0xff] %vm3210_vm3, %v3174_v14  ;;  %v3177_v63 = vmax.f32 %v3113_v50, 0.0  ;;  %v3112_v62 = vadd.f32 %v7085_v5, %v3041_v44  ;;  %v2846_v6 = vadd.f32 %v2845_v60, %v7080_v17  ;;  %v3044_v57 = vmul.f32 %v7075_v11, %v2851_v20 }
 0x26b   : > { %v7297_v13 = vpop.f32.mrf.mxu1  ;;  %v3594_v35 = vpop.f32.mrf.mxu0  ;;  %v2506_v44 = vadd.f32 %v7197_v45, %v8007_v34 }
 0x26c   : > { %3242 = vst.msk [vmem:[%s7106_s5 + $0xf8] sm:$0xff] %vm3210_vm3, %v3177_v63  ;;  %v3176_v7 = vmax.f32 %v3112_v62, 0.0  ;;  %v3043_v51 = vmul.f32 %v7075_v11, %v2846_v6  ;;  %v2861_v43 = vadd.f32 %v3594_v35, %v2476_v9  ;;  %v3115_v22 = vadd.f32 %v7085_v5, %v3044_v57  ;;  %v8008_v9 = vld [vmem:[#allocation49_spill] sm:$0xff] }
 0x26d   : > { %v2547_v32 = vpop.f32.mrf.mxu1  ;;  %v2855_v29 = vpop.f32.mrf.mxu0  ;;  %v2501_v63 = vadd.f32 %v7185_v55, %v8008_v9 }
 0x26e   : > { %3241 = vst.msk [vmem:[%s7106_s5 + $0xf0] sm:$0xff] %vm3210_vm3, %v3176_v7  ;;  %v3114_v17 = vadd.f32 %v7085_v5, %v3043_v51  ;;  %v3046_v36 = vmul.f32 %v7075_v11, %v2861_v43  ;;  %v2856_v8 = vadd.f32 %v2855_v29, %v2471_v59  ;;  %v3179_v4 = vmax.f32 %v3115_v22, 0.0  ;;  %v8009_v51 = vld [vmem:[#allocation55_spill] sm:$0xff] }
 0x26f   : > { %v7311_v18 = vpop.f32.mrf.mxu1  ;;  %v3597_v23 = vpop.f32.mrf.mxu0  ;;  %v2516_v45 = vadd.f32 %v7221_v40, %v8009_v51 }
 0x270   : > { %v3178_v46 = vmax.f32 %v3114_v17, 0.0  ;;  %v3117_v25 = vadd.f32 %v7085_v5, %v3046_v36  ;;  %v3045_v33 = vmul.f32 %v7075_v11, %v2856_v8  ;;  %3244 = vst.msk [vmem:[%s7106_s5 + $0x108] sm:$0xff] %vm3210_vm3, %v3179_v4  ;;  %v2871_v1 = vadd.f32 %v3597_v23, %v2486_v0  ;;  %v8010_v36 = vld [vmem:[#allocation53_spill] sm:$0xff] }
 0x271   : > { %v2552_v10 = vpop.f32.mrf.mxu1  ;;  %v2865_v21 = vpop.f32.mrf.mxu0  ;;  %v2511_v8 = vadd.f32 %v7209_v19, %v8010_v36  ;;  %v8011_v19 = vld [vmem:[#allocation59_spill] sm:$0xff]  ;;  %v8017_v36 = vld [vmem:[#allocation22_spill] sm:$0xff] }
 0x272   : > { %3243 = vst.msk [vmem:[%s7106_s5 + $0x100] sm:$0xff] %vm3210_vm3, %v3178_v46  ;;  %v3181_v30 = vmax.f32 %v3117_v25, 0.0  ;;  %v3116_v26 = vadd.f32 %v7085_v5, %v3045_v33  ;;  %v2866_v42 = vadd.f32 %v2865_v21, %v2481_v31  ;;  %v3048_v53 = vmul.f32 %v7075_v11, %v2871_v1 }
 0x273   : > { %v7325_v56 = vpop.f32.mrf.mxu1  ;;  %v3600_v47 = vpop.f32.mrf.mxu0  ;;  %v2526_v1 = vadd.f32 %v7245_v38, %v8011_v19 }
 0x274   : > { %3246 = vst.msk [vmem:[%s7106_s5 + $0x118] sm:$0xff] %vm3210_vm3, %v3181_v30  ;;  %v3180_v12 = vmax.f32 %v3116_v26, 0.0  ;;  %v3047_v3 = vmul.f32 %v7075_v11, %v2866_v42  ;;  %v2881_v37 = vadd.f32 %v3600_v47, %v2496_v52  ;;  %v3119_v28 = vadd.f32 %v7085_v5, %v3048_v53  ;;  %v8012_v52 = vld [vmem:[#allocation57_spill] sm:$0xff] }
 0x275   : > { %v2557_v54 = vpop.f32.mrf.mxu1  ;;  %v2875_v49 = vpop.f32.mrf.mxu0  ;;  %v2521_v30 = vadd.f32 %v7233_v27, %v8012_v52 }
 0x276   : > { %3245 = vst.msk [vmem:[%s7106_s5 + $0x110] sm:$0xff] %vm3210_vm3, %v3180_v12  ;;  %v3118_v24 = vadd.f32 %v7085_v5, %v3047_v3  ;;  %v3050_v14 = vmul.f32 %v7075_v11, %v2881_v37  ;;  %v2876_v50 = vadd.f32 %v2875_v49, %v2491_v61  ;;  %v3183_v20 = vmax.f32 %v3119_v28, 0.0  ;;  %v8013_v12 = vld [vmem:[#allocation64_spill] sm:$0xff] }
 0x277   : > { %v7339_v41 = vpop.f32.mrf.mxu1  ;;  %v3603_v60 = vpop.f32.mrf.mxu0  ;;  %v2536_v38 = vadd.f32 %v7271_v2, %v8013_v12 }
 0x278   : > { %v3182_v62 = vmax.f32 %v3118_v24, 0.0  ;;  %v3121_v6 = vadd.f32 %v7085_v5, %v3050_v14  ;;  %v3049_v57 = vmul.f32 %v7075_v11, %v2876_v50  ;;  %3248 = vst.msk [vmem:[%s7106_s5 + $0x128] sm:$0xff] %vm3210_vm3, %v3183_v20  ;;  %v2891_v35 = vadd.f32 %v3603_v60, %v2506_v44  ;;  %v8014_v24 = vld [vmem:[#allocation61_spill] sm:$0xff] }
 0x279   : > { %v2562_v59 = vpop.f32.mrf.mxu1  ;;  %v2885_v7 = vpop.f32.mrf.mxu0  ;;  %v2531_v14 = vadd.f32 %v7257_v48, %v8014_v24  ;;  %v8015_v48 = vld [vmem:[#allocation18_spill] sm:$0xff] }
 0x27a   : > { %3247 = vst.msk [vmem:[%s7106_s5 + $0x120] sm:$0xff] %vm3210_vm3, %v3182_v62  ;;  %v3185_v43 = vmax.f32 %v3121_v6, 0.0  ;;  %v3120_v55 = vadd.f32 %v7085_v5, %v3049_v57  ;;  %v2886_v22 = vadd.f32 %v2885_v7, %v2501_v63  ;;  %v3052_v32 = vmul.f32 %v7075_v11, %v2891_v35  ;;  %v8016_v7 = vld [vmem:[#allocation16_spill] sm:$0xff] }
 0x27b   : > { %v7353_v29 = vpop.f32.mrf.mxu1  ;;  %v3606_v17 = vpop.f32.mrf.mxu0  ;;  %v2546_v6 = vadd.f32 %v7297_v13, %v8015_v48  ;;  %v2541_v51 = vadd.f32 %v7284_v58, %v8016_v7  ;;  %v2556_v13 = vadd.f32 %v7325_v56, %v8017_v36 }
 0x27c   : > { %3250 = vst.msk [vmem:[%s7106_s5 + $0x138] sm:$0xff] %vm3210_vm3, %v3185_v43  ;;  %v3184_v0 = vmax.f32 %v3120_v55, 0.0  ;;  %v3051_v40 = vmul.f32 %v7075_v11, %v2886_v22  ;;  %v2901_v4 = vadd.f32 %v3606_v17, %v2516_v45  ;;  %v3123_v23 = vadd.f32 %v7085_v5, %v3052_v32 }
 0x27d   : > { %v2567_v39 = vpop.f32.mrf.mxu1  ;;  %v2895_v31 = vpop.f32.mrf.mxu0 }
 0x27e   : > { %3249 = vst.msk [vmem:[%s7106_s5 + $0x130] sm:$0xff] %vm3210_vm3, %v3184_v0  ;;  %v3122_v46 = vadd.f32 %v7085_v5, %v3051_v40  ;;  %v3054_v25 = vmul.f32 %v7075_v11, %v2901_v4  ;;  %v2896_v33 = vadd.f32 %v2895_v31, %v2511_v8  ;;  %v3187_v10 = vmax.f32 %v3123_v23, 0.0  ;;  %v8018_v39 = vld [vmem:[#allocation20_spill] sm:$0xff] }
 0x27f   : > { %v7367_v21 = vpop.f32.mrf.mxu1  ;;  %v3609_v15 = vpop.f32.mrf.mxu0  ;;  %v2551_v31 = vadd.f32 %v7311_v18, %v8018_v39  ;;  %v8019_v18 = vld [vmem:[#allocation26_spill] sm:$0xff] }
 0x280   : > { %v3186_v26 = vmax.f32 %v3122_v46, 0.0  ;;  %v3125_v42 = vadd.f32 %v7085_v5, %v3054_v25  ;;  %v3053_v53 = vmul.f32 %v7075_v11, %v2896_v33  ;;  %3252 = vst.msk [vmem:[%s7106_s5 + $0x148] sm:$0xff] %vm3210_vm3, %v3187_v10  ;;  %v2911_v47 = vadd.f32 %v3609_v15, %v2526_v1 }
 0x281   : > { %v2572_v16 = vpop.f32.mrf.mxu1  ;;  %v2905_v61 = vpop.f32.mrf.mxu0 }
 0x282   : > { %3251 = vst.msk [vmem:[%s7106_s5 + $0x140] sm:$0xff] %vm3210_vm3, %v3186_v26  ;;  %v3189_v3 = vmax.f32 %v3125_v42, 0.0  ;;  %v3124_v27 = vadd.f32 %v7085_v5, %v3053_v53  ;;  %v2906_v37 = vadd.f32 %v2905_v61, %v2521_v30  ;;  %v3056_v28 = vmul.f32 %v7075_v11, %v2911_v47  ;;  %v8020_v47 = vld [vmem:[#allocation24_spill] sm:$0xff] }
 0x283   : > { %v2575_v54 = vpop.f32.mrf.mxu1  ;;  %v3612_v49 = vpop.f32.mrf.mxu0  ;;  %v2566_v30 = vadd.f32 %v7353_v29, %v8019_v18  ;;  %v2561_v16 = vadd.f32 %v7339_v41, %v8020_v47 }
 0x284   : > { %3254 = vst.msk [vmem:[%s7106_s5 + $0x158] sm:$0xff] %vm3210_vm3, %v3189_v3  ;;  %v3188_v50 = vmax.f32 %v3124_v27, 0.0  ;;  %v3055_v34 = vmul.f32 %v7075_v11, %v2906_v37  ;;  %v2921_v2 = vadd.f32 %v3612_v49, %v2536_v38  ;;  %v3127_v44 = vadd.f32 %v7085_v5, %v3056_v28  ;;  %v8021_v28 = vld [vmem:[#allocation30_spill] sm:$0xff] }
 0x285   : > { %v2577_v20 = vpop.f32.mrf.mxu1  ;;  %v2915_v60 = vpop.f32.mrf.mxu0  ;;  %v2576_v49 = vadd.f32 %v2575_v54, %v8021_v28 }
 0x286   : > { %3253 = vst.msk [vmem:[%s7106_s5 + $0x150] sm:$0xff] %vm3210_vm3, %v3188_v50  ;;  %v3126_v9 = vadd.f32 %v7085_v5, %v3055_v34  ;;  %v3058_v63 = vmul.f32 %v7075_v11, %v2921_v2  ;;  %v2916_v62 = vadd.f32 %v2915_v60, %v2531_v14  ;;  %v3191_v57 = vmax.f32 %v3127_v44, 0.0  ;;  %v8022_v2 = vld [vmem:[#allocation28_spill] sm:$0xff] }
 0x287   : > { %v7393_v35 = vpop.f32.mrf.mxu1  ;;  %v3615_v59 = vpop.f32.mrf.mxu0  ;;  %v2571_v44 = vadd.f32 %v7367_v21, %v8022_v2  ;;  %v8023_v21 = vld [vmem:[#allocation33_spill] sm:$0xff] }
 0x288   : > { %v3190_v45 = vmax.f32 %v3126_v9, 0.0  ;;  %v3129_v43 = vadd.f32 %v7085_v5, %v3058_v63  ;;  %v3057_v55 = vmul.f32 %v7075_v11, %v2916_v62  ;;  %3256 = vst.msk [vmem:[%s7106_s5 + $0x168] sm:$0xff] %vm3210_vm3, %v3191_v57  ;;  %v2931_v22 = vadd.f32 %v3615_v59, %v2546_v6 }
 0x289   : > { %v2582_v32 = vpop.f32.mrf.mxu1  ;;  %v2925_v17 = vpop.f32.mrf.mxu0 }
 0x28a   : > { %3255 = vst.msk [vmem:[%s7106_s5 + $0x160] sm:$0xff] %vm3210_vm3, %v3190_v45  ;;  %v3193_v8 = vmax.f32 %v3129_v43, 0.0  ;;  %v3128_v58 = vadd.f32 %v7085_v5, %v3057_v55  ;;  %v2926_v0 = vadd.f32 %v2925_v17, %v2541_v51  ;;  %v3060_v40 = vmul.f32 %v7075_v11, %v2931_v22  ;;  %v8024_v43 = vld [vmem:[#allocation32_spill] sm:$0xff] }
 0x28b   : > { %v2585_v4 = vpop.f32.mrf.mxu1  ;;  %v3618_v23 = vpop.f32.mrf.mxu0  ;;  %v2581_v55 = vadd.f32 %v7393_v35, %v8024_v43 }
 0x28c   : > { %3258 = vst.msk [vmem:[%s7106_s5 + $0x178] sm:$0xff] %vm3210_vm3, %v3193_v8  ;;  %v3192_v46 = vmax.f32 %v3128_v58, 0.0  ;;  %v3059_v25 = vmul.f32 %v7075_v11, %v2926_v0  ;;  %v2941_v56 = vadd.f32 %v3618_v23, %v2556_v13  ;;  %v3131_v33 = vadd.f32 %v7085_v5, %v3060_v40  ;;  %v8025_v58 = vld [vmem:[#allocation97_spill] sm:$0xff] }
 0x28d   : > { %v2587_v19 = vpop.f32.mrf.mxu1  ;;  %v2935_v1 = vpop.f32.mrf.mxu0  ;;  %v2586_v59 = vadd.f32 %v2585_v4, %v8023_v21 }
 0x28e   : > { %3257 = vst.msk [vmem:[%s7106_s5 + $0x170] sm:$0xff] %vm3210_vm3, %v3192_v46  ;;  %v3130_v10 = vadd.f32 %v7085_v5, %v3059_v25  ;;  %v3062_v15 = vmul.f32 %v7075_v11, %v2941_v56  ;;  %v2936_v52 = vadd.f32 %v2935_v1, %v2551_v31  ;;  %v3195_v26 = vmax.f32 %v3131_v33, 0.0  ;;  %v8026_v46 = vld [vmem:[#allocation34_spill] sm:$0xff] }
 0x28f   : > { %v2590_v42 = vpop.f32.mrf.mxu1  ;;  %v3621_v53 = vpop.f32.mrf.mxu0 }
 0x290   : > { %v3194_v61 = vmax.f32 %v3130_v10, 0.0  ;;  %v3133_v12 = vadd.f32 %v7085_v5, %v3062_v15  ;;  %v3061_v38 = vmul.f32 %v7075_v11, %v2936_v52  ;;  %3260 = vst.msk [vmem:[%s7106_s5 + $0x188] sm:$0xff] %vm3210_vm3, %v3195_v26  ;;  %v2951_v3 = vadd.f32 %v3621_v53, %v2566_v30 }
 0x291   : > { %v2592_v27 = vpop.f32.mrf.mxu1  ;;  %v2945_v37 = vpop.f32.mrf.mxu0  ;;  %v2591_v25 = vadd.f32 %v2590_v42, %v8026_v46  ;;  %v8027_v42 = vld [vmem:[#allocation36_spill] sm:$0xff] }
 0x292   : > { %3259 = vst.msk [vmem:[%s7106_s5 + $0x180] sm:$0xff] %vm3210_vm3, %v3194_v61  ;;  %v3197_v29 = vmax.f32 %v3133_v12, 0.0  ;;  %v3132_v24 = vadd.f32 %v7085_v5, %v3061_v38  ;;  %v2946_v41 = vadd.f32 %v2945_v37, %v2561_v16  ;;  %v3064_v14 = vmul.f32 %v7075_v11, %v2951_v3  ;;  %v8028_v61 = vld [vmem:[#allocation35_spill] sm:$0xff] }
 0x293   : > { %v2595_v50 = vpop.f32.mrf.mxu1  ;;  %v3624_v34 = vpop.f32.mrf.mxu0 }
 0x294   : > { %3262 = vst.msk [vmem:[%s7106_s5 + $0x198] sm:$0xff] %vm3210_vm3, %v3197_v29  ;;  %v3196_v20 = vmax.f32 %v3132_v24, 0.0  ;;  %v3063_v60 = vmul.f32 %v7075_v11, %v2946_v41  ;;  %v2961_v54 = vadd.f32 %v3624_v34, %v2576_v49  ;;  %v3135_v9 = vadd.f32 %v7085_v5, %v3064_v14 }
 0x295   : > { %v2597_v63 = vpop.f32.mrf.mxu1  ;;  %v2955_v62 = vpop.f32.mrf.mxu0  ;;  %v2596_v0 = vadd.f32 %v2595_v50, %v8025_v58 }
 0x296   : > { %3261 = vst.msk [vmem:[%s7106_s5 + $0x190] sm:$0xff] %vm3210_vm3, %v3196_v20  ;;  %v3134_v48 = vadd.f32 %v7085_v5, %v3063_v60  ;;  %v3066_v6 = vmul.f32 %v7075_v11, %v2961_v54  ;;  %v2956_v57 = vadd.f32 %v2955_v62, %v2571_v44  ;;  %v3199_v7 = vmax.f32 %v3135_v9, 0.0  ;;  %v8029_v44 = vld [vmem:[#allocation40_spill] sm:$0xff]  ;;  %v8030_v54 = vld [vmem:[#allocation42_spill] sm:$0xff] }
 0x297   : > { %v2600_v51 = vpop.f32.mrf.mxu1  ;;  %v3627_v45 = vpop.f32.mrf.mxu0 }
 0x298   : > { %v3198_v22 = vmax.f32 %v3134_v48, 0.0  ;;  %v3137_v32 = vadd.f32 %v7085_v5, %v3066_v6  ;;  %v3065_v17 = vmul.f32 %v7075_v11, %v2956_v57  ;;  %3264 = vst.msk [vmem:[%s7106_s5 + $0x1a8] sm:$0xff] %vm3210_vm3, %v3199_v7  ;;  %v2971_v36 = vadd.f32 %v3627_v45, %v2586_v59 }
 0x299   : > { %v2602_v13 = vpop.f32.mrf.mxu1  ;;  %v2965_v8 = vpop.f32.mrf.mxu0  ;;  %v2601_v12 = vadd.f32 %v2600_v51, %v8028_v61 }
 0x29a   : > { %3263 = vst.msk [vmem:[%s7106_s5 + $0x1a0] sm:$0xff] %vm3210_vm3, %v3198_v22  ;;  %v3201_v40 = vmax.f32 %v3137_v32, 0.0  ;;  %v3136_v4 = vadd.f32 %v7085_v5, %v3065_v17  ;;  %v2966_v35 = vadd.f32 %v2965_v8, %v2581_v55  ;;  %v3068_v23 = vmul.f32 %v7075_v11, %v2971_v36 }
 0x29b   : > { %v2605_v39 = vpop.f32.mrf.mxu1  ;;  %v3630_v31 = vpop.f32.mrf.mxu0 }
 0x29c   : > { %3266 = vst.msk [vmem:[%s7106_s5 + $0x1b8] sm:$0xff] %vm3210_vm3, %v3201_v40  ;;  %v3200_v56 = vmax.f32 %v3136_v4, 0.0  ;;  %v3067_v33 = vmul.f32 %v7075_v11, %v2966_v35  ;;  %v2981_v19 = vadd.f32 %v3630_v31, %v2596_v0  ;;  %v3139_v1 = vadd.f32 %v7085_v5, %v3068_v23 }
 0x29d   : > { %v2607_v10 = vpop.f32.mrf.mxu1  ;;  %v2975_v15 = vpop.f32.mrf.mxu0  ;;  %v2606_v53 = vadd.f32 %v2605_v39, %v8027_v42 }
 0x29e   : > { %3265 = vst.msk [vmem:[%s7106_s5 + $0x1b0] sm:$0xff] %vm3210_vm3, %v3200_v56  ;;  %v3138_v52 = vadd.f32 %v7085_v5, %v3067_v33  ;;  %v3070_v18 = vmul.f32 %v7075_v11, %v2981_v19  ;;  %v2976_v30 = vadd.f32 %v2975_v15, %v2591_v25  ;;  %v3203_v26 = vmax.f32 %v3139_v1, 0.0 }
 0x29f   : > { %v2610_v47 = vpop.f32.mrf.mxu1  ;;  %v3633_v16 = vpop.f32.mrf.mxu0 }
 0x2a0   : > { %v3202_v38 = vmax.f32 %v3138_v52, 0.0  ;;  %v3141_v3 = vadd.f32 %v7085_v5, %v3070_v18  ;;  %v3069_v27 = vmul.f32 %v7075_v11, %v2976_v30  ;;  %3268 = vst.msk [vmem:[%s7106_s5 + $0x1c8] sm:$0xff] %vm3210_vm3, %v3203_v26  ;;  %v2991_v37 = vadd.f32 %v3633_v16, %v2606_v53 }
 0x2a1   : > { %v2612_v28 = vpop.f32.mrf.mxu1  ;;  %v2985_v49 = vpop.f32.mrf.mxu0  ;;  %v2611_v20 = vadd.f32 %v2610_v47, %v8029_v44 }
 0x2a2   : > { %3267 = vst.msk [vmem:[%s7106_s5 + $0x1c0] sm:$0xff] %vm3210_vm3, %v3202_v38  ;;  %v3205_v29 = vmax.f32 %v3141_v3, 0.0  ;;  %v3140_v24 = vadd.f32 %v7085_v5, %v3069_v27  ;;  %v2986_v41 = vadd.f32 %v2985_v49, %v2601_v12  ;;  %v3072_v14 = vmul.f32 %v7075_v11, %v2991_v37 }
 0x2a3   : > { %v2615_v50 = vpop.f32.mrf.mxu1  ;;  %v3636_v34 = vpop.f32.mrf.mxu0 }
 0x2a4   : > { %3270 = vst.msk [vmem:[%s7106_s5 + $0x1d8] sm:$0xff] %vm3210_vm3, %v3205_v29  ;;  %v3204_v2 = vmax.f32 %v3140_v24, 0.0  ;;  %v3071_v60 = vmul.f32 %v7075_v11, %v2986_v41  ;;  %v2616_v9 = vadd.f32 %v2615_v50, %v8030_v54  ;;  %v3143_v63 = vadd.f32 %v7085_v5, %v3072_v14 }
 0x2a5   : > { %v2617_v62 = vpop.f32.mrf.mxu1  ;;  %v2995_v48 = vpop.f32.mrf.mxu0 }
 0x2a6   : > { %3269 = vst.msk [vmem:[%s7106_s5 + $0x1d0] sm:$0xff] %vm3210_vm3, %v3204_v2  ;;  %v3142_v6 = vadd.f32 %v7085_v5, %v3071_v60  ;;  %v3001_v57 = vadd.f32 %v3636_v34, %v2616_v9  ;;  %v2996_v21 = vadd.f32 %v2995_v48, %v2611_v20  ;;  %v3207_v59 = vmax.f32 %v3143_v63, 0.0 }
 0x2a8   : > { %v3206_v7 = vmax.f32 %v3142_v6, 0.0  ;;  %v3074_v51 = vmul.f32 %v7075_v11, %v3001_v57  ;;  %v3073_v45 = vmul.f32 %v7075_v11, %v2996_v21  ;;  %3272 = vst.msk [vmem:[%s7106_s5 + $0x1e8] sm:$0xff] %vm3210_vm3, %v3207_v59 }
 0x2aa   : > { %3271 = vst.msk [vmem:[%s7106_s5 + $0x1e0] sm:$0xff] %vm3210_vm3, %v3206_v7  ;;  %v3145_v43 = vadd.f32 %v7085_v5, %v3074_v51  ;;  %v3144_v55 = vadd.f32 %v7085_v5, %v3073_v45 }
 0x2ac   : > { %v3209_v11 = vmax.f32 %v3145_v43, 0.0  ;;  %v3208_v22 = vmax.f32 %v3144_v55, 0.0 }
 0x2ae   : > { %3274 = vst.msk [vmem:[%s7106_s5 + $0x1f8] sm:$0xff] %vm3210_vm3, %v3209_v11  ;;  %3273 = vst.msk [vmem:[%s7106_s5 + $0x1f0] sm:$0xff] %vm3210_vm3, %v3208_v22 }
 0x2af   : > { %4310 = shalt.err (!%p4307_p6)
}
 0x2b0   : > { %s4311_s9 = scalar_lea.hbm %s7494_s13, 8192  ;;  %s4315_s8 = scalar_lea.hbm %s7559_s4, 32768 }
 0x2b1   : > { %p4312_p7 = scmp.ne.s32.totalorder %s7494_s13, %s4311_s9  ;;  %p4316_p11 = scmp.lt.s32.totalorder %s7494_s13, %s7559_s4 }
 0x2b2   : > { %p4317_p12 = scmp.lt.s32.totalorder %s4315_s8, %s4311_s9 }
 0x2b3   : > { %p4313_p9 = pnand %p4312_p7, %p4472_p3 }
 0x2b4   : > { %p4318_p13 = por %p4317_p12, %p4316_p11 }
 0x2b5   : > { %p4314_p10 = pneg %p4313_p9 }
 0x2b7   : > { %p4319_p0 = pnand %p4318_p13, %p4314_p10 }
 0x2b9   : > { %4322 = shalt.err (!%p4319_p0)
}
 0x2ba   : > { %s4394_s11 = smov 128   ;;  %s4395_s12 = smov 8  }
 0x2bb   : > { %3702 = dma.vmem_to_hbm [thread:$0]  (%p4472_p3), %s7496_s10, 8192, %s7494_s13, %s7504_s14, %s4394_s11, %s4394_s11, %s4395_s12  }
 0x2bc PF: > { %p3708_p1 = scmp.ge.s32.totalorder %s4389_s22, 2  ;;  %s3307_s23 = sand.u32 1, %s4361_s15  }
 0x2bd   : > { %s3308_s24 = scalar_lea.sflag [#allocation3], %s3307_s23 }
 0x2be   : > { %p3705_p2 = pnand %p3708_p1, %p4481_p8 }
 0x2c0   : > { %p3706_p4 = pneg %p3705_p2 }
 0x2c2   : > { %4356 = dma.done.wait (%p3706_p4), %s3308_s24, 8192  }
 0x2c3   : > { %4358 = vsyncadd (%p3706_p4), %s3308_s24, 4294959104  ;;  %s17_s22 = sadd.s32 1, %s4389_s22   ;;  %s8031_s15 = smov %s4365_s16 }
 0x2c4   : > { %p14_p5 = scmp.ge.s32.totalorder %s17_s22, 6   ;;  %s8032_s16 = smov %s4369_s17 }
 0x2c5   : > { %s8033_s17 = smov %s4490_s7  ;;  %s8034_s18 = smov %s4381_s20 }
 0x2c6   : > { %s8035_s19 = smov %s4385_s21  ;;  %s8036_s20 = smov %s8039_s25 }
 0x2c7   : > { %s8037_s21 = smov %s8043_s26  ;;  %16 = sbr.rel (!%p14_p5) target bundleno = 5 (0x5), region = 72 }
 0x2cc   :  { %3313 = vsyncpa [#allocation3], 1 }
 0x2cd   :  { %3315 = vsyncpa [#allocation3 + $0x1], 1 }

</bundles_post_ra>
